<compile_context>
chip_gen: v7x
topology: tpu7x:2x2x1
jax: 0.10.0
libtpu: 0.0.40
codegen_flags: <defaults>
</compile_context>

<pallas_src>
import functools
import math

import jax
import jax.numpy as jnp
from jax.experimental import pallas as pl
from jax.experimental.pallas import tpu as pltpu


# --------------------------------------------------------------------------
# helpers
# --------------------------------------------------------------------------
def _round_up(n, m):
    return ((n + m - 1) // m) * m


def _spatial_tiling(s, max_tile=8192):
    """Pick the largest lane tile (multiple of 128, <= max_tile) and a padded S
    that is an exact multiple of it (pad once, never per-layer)."""
    s128 = _round_up(s, 128)
    n_tiles = max(1, -(-s128 // max_tile))
    tile = _round_up(-(-s128 // n_tiles), 128)
    return tile, n_tiles * tile


def _pad_last(x, s_pad):
    s = x.shape[-1]
    if s == s_pad:
        return x
    pad = [(0, 0)] * (x.ndim - 1) + [(0, s_pad - s)]
    return jnp.pad(x, pad)


def _gelu_exact(x):
    # torch.nn.functional.gelu default (approximate='none'): 0.5*x*(1+erf(x/sqrt(2)))
    # TODO(synk): on v7x, if the bundle dump shows VALU saturation, switch to tanh-approx GELU.
    return 0.5 * x * (1.0 + jax.lax.erf(x * (1.0 / math.sqrt(2.0))))


# --------------------------------------------------------------------------
# Pallas kernel 1: channel-major pointwise linear (+residual, +GELU)
#   out[b, o, s] = sum_i W[o, i] * x[b, i, s] + bias[o] (+ res[b, o, s]) (GELU)
# --------------------------------------------------------------------------
def _linear_cm_kernel(*refs, has_res, use_gelu):
    if has_res:
        x_ref, w_ref, b_ref, r_ref, o_ref = refs
    else:
        x_ref, w_ref, b_ref, o_ref = refs
    x = x_ref[0].astype(jnp.bfloat16)                                   # (Cin, Ts)
    y = jnp.dot(w_ref[...], x, preferred_element_type=jnp.float32)      # (Cout, Ts) f32
    y = y + b_ref[...]                                                  # lane-broadcast bias
    if has_res:
        y = y + r_ref[0].astype(jnp.float32)
    if use_gelu:
        y = _gelu_exact(y)
    o_ref[0] = y.astype(o_ref.dtype)


def linear_cm(x, w, b, res=None, use_gelu=False, *, tile_s, out_dtype=jnp.float32):
    """x: (B, Cin, S_pad); w: (Cout, Cin); b: (Cout,); res: (B, Cout, S_pad) or None.
    S_pad must be a multiple of tile_s (caller pads once)."""
    B, Cin, S_pad = x.shape
    Cout = w.shape[0]
    assert S_pad % tile_s == 0

    args = [x, w.astype(jnp.bfloat16), b.reshape(Cout, 1).astype(jnp.float32)]
    in_specs = [
        pl.BlockSpec((1, Cin, tile_s), lambda bi, si: (bi, 0, si)),
        pl.BlockSpec((Cout, Cin), lambda bi, si: (0, 0)),
        pl.BlockSpec((Cout, 1), lambda bi, si: (0, 0)),
    ]
    has_res = res is not None
    if has_res:
        args.append(res)
        in_specs.append(pl.BlockSpec((1, Cout, tile_s), lambda bi, si: (bi, 0, si)))

    kernel = functools.partial(_linear_cm_kernel, has_res=has_res, use_gelu=use_gelu)
    x_bytes = jnp.dtype(x.dtype).itemsize
    o_bytes = jnp.dtype(out_dtype).itemsize
    r_bytes = jnp.dtype(res.dtype).itemsize if has_res else 0
    flops = 2 * B * S_pad * Cin * Cout
    bytes_acc = (B * S_pad * (Cin * x_bytes + Cout * o_bytes)
                 + (B * S_pad * Cout * r_bytes if has_res else 0)
                 + 2 * Cout * Cin + 4 * Cout)

    return pl.pallas_call(
        kernel,
        out_shape=jax.ShapeDtypeStruct((B, Cout, S_pad), out_dtype),
        grid_spec=pltpu.PrefetchScalarGridSpec(
            num_scalar_prefetch=0,
            grid=(B, S_pad // tile_s),
            in_specs=in_specs,
            out_specs=pl.BlockSpec((1, Cout, tile_s), lambda bi, si: (bi, 0, si)),
        ),
        compiler_params=pltpu.CompilerParams(
            dimension_semantics=("parallel", "parallel"),
            vmem_limit_bytes=32 * 1024 * 1024,
        ),
        cost_estimate=pl.CostEstimate(
            flops=flops,
            transcendentals=B * Cout * S_pad if use_gelu else 0,
            bytes_accessed=bytes_acc,
        ),
    )(*args)


# --------------------------------------------------------------------------
# Pallas kernel 2: fused projection head  fc1 -> GELU -> fc2  (channel-major)
#   intermediate (128, tile_s) stays in VMEM scratch (bf16), never touches HBM
# --------------------------------------------------------------------------
def _head_kernel(x_ref, w1_ref, b1_ref, w2_ref, b2_ref, o_ref, h_scr):
    x = x_ref[0].astype(jnp.bfloat16)                                   # (Cin, Ts)
    h = jnp.dot(w1_ref[...], x, preferred_element_type=jnp.float32)     # (H1, Ts) f32
    h_scr[...] = _gelu_exact(h + b1_ref[...]).astype(jnp.bfloat16)      # bf16 scratch
    y = jnp.dot(w2_ref[...], h_scr[...],
                preferred_element_type=jnp.float32) + b2_ref[...]        # (Cout, Ts)
    o_ref[0] = y.astype(o_ref.dtype)


def head_cm(x, w1, b1, w2, b2, *, tile_s):
    """x: (B, Cin, S_pad); w1: (H1, Cin); b1: (H1,); w2: (Cout, H1); b2: (Cout,)."""
    B, Cin, S_pad = x.shape
    H1 = w1.shape[0]
    Cout = w2.shape[0]
    assert S_pad % tile_s == 0

    return pl.pallas_call(
        _head_kernel,
        out_shape=jax.ShapeDtypeStruct((B, Cout, S_pad), jnp.float32),
        grid_spec=pltpu.PrefetchScalarGridSpec(
            num_scalar_prefetch=0,
            grid=(B, S_pad // tile_s),
            in_specs=[
                pl.BlockSpec((1, Cin, tile_s), lambda bi, si: (bi, 0, si)),
                pl.BlockSpec((H1, Cin), lambda bi, si: (0, 0)),
                pl.BlockSpec((H1, 1), lambda bi, si: (0, 0)),
                pl.BlockSpec((Cout, H1), lambda bi, si: (0, 0)),
                pl.BlockSpec((Cout, 1), lambda bi, si: (0, 0)),
            ],
            out_specs=pl.BlockSpec((1, Cout, tile_s), lambda bi, si: (bi, 0, si)),
            scratch_shapes=[pltpu.VMEM((H1, tile_s), jnp.bfloat16)],
        ),
        compiler_params=pltpu.CompilerParams(
            dimension_semantics=("parallel", "parallel"),
            vmem_limit_bytes=32 * 1024 * 1024,
        ),
        cost_estimate=pl.CostEstimate(
            flops=2 * B * S_pad * (Cin * H1 + H1 * Cout),
            transcendentals=B * H1 * S_pad,
            bytes_accessed=B * S_pad * (Cin * jnp.dtype(x.dtype).itemsize + Cout * 4)
                           + 2 * (H1 * Cin + Cout * H1),
        ),
    )(x, w1.astype(jnp.bfloat16), b1.reshape(H1, 1).astype(jnp.float32),
      w2.astype(jnp.bfloat16), b2.reshape(Cout, 1).astype(jnp.float32))


# --------------------------------------------------------------------------
# Pallas kernel 3: lane-dense complex mode mixing
#   modes (M = 2*m1*m2, padded to 128) live on the lane axis; per mode:
#   out[b, o, m] = sum_i a[b, i, m] * w[i, o, m]   (complex, 4 real products)
#   contraction over Cin runs as full-width VPU FMAs with (1,M)->(Cout,M)
#   sublane broadcasts; real/imag are separate arrays (no HBM concat, no
#   intra-tile sublane slicing); gridded over batch ("parallel").
# --------------------------------------------------------------------------
def _mode_mix_kernel(ar_ref, ai_ref, wr_ref, wi_ref, or_ref, oi_ref):
    cin = ar_ref.shape[1]
    cout = wr_ref.shape[1]
    m = ar_ref.shape[2]
    acc_r = jnp.zeros((cout, m), jnp.float32)
    acc_i = jnp.zeros((cout, m), jnp.float32)
    for i in range(cin):                           # static trip count (Cin = width)
        a_r = ar_ref[0, i:i + 1, :]                # (1, M) -> sublane broadcast
        a_i = ai_ref[0, i:i + 1, :]
        w_r = wr_ref[i]                            # (Cout, M)
        w_i = wi_ref[i]
        acc_r = acc_r + (a_r * w_r - a_i * w_i)
        acc_i = acc_i + (a_r * w_i + a_i * w_r)
    or_ref[0] = acc_r
    oi_ref[0] = acc_i


def complex_mode_mix(ar, ai, wr, wi):
    """ar/ai: (B, Cin, Mp) f32; wr/wi: (Cin, Cout, Mp) f32 -> (B, Cout, Mp) f32 x2."""
    B, Cin, Mp = ar.shape
    Cout = wr.shape[1]
    # explicit VMEM budget (v5e default scoped VMEM is only 16 MiB)
    vmem_need = (2 * Cin * Cout * Mp * 4            # resident weights
                 + 4 * (Cin + Cout) * Mp * 4 * 2    # double-buffered a / out blocks
                 + (8 << 20))                       # headroom
    vmem_limit = min(100 * 1024 * 1024, max(32 * 1024 * 1024, vmem_need))

    return pl.pallas_call(
        _mode_mix_kernel,
        out_shape=(jax.ShapeDtypeStruct((B, Cout, Mp), jnp.float32),
                   jax.ShapeDtypeStruct((B, Cout, Mp), jnp.float32)),
        grid_spec=pltpu.PrefetchScalarGridSpec(
            num_scalar_prefetch=0,
            grid=(B,),
            in_specs=[
                pl.BlockSpec((1, Cin, Mp), lambda b: (b, 0, 0)),
                pl.BlockSpec((1, Cin, Mp), lambda b: (b, 0, 0)),
                pl.BlockSpec((Cin, Cout, Mp), lambda b: (0, 0, 0)),
                pl.BlockSpec((Cin, Cout, Mp), lambda b: (0, 0, 0)),
            ],
            out_specs=(
                pl.BlockSpec((1, Cout, Mp), lambda b: (b, 0, 0)),
                pl.BlockSpec((1, Cout, Mp), lambda b: (b, 0, 0)),
            ),
        ),
        compiler_params=pltpu.CompilerParams(
            dimension_semantics=("parallel",),
            vmem_limit_bytes=vmem_limit,
        ),
        cost_estimate=pl.CostEstimate(
            flops=8 * B * Cin * Cout * Mp,
            transcendentals=0,
            bytes_accessed=4 * (2 * B * Cin * Mp + 2 * Cin * Cout * Mp + 2 * B * Cout * Mp),
        ),
    )(ar, ai, wr, wi)


# --------------------------------------------------------------------------
# GaborConv2d weight generation (tiny parameter setup -> plain JAX)
# --------------------------------------------------------------------------
def gabor_weight(freq, theta, sigma, gamma, grid_size):
    lin = jnp.linspace(-0.5, 0.5, grid_size)
    yy, xx = jnp.meshgrid(lin, lin, indexing="ij")   # torch.meshgrid default 'ij'
    sigma_x = sigma
    sigma_y = sigma / (gamma + 1e-5)
    u = xx * jnp.cos(theta) + yy * jnp.sin(theta)
    v = -xx * jnp.sin(theta) + yy * jnp.cos(theta)
    test1 = sigma_x ** 2 * (u - freq / jnp.pi) ** 2
    test2 = sigma_y ** 2 * v ** 2
    return jnp.exp(-2.0 * jnp.pi ** 2 * (test1 + test2))


# --------------------------------------------------------------------------
# SpectralConv2d_fast  (FFT in plain JAX, mode mixing in Pallas, NCHW layout)
# --------------------------------------------------------------------------
def spectral_conv2d(x, w1, w2, gabor_params, m1, m2, gabor_grid):
    """x: (B, Cin, H, W); w1, w2: (Cin, Cout, m1, m2) complex64 -> (B, Cout, H, W) f32."""
    B, Cin, H, W = x.shape
    Cout = w1.shape[1]
    Wf = W // 2 + 1
    if H < 2 * m1 or Wf < m2:
        raise ValueError("spatial grid too small for requested Fourier modes")

    gab = jnp.fft.ifftshift(gabor_weight(*gabor_params, gabor_grid))
    g1 = gab[:m1, :m2]
    g2 = gab[-m1:, :m2]
    # low/high weights concatenated along the mode-row axis -> one Pallas call per layer
    ew = jnp.concatenate([w1 * g1[None, None], w2 * g2[None, None]], axis=2)  # (Cin,Cout,2m1,m2)

    # TODO(synk): rfft2/irfft2 have no Pallas TPU equivalent; done in plain JAX (XLA FFT).
    x_ft = jnp.fft.rfft2(x.astype(jnp.float32), axes=(2, 3))                  # (B,Cin,H,Wf) c64
    a = jnp.concatenate([x_ft[:, :, :m1, :m2], x_ft[:, :, H - m1:, :m2]], axis=2)  # (B,Cin,2m1,m2)

    M = 2 * m1 * m2
    Mp = _round_up(M, 128)
    a = a.reshape(B, Cin, M)
    w_m = ew.reshape(Cin, Cout, M)
    ar = _pad_last(jnp.real(a).astype(jnp.float32), Mp)
    ai = _pad_last(jnp.imag(a).astype(jnp.float32), Mp)
    wr = _pad_last(jnp.real(w_m).astype(jnp.float32), Mp)
    wi = _pad_last(jnp.imag(w_m).astype(jnp.float32), Mp)

    out_r, out_i = complex_mode_mix(ar, ai, wr, wi)                            # (B, Cout, Mp)
    out = jax.lax.complex(out_r[:, :, :M], out_i[:, :, :M]).reshape(B, Cout, 2 * m1, m2)

    # Assemble out_ft via pad/concat (no zeros+scatter). Requires H >= 2*m1 (guarded above).
    out = jnp.pad(out, ((0, 0), (0, 0), (0, 0), (0, Wf - m2)))
    out_ft = jnp.concatenate(
        [out[:, :, :m1],
         jnp.zeros((B, Cout, H - 2 * m1, Wf), jnp.complex64),
         out[:, :, m1:]],
        axis=2)                                                                # (B,Cout,H,Wf)

    return jnp.fft.irfft2(out_ft, s=(H, W), axes=(2, 3)).astype(jnp.float32)


# --------------------------------------------------------------------------
# FNO2d forward (activations kept channel-major (B, C, S_pad), stored bf16)
# --------------------------------------------------------------------------
def fno2d_forward(x, params, *, modes1, modes2, width, gabor_grid, max_tile=8192):
    B, X, Y = x.shape[0], x.shape[1], x.shape[2]
    S = X * Y
    x = x.reshape(B, X, Y, x.shape[3] * x.shape[4])                      # (B, X, Y, 15)
    x = jnp.transpose(x, (0, 3, 1, 2)).astype(jnp.float32)               # (B, 15, X, Y)

    # get_grid (built channel-major directly)
    gridx = jnp.broadcast_to(
        jnp.linspace(0.0, 1.0, X, dtype=jnp.float32).reshape(1, 1, X, 1), (B, 1, X, Y))
    gridy = jnp.broadcast_to(
        jnp.linspace(0.0, 1.0, Y, dtype=jnp.float32).reshape(1, 1, 1, Y), (B, 1, X, Y))
    x = jnp.concatenate([x, gridx, gridy], axis=1).reshape(B, 17, S)     # (B, 17, S)

    # pick one big lane tile and pad S ONCE (no per-layer HBM pad passes)
    tile_s, S_pad = _spatial_tiling(S, max_tile)
    x = _pad_last(x, S_pad)

    # fc0 -> bf16 hidden activations (matmuls accumulate f32)
    h = linear_cm(x, params["fc0_w"], params["fc0_b"],
                  tile_s=tile_s, out_dtype=jnp.bfloat16)                 # (B, width, S_pad) bf16

    # 4 Fourier layers: h <- gelu?(spectral(h) + conv1x1(h))
    for l in range(4):
        h_sp = (h[:, :, :S] if S_pad != S else h).reshape(B, width, X, Y)
        sp = spectral_conv2d(
            h_sp,
            params[f"conv{l}_w1"],
            params[f"conv{l}_w2"],
            params[f"conv{l}_gabor"],
            modes1, modes2, gabor_grid,
        )                                                                # (B, width, X, Y) f32
        res = _pad_last(sp.reshape(B, width, S), S_pad)
        h = linear_cm(
            h,
            params[f"w{l}_w"],
            params[f"w{l}_b"],
            res=res,
            use_gelu=(l < 3),                 # no GELU after the last Fourier layer
            tile_s=tile_s,
            out_dtype=jnp.bfloat16,
        )

    # fused fc1 + GELU + fc2
    y = head_cm(h, params["fc1_w"], params["fc1_b"], params["fc2_w"], params["fc2_b"],
                tile_s=tile_s)                                           # (B, 3, S_pad) f32
    y = y[:, :, :S] if S_pad != S else y
    return jnp.transpose(y.reshape(B, 3, X, Y), (0, 2, 3, 1))            # (B, X, Y, 3)


# --------------------------------------------------------------------------
# Deterministic parameter init (synthetic; shapes match the torch module,
# dense weights stored (out, in) like torch Linear / squeezed 1x1 Conv2d)
# --------------------------------------------------------------------------
def init_params(key, modes1, modes2, width):
    params = {}
    keys = iter(jax.random.split(key, 64))

    def uni(shape, scale=0.1):
        return (scale * jax.random.uniform(next(keys), shape)).astype(jnp.float32)

    # fc0: Linear(17, width)  -> (out, in)
    params["fc0_w"] = uni((width, 17))
    params["fc0_b"] = uni((width,))

    scale = 1.0 / (width * width)
    gabor_init = (
        jnp.float32(1.1107),  # freq
        jnp.float32(0.39),    # theta
        jnp.float32(2.82),    # sigma
        jnp.float32(1.0),     # gamma
    )
    for l in range(4):
        # SpectralConv2d_fast weights1/weights2: (Cin, Cout, m1, m2) complex
        for wn in ("w1", "w2"):
            re = jax.random.uniform(next(keys), (width, width, modes1, modes2))
            im = jax.random.uniform(next(keys), (width, width, modes1, modes2))
            params[f"conv{l}_{wn}"] = (scale * (re + 1j * im)).astype(jnp.complex64)
        params[f"conv{l}_gabor"] = gabor_init
        # weights3 is defined in the torch module but unused in forward -> omitted.
        # 1x1 Conv2d(width, width): (out, in) + bias (out,)
        params[f"w{l}_w"] = uni((width, width))
        params[f"w{l}_b"] = uni((width,))

    params["fc1_w"] = uni((128, width))
    params["fc1_b"] = uni((128,))
    params["fc2_w"] = uni((3, 128))
    params["fc2_b"] = uni((3,))
    return params


if __name__ == "__main__":
    key = jax.random.PRNGKey(0)
    k_in, k_p = jax.random.split(key)

    # Small shapes consistent with forward: input (B, X, Y, T, C) with T*C = 15,
    # so that T*C + 2 grid channels = 17 = fc0 in_features.
    B, X, Y, T, C = 2, 16, 16, 5, 3
    modes1 = modes2 = 4
    width = 32
    gabor_grid = 32  # s + len - 1 with s=32, len=1 (only the mode slices matter)

    x = jax.random.normal(k_in, (B, X, Y, T, C), dtype=jnp.float32)
    params = init_params(k_p, modes1, modes2, width)

    fwd = jax.jit(
        functools.partial(
            fno2d_forward, modes1=modes1, modes2=modes2, width=width, gabor_grid=gabor_grid
        )
    )
    out = fwd(x, params)
    jax.block_until_ready(out)
    assert out.shape == (B, X, Y, 3)
    assert bool(jnp.all(jnp.isfinite(out)))
    print("KERNEL_OK")
</pallas_src>

<mosaic_0001>
module attributes {stable_mosaic.version = 11 : i64} {
  func.func @_linear_cm_kernel(%arg0: i32, %arg1: i32, %arg2: memref<1x17x256xf32, #tpu.memory_space<vmem>>, %arg3: memref<32x17xbf16, #tpu.memory_space<vmem>>, %arg4: memref<32x1xf32, #tpu.memory_space<vmem>>, %arg5: memref<1x32x256xbf16, #tpu.memory_space<vmem>>) attributes {dimension_semantics = [#tpu.dimension_semantics<parallel>, #tpu.dimension_semantics<parallel>], iteration_bounds = array<i64: 2, 1>, scalar_prefetch = 0 : i64, scratch_operands = 0 : i64, tpu.core_type = #tpu.core_type<tc>, window_params = [{transform_indices = @transform_0, window_bounds = array<i64: 1, 17, 256>}, {pipeline_mode = #tpu.pipeline_mode<synchronous>, transform_indices = @transform_1, window_bounds = array<i64: 32, 17>}, {pipeline_mode = #tpu.pipeline_mode<synchronous>, transform_indices = @transform_2, window_bounds = array<i64: 32, 1>}, {transform_indices = @transform_3, window_bounds = array<i64: 1, 32, 256>}]} {
    %c0 = arith.constant 0 : index
    %c0_0 = arith.constant 0 : index
    %c0_1 = arith.constant 0 : index
    %0 = vector.load %arg2[%c0, %c0_0, %c0_1] : memref<1x17x256xf32, #tpu.memory_space<vmem>>, vector<1x17x256xf32>
    %1 = vector.shape_cast %0 : vector<1x17x256xf32> to vector<17x256xf32>
    %2 = arith.truncf %1 : vector<17x256xf32> to vector<17x256xbf16>
    %c0_2 = arith.constant 0 : index
    %c0_3 = arith.constant 0 : index
    %3 = vector.load %arg3[%c0_2, %c0_3] : memref<32x17xbf16, #tpu.memory_space<vmem>>, vector<32x17xbf16>
    %cst = arith.constant dense<0.000000e+00> : vector<32x256xf32>
    %4 = tpu.matmul %3, %2, %cst {dimension_numbers = #tpu.dot_dimension_numbers<[1], [0], [0], [1], [0, 0, 1, 1], [], []>} : vector<32x17xbf16>, vector<17x256xbf16>, vector<32x256xf32> -> vector<32x256xf32>
    %c0_4 = arith.constant 0 : index
    %c0_5 = arith.constant 0 : index
    %5 = vector.load %arg4[%c0_4, %c0_5] : memref<32x1xf32, #tpu.memory_space<vmem>>, vector<32x1xf32>
    %6 = vector.broadcast %5 : vector<32x1xf32> to vector<32x256xf32>
    %7 = arith.addf %4, %6 : vector<32x256xf32>
    %8 = arith.truncf %7 : vector<32x256xf32> to vector<32x256xbf16>
    %c0_6 = arith.constant 0 : index
    %c0_7 = arith.constant 0 : index
    %c0_8 = arith.constant 0 : index
    %9 = vector.load %arg5[%c0_6, %c0_7, %c0_8] : memref<1x32x256xbf16, #tpu.memory_space<vmem>>, vector<1x32x256xbf16>
    %10 = vector.shape_cast %9 : vector<1x32x256xbf16> to vector<32x256xbf16>
    %11 = vector.shape_cast %8 : vector<32x256xbf16> to vector<1x32x256xbf16>
    tpu.vector_store %arg5[%c0_6, %c0_7, %c0_8], %11 {strides = array<i32>} : memref<1x32x256xbf16, #tpu.memory_space<vmem>>, vector<1x32x256xbf16>,
    return
  }
  func.func @transform_0(%arg0: i32, %arg1: i32) -> (i32, i32, i32) {
    %c0_i32 = arith.constant 0 : i32
    %c0_i32_0 = arith.constant 0 : i32
    return %arg0, %c0_i32, %arg1 : i32, i32, i32
  }
  func.func @transform_1(%arg0: i32, %arg1: i32) -> (i32, i32) {
    %c0_i32 = arith.constant 0 : i32
    %c0_i32_0 = arith.constant 0 : i32
    %c0_i32_1 = arith.constant 0 : i32
    return %c0_i32, %c0_i32_0 : i32, i32
  }
  func.func @transform_2(%arg0: i32, %arg1: i32) -> (i32, i32) {
    %c0_i32 = arith.constant 0 : i32
    %c0_i32_0 = arith.constant 0 : i32
    %c0_i32_1 = arith.constant 0 : i32
    return %c0_i32, %c0_i32_0 : i32, i32
  }
  func.func @transform_3(%arg0: i32, %arg1: i32) -> (i32, i32, i32) {
    %c0_i32 = arith.constant 0 : i32
    %c0_i32_0 = arith.constant 0 : i32
    return %arg0, %c0_i32, %arg1 : i32, i32, i32
  }
}

module attributes {stable_mosaic.version = 11 : i64} {
  func.func @_mode_mix_kernel(%arg0: i32, %arg1: memref<1x32x128xf32, #tpu.memory_space<vmem>>, %arg2: memref<1x32x128xf32, #tpu.memory_space<vmem>>, %arg3: memref<32x32x128xf32, #tpu.memory_space<vmem>>, %arg4: memref<32x32x128xf32, #tpu.memory_space<vmem>>, %arg5: memref<1x32x128xf32, #tpu.memory_space<vmem>>, %arg6: memref<1x32x128xf32, #tpu.memory_space<vmem>>) attributes {dimension_semantics = [#tpu.dimension_semantics<parallel>], iteration_bounds = array<i64: 2>, scalar_prefetch = 0 : i64, scratch_operands = 0 : i64, tpu.core_type = #tpu.core_type<tc>, window_params = [{transform_indices = @transform_0, window_bounds = array<i64: 1, 32, 128>}, {transform_indices = @transform_1, window_bounds = array<i64: 1, 32, 128>}, {pipeline_mode = #tpu.pipeline_mode<synchronous>, transform_indices = @transform_2, window_bounds = array<i64: 32, 32, 128>}, {pipeline_mode = #tpu.pipeline_mode<synchronous>, transform_indices = @transform_3, window_bounds = array<i64: 32, 32, 128>}, {transform_indices = @transform_4, window_bounds = array<i64: 1, 32, 128>}, {transform_indices = @transform_5, window_bounds = array<i64: 1, 32, 128>}]} {
    %cst = arith.constant 0.000000e+00 : f32
    %0 = vector.broadcast %cst : f32 to vector<32x128xf32>
    %cst_0 = arith.constant 0.000000e+00 : f32
    %1 = vector.broadcast %cst_0 : f32 to vector<32x128xf32>
    %c0 = arith.constant 0 : index
    %c0_1 = arith.constant 0 : index
    %c0_2 = arith.constant 0 : index
    %2 = vector.load %arg1[%c0, %c0_1, %c0_2] : memref<1x32x128xf32, #tpu.memory_space<vmem>>, vector<1x1x128xf32>
    %3 = vector.shape_cast %2 : vector<1x1x128xf32> to vector<1x128xf32>
    %c0_3 = arith.constant 0 : index
    %c0_4 = arith.constant 0 : index
    %c0_5 = arith.constant 0 : index
    %4 = vector.load %arg2[%c0_3, %c0_4, %c0_5] : memref<1x32x128xf32, #tpu.memory_space<vmem>>, vector<1x1x128xf32>
    %5 = vector.shape_cast %4 : vector<1x1x128xf32> to vector<1x128xf32>
    %c0_6 = arith.constant 0 : index
    %c0_7 = arith.constant 0 : index
    %c0_8 = arith.constant 0 : index
    %6 = vector.load %arg3[%c0_6, %c0_7, %c0_8] : memref<32x32x128xf32, #tpu.memory_space<vmem>>, vector<1x32x128xf32>
    %7 = vector.shape_cast %6 : vector<1x32x128xf32> to vector<32x128xf32>
    %c0_9 = arith.constant 0 : index
    %c0_10 = arith.constant 0 : index
    %c0_11 = arith.constant 0 : index
    %8 = vector.load %arg4[%c0_9, %c0_10, %c0_11] : memref<32x32x128xf32, #tpu.memory_space<vmem>>, vector<1x32x128xf32>
    %9 = vector.shape_cast %8 : vector<1x32x128xf32> to vector<32x128xf32>
    %10 = vector.broadcast %3 : vector<1x128xf32> to vector<32x128xf32>
    %11 = arith.mulf %10, %7 : vector<32x128xf32>
    %12 = vector.broadcast %5 : vector<1x128xf32> to vector<32x128xf32>
    %13 = arith.mulf %12, %9 : vector<32x128xf32>
    %14 = arith.subf %11, %13 : vector<32x128xf32>
    %15 = arith.addf %0, %14 : vector<32x128xf32>
    %16 = vector.broadcast %3 : vector<1x128xf32> to vector<32x128xf32>
    %17 = arith.mulf %16, %9 : vector<32x128xf32>
    %18 = vector.broadcast %5 : vector<1x128xf32> to vector<32x128xf32>
    %19 = arith.mulf %18, %7 : vector<32x128xf32>
    %20 = arith.addf %17, %19 : vector<32x128xf32>
    %21 = arith.addf %1, %20 : vector<32x128xf32>
    %c0_12 = arith.constant 0 : index
    %c1 = arith.constant 1 : index
    %c0_13 = arith.constant 0 : index
    %22 = vector.load %arg1[%c0_12, %c1, %c0_13] : memref<1x32x128xf32, #tpu.memory_space<vmem>>, vector<1x1x128xf32>
    %23 = vector.shape_cast %22 : vector<1x1x128xf32> to vector<1x128xf32>
    %c0_14 = arith.constant 0 : index
    %c1_15 = arith.constant 1 : index
    %c0_16 = arith.constant 0 : index
    %24 = vector.load %arg2[%c0_14, %c1_15, %c0_16] : memref<1x32x128xf32, #tpu.memory_space<vmem>>, vector<1x1x128xf32>
    %25 = vector.shape_cast %24 : vector<1x1x128xf32> to vector<1x128xf32>
    %c1_17 = arith.constant 1 : index
    %c0_18 = arith.constant 0 : index
    %c0_19 = arith.constant 0 : index
    %26 = vector.load %arg3[%c1_17, %c0_18, %c0_19] : memref<32x32x128xf32, #tpu.memory_space<vmem>>, vector<1x32x128xf32>
    %27 = vector.shape_cast %26 : vector<1x32x128xf32> to vector<32x128xf32>
    %c1_20 = arith.constant 1 : index
    %c0_21 = arith.constant 0 : index
    %c0_22 = arith.constant 0 : index
    %28 = vector.load %arg4[%c1_20, %c0_21, %c0_22] : memref<32x32x128xf32, #tpu.memory_space<vmem>>, vector<1x32x128xf32>
    %29 = vector.shape_cast %28 : vector<1x32x128xf32> to vector<32x128xf32>
    %30 = vector.broadcast %23 : vector<1x128xf32> to vector<32x128xf32>
    %31 = arith.mulf %30, %27 : vector<32x128xf32>
    %32 = vector.broadcast %25 : vector<1x128xf32> to vector<32x128xf32>
    %33 = arith.mulf %32, %29 : vector<32x128xf32>
    %34 = arith.subf %31, %33 : vector<32x128xf32>
    %35 = arith.addf %15, %34 : vector<32x128xf32>
    %36 = vector.broadcast %23 : vector<1x128xf32> to vector<32x128xf32>
    %37 = arith.mulf %36, %29 : vector<32x128xf32>
    %38 = vector.broadcast %25 : vector<1x128xf32> to vector<32x128xf32>
    %39 = arith.mulf %38, %27 : vector<32x128xf32>
    %40 = arith.addf %37, %39 : vector<32x128xf32>
    %41 = arith.addf %21, %40 : vector<32x128xf32>
    %c0_23 = arith.constant 0 : index
    %c2 = arith.constant 2 : index
    %c0_24 = arith.constant 0 : index
    %42 = vector.load %arg1[%c0_23, %c2, %c0_24] : memref<1x32x128xf32, #tpu.memory_space<vmem>>, vector<1x1x128xf32>
    %43 = vector.shape_cast %42 : vector<1x1x128xf32> to vector<1x128xf32>
    %c0_25 = arith.constant 0 : index
    %c2_26 = arith.constant 2 : index
    %c0_27 = arith.constant 0 : index
    %44 = vector.load %arg2[%c0_25, %c2_26, %c0_27] : memref<1x32x128xf32, #tpu.memory_space<vmem>>, vector<1x1x128xf32>
    %45 = vector.shape_cast %44 : vector<1x1x128xf32> to vector<1x128xf32>
    %c2_28 = arith.constant 2 : index
    %c0_29 = arith.constant 0 : index
    %c0_30 = arith.constant 0 : index
    %46 = vector.load %arg3[%c2_28, %c0_29, %c0_30] : memref<32x32x128xf32, #tpu.memory_space<vmem>>, vector<1x32x128xf32>
    %47 = vector.shape_cast %46 : vector<1x32x128xf32> to vector<32x128xf32>
    %c2_31 = arith.constant 2 : index
    %c0_32 = arith.constant 0 : index
    %c0_33 = arith.constant 0 : index
    %48 = vector.load %arg4[%c2_31, %c0_32, %c0_33] : memref<32x32x128xf32, #tpu.memory_space<vmem>>, vector<1x32x128xf32>
    %49 = vector.shape_cast %48 : vector<1x32x128xf32> to vector<32x128xf32>
    %50 = vector.broadcast %43 : vector<1x128xf32> to vector<32x128xf32>
    %51 = arith.mulf %50, %47 : vector<32x128xf32>
    %52 = vector.broadcast %45 : vector<1x128xf32> to vector<32x128xf32>
    %53 = arith.mulf %52, %49 : vector<32x128xf32>
    %54 = arith.subf %51, %53 : vector<32x128xf32>
    %55 = arith.addf %35, %54 : vector<32x128xf32>
    %56 = vector.broadcast %43 : vector<1x128xf32> to vector<32x128xf32>
    %57 = arith.mulf %56, %49 : vector<32x128xf32>
    %58 = vector.broadcast %45 : vector<1x128xf32> to vector<32x128xf32>
    %59 = arith.mulf %58, %47 : vector<32x128xf32>
    %60 = arith.addf %57, %59 : vector<32x128xf32>
    %61 = arith.addf %41, %60 : vector<32x128xf32>
    %c0_34 = arith.constant 0 : index
    %c3 = arith.constant 3 : index
    %c0_35 = arith.constant 0 : index
    %62 = vector.load %arg1[%c0_34, %c3, %c0_35] : memref<1x32x128xf32, #tpu.memory_space<vmem>>, vector<1x1x128xf32>
    %63 = vector.shape_cast %62 : vector<1x1x128xf32> to vector<1x128xf32>
    %c0_36 = arith.constant 0 : index
    %c3_37 = arith.constant 3 : index
    %c0_38 = arith.constant 0 : index
    %64 = vector.load %arg2[%c0_36, %c3_37, %c0_38] : memref<1x32x128xf32, #tpu.memory_space<vmem>>, vector<1x1x128xf32>
    %65 = vector.shape_cast %64 : vector<1x1x128xf32> to vector<1x128xf32>
    %c3_39 = arith.constant 3 : index
    %c0_40 = arith.constant 0 : index
    %c0_41 = arith.constant 0 : index
    %66 = vector.load %arg3[%c3_39, %c0_40, %c0_41] : memref<32x32x128xf32, #tpu.memory_space<vmem>>, vector<1x32x128xf32>
    %67 = vector.shape_cast %66 : vector<1x32x128xf32> to vector<32x128xf32>
    %c3_42 = arith.constant 3 : index
    %c0_43 = arith.constant 0 : index
    %c0_44 = arith.constant 0 : index
    %68 = vector.load %arg4[%c3_42, %c0_43, %c0_44] : memref<32x32x128xf32, #tpu.memory_space<vmem>>, vector<1x32x128xf32>
    %69 = vector.shape_cast %68 : vector<1x32x128xf32> to vector<32x128xf32>
    %70 = vector.broadcast %63 : vector<1x128xf32> to vector<32x128xf32>
    %71 = arith.mulf %70, %67 : vector<32x128xf32>
    %72 = vector.broadcast %65 : vector<1x128xf32> to vector<32x128xf32>
    %73 = arith.mulf %72, %69 : vector<32x128xf32>
    %74 = arith.subf %71, %73 : vector<32x128xf32>
    %75 = arith.addf %55, %74 : vector<32x128xf32>
    %76 = vector.broadcast %63 : vector<1x128xf32> to vector<32x128xf32>
    %77 = arith.mulf %76, %69 : vector<32x128xf32>
    %78 = vector.broadcast %65 : vector<1x128xf32> to vector<32x128xf32>
    %79 = arith.mulf %78, %67 : vector<32x128xf32>
    %80 = arith.addf %77, %79 : vector<32x128xf32>
    %81 = arith.addf %61, %80 : vector<32x128xf32>
    %c0_45 = arith.constant 0 : index
    %c4 = arith.constant 4 : index
    %c0_46 = arith.constant 0 : index
    %82 = vector.load %arg1[%c0_45, %c4, %c0_46] : memref<1x32x128xf32, #tpu.memory_space<vmem>>, vector<1x1x128xf32>
    %83 = vector.shape_cast %82 : vector<1x1x128xf32> to vector<1x128xf32>
    %c0_47 = arith.constant 0 : index
    %c4_48 = arith.constant 4 : index
    %c0_49 = arith.constant 0 : index
    %84 = vector.load %arg2[%c0_47, %c4_48, %c0_49] : memref<1x32x128xf32, #tpu.memory_space<vmem>>, vector<1x1x128xf32>
    %85 = vector.shape_cast %84 : vector<1x1x128xf32> to vector<1x128xf32>
    %c4_50 = arith.constant 4 : index
    %c0_51 = arith.constant 0 : index
    %c0_52 = arith.constant 0 : index
    %86 = vector.load %arg3[%c4_50, %c0_51, %c0_52] : memref<32x32x128xf32, #tpu.memory_space<vmem>>, vector<1x32x128xf32>
    %87 = vector.shape_cast %86 : vector<1x32x128xf32> to vector<32x128xf32>
    %c4_53 = arith.constant 4 : index
    %c0_54 = arith.constant 0 : index
    %c0_55 = arith.constant 0 : index
    %88 = vector.load %arg4[%c4_53, %c0_54, %c0_55] : memref<32x32x128xf32, #tpu.memory_space<vmem>>, vector<1x32x128xf32>
    %89 = vector.shape_cast %88 : vector<1x32x128xf32> to vector<32x128xf32>
    %90 = vector.broadcast %83 : vector<1x128xf32> to vector<32x128xf32>
    %91 = arith.mulf %90, %87 : vector<32x128xf32>
    %92 = vector.broadcast %85 : vector<1x128xf32> to vector<32x128xf32>
    %93 = arith.mulf %92, %89 : vector<32x128xf32>
    %94 = arith.subf %91, %93 : vector<32x128xf32>
    %95 = arith.addf %75, %94 : vector<32x128xf32>
    %96 = vector.broadcast %83 : vector<1x128xf32> to vector<32x128xf32>
    %97 = arith.mulf %96, %89 : vector<32x128xf32>
    %98 = vector.broadcast %85 : vector<1x128xf32> to vector<32x128xf32>
    %99 = arith.mulf %98, %87 : vector<32x128xf32>
    %100 = arith.addf %97, %99 : vector<32x128xf32>
    %101 = arith.addf %81, %100 : vector<32x128xf32>
    %c0_56 = arith.constant 0 : index
    %c5 = arith.constant 5 : index
    %c0_57 = arith.constant 0 : index
    %102 = vector.load %arg1[%c0_56, %c5, %c0_57] : memref<1x32x128xf32, #tpu.memory_space<vmem>>, vector<1x1x128xf32>
    %103 = vector.shape_cast %102 : vector<1x1x128xf32> to vector<1x128xf32>
    %c0_58 = arith.constant 0 : index
    %c5_59 = arith.constant 5 : index
    %c0_60 = arith.constant 0 : index
    %104 = vector.load %arg2[%c0_58, %c5_59, %c0_60] : memref<1x32x128xf32, #tpu.memory_space<vmem>>, vector<1x1x128xf32>
    %105 = vector.shape_cast %104 : vector<1x1x128xf32> to vector<1x128xf32>
    %c5_61 = arith.constant 5 : index
    %c0_62 = arith.constant 0 : index
    %c0_63 = arith.constant 0 : index
    %106 = vector.load %arg3[%c5_61, %c0_62, %c0_63] : memref<32x32x128xf32, #tpu.memory_space<vmem>>, vector<1x32x128xf32>
    %107 = vector.shape_cast %106 : vector<1x32x128xf32> to vector<32x128xf32>
    %c5_64 = arith.constant 5 : index
    %c0_65 = arith.constant 0 : index
    %c0_66 = arith.constant 0 : index
    %108 = vector.load %arg4[%c5_64, %c0_65, %c0_66] : memref<32x32x128xf32, #tpu.memory_space<vmem>>, vector<1x32x128xf32>
    %109 = vector.shape_cast %108 : vector<1x32x128xf32> to vector<32x128xf32>
    %110 = vector.broadcast %103 : vector<1x128xf32> to vector<32x128xf32>
    %111 = arith.mulf %110, %107 : vector<32x128xf32>
    %112 = vector.broadcast %105 : vector<1x128xf32> to vector<32x128xf32>
    %113 = arith.mulf %112, %109 : vector<32x128xf32>
    %114 = arith.subf %111, %113 : vector<32x128xf32>
    %115 = arith.addf %95, %114 : vector<32x128xf32>
    %116 = vector.broadcast %103 : vector<1x128xf32> to vector<32x128xf32>
    %117 = arith.mulf %116, %109 : vector<32x128xf32>
    %118 = vector.broadcast %105 : vector<1x128xf32> to vector<32x128xf32>
    %119 = arith.mulf %118, %107 : vector<32x128xf32>
    %120 = arith.addf %117, %119 : vector<32x128xf32>
    %121 = arith.addf %101, %120 : vector<32x128xf32>
    %c0_67 = arith.constant 0 : index
    %c6 = arith.constant 6 : index
    %c0_68 = arith.constant 0 : index
    %122 = vector.load %arg1[%c0_67, %c6, %c0_68] : memref<1x32x128xf32, #tpu.memory_space<vmem>>, vector<1x1x128xf32>
    %123 = vector.shape_cast %122 : vector<1x1x128xf32> to vector<1x128xf32>
    %c0_69 = arith.constant 0 : index
    %c6_70 = arith.constant 6 : index
    %c0_71 = arith.constant 0 : index
    %124 = vector.load %arg2[%c0_69, %c6_70, %c0_71] : memref<1x32x128xf32, #tpu.memory_space<vmem>>, vector<1x1x128xf32>
    %125 = vector.shape_cast %124 : vector<1x1x128xf32> to vector<1x128xf32>
    %c6_72 = arith.constant 6 : index
    %c0_73 = arith.constant 0 : index
    %c0_74 = arith.constant 0 : index
    %126 = vector.load %arg3[%c6_72, %c0_73, %c0_74] : memref<32x32x128xf32, #tpu.memory_space<vmem>>, vector<1x32x128xf32>
    %127 = vector.shape_cast %126 : vector<1x32x128xf32> to vector<32x128xf32>
    %c6_75 = arith.constant 6 : index
    %c0_76 = arith.constant 0 : index
    %c0_77 = arith.constant 0 : index
    %128 = vector.load %arg4[%c6_75, %c0_76, %c0_77] : memref<32x32x128xf32, #tpu.memory_space<vmem>>, vector<1x32x128xf32>
    %129 = vector.shape_cast %128 : vector<1x32x128xf32> to vector<32x128xf32>
    %130 = vector.broadcast %123 : vector<1x128xf32> to vector<32x128xf32>
    %131 = arith.mulf %130, %127 : vector<32x128xf32>
    %132 = vector.broadcast %125 : vector<1x128xf32> to vector<32x128xf32>
    %133 = arith.mulf %132, %129 : vector<32x128xf32>
    %134 = arith.subf %131, %133 : vector<32x128xf32>
    %135 = arith.addf %115, %134 : vector<32x128xf32>
    %136 = vector.broadcast %123 : vector<1x128xf32> to vector<32x128xf32>
    %137 = arith.mulf %136, %129 : vector<32x128xf32>
    %138 = vector.broadcast %125 : vector<1x128xf32> to vector<32x128xf32>
    %139 = arith.mulf %138, %127 : vector<32x128xf32>
    %140 = arith.addf %137, %139 : vector<32x128xf32>
    %141 = arith.addf %121, %140 : vector<32x128xf32>
    %c0_78 = arith.constant 0 : index
    %c7 = arith.constant 7 : index
    %c0_79 = arith.constant 0 : index
    %142 = vector.load %arg1[%c0_78, %c7, %c0_79] : memref<1x32x128xf32, #tpu.memory_space<vmem>>, vector<1x1x128xf32>
    %143 = vector.shape_cast %142 : vector<1x1x128xf32> to vector<1x128xf32>
    %c0_80 = arith.constant 0 : index
    %c7_81 = arith.constant 7 : index
    %c0_82 = arith.constant 0 : index
    %144 = vector.load %arg2[%c0_80, %c7_81, %c0_82] : memref<1x32x128xf32, #tpu.memory_space<vmem>>, vector<1x1x128xf32>
    %145 = vector.shape_cast %144 : vector<1x1x128xf32> to vector<1x128xf32>
    %c7_83 = arith.constant 7 : index
    %c0_84 = arith.constant 0 : index
    %c0_85 = arith.constant 0 : index
    %146 = vector.load %arg3[%c7_83, %c0_84, %c0_85] : memref<32x32x128xf32, #tpu.memory_space<vmem>>, vector<1x32x128xf32>
    %147 = vector.shape_cast %146 : vector<1x32x128xf32> to vector<32x128xf32>
    %c7_86 = arith.constant 7 : index
    %c0_87 = arith.constant 0 : index
    %c0_88 = arith.constant 0 : index
    %148 = vector.load %arg4[%c7_86, %c0_87, %c0_88] : memref<32x32x128xf32, #tpu.memory_space<vmem>>, vector<1x32x128xf32>
    %149 = vector.shape_cast %148 : vector<1x32x128xf32> to vector<32x128xf32>
    %150 = vector.broadcast %143 : vector<1x128xf32> to vector<32x128xf32>
    %151 = arith.mulf %150, %147 : vector<32x128xf32>
    %152 = vector.broadcast %145 : vector<1x128xf32> to vector<32x128xf32>
    %153 = arith.mulf %152, %149 : vector<32x128xf32>
    %154 = arith.subf %151, %153 : vector<32x128xf32>
    %155 = arith.addf %135, %154 : vector<32x128xf32>
    %156 = vector.broadcast %143 : vector<1x128xf32> to vector<32x128xf32>
    %157 = arith.mulf %156, %149 : vector<32x128xf32>
    %158 = vector.broadcast %145 : vector<1x128xf32> to vector<32x128xf32>
    %159 = arith.mulf %158, %147 : vector<32x128xf32>
    %160 = arith.addf %157, %159 : vector<32x128xf32>
    %161 = arith.addf %141, %160 : vector<32x128xf32>
    %c0_89 = arith.constant 0 : index
    %c8 = arith.constant 8 : index
    %c0_90 = arith.constant 0 : index
    %162 = vector.load %arg1[%c0_89, %c8, %c0_90] : memref<1x32x128xf32, #tpu.memory_space<vmem>>, vector<1x1x128xf32>
    %163 = vector.shape_cast %162 : vector<1x1x128xf32> to vector<1x128xf32>
    %c0_91 = arith.constant 0 : index
    %c8_92 = arith.constant 8 : index
    %c0_93 = arith.constant 0 : index
    %164 = vector.load %arg2[%c0_91, %c8_92, %c0_93] : memref<1x32x128xf32, #tpu.memory_space<vmem>>, vector<1x1x128xf32>
    %165 = vector.shape_cast %164 : vector<1x1x128xf32> to vector<1x128xf32>
    %c8_94 = arith.constant 8 : index
    %c0_95 = arith.constant 0 : index
    %c0_96 = arith.constant 0 : index
    %166 = vector.load %arg3[%c8_94, %c0_95, %c0_96] : memref<32x32x128xf32, #tpu.memory_space<vmem>>, vector<1x32x128xf32>
    %167 = vector.shape_cast %166 : vector<1x32x128xf32> to vector<32x128xf32>
    %c8_97 = arith.constant 8 : index
    %c0_98 = arith.constant 0 : index
    %c0_99 = arith.constant 0 : index
    %168 = vector.load %arg4[%c8_97, %c0_98, %c0_99] : memref<32x32x128xf32, #tpu.memory_space<vmem>>, vector<1x32x128xf32>
    %169 = vector.shape_cast %168 : vector<1x32x128xf32> to vector<32x128xf32>
    %170 = vector.broadcast %163 : vector<1x128xf32> to vector<32x128xf32>
    %171 = arith.mulf %170, %167 : vector<32x128xf32>
    %172 = vector.broadcast %165 : vector<1x128xf32> to vector<32x128xf32>
    %173 = arith.mulf %172, %169 : vector<32x128xf32>
    %174 = arith.subf %171, %173 : vector<32x128xf32>
    %175 = arith.addf %155, %174 : vector<32x128xf32>
    %176 = vector.broadcast %163 : vector<1x128xf32> to vector<32x128xf32>
    %177 = arith.mulf %176, %169 : vector<32x128xf32>
    %178 = vector.broadcast %165 : vector<1x128xf32> to vector<32x128xf32>
    %179 = arith.mulf %178, %167 : vector<32x128xf32>
    %180 = arith.addf %177, %179 : vector<32x128xf32>
    %181 = arith.addf %161, %180 : vector<32x128xf32>
    %c0_100 = arith.constant 0 : index
    %c9 = arith.constant 9 : index
    %c0_101 = arith.constant 0 : index
    %182 = vector.load %arg1[%c0_100, %c9, %c0_101] : memref<1x32x128xf32, #tpu.memory_space<vmem>>, vector<1x1x128xf32>
    %183 = vector.shape_cast %182 : vector<1x1x128xf32> to vector<1x128xf32>
    %c0_102 = arith.constant 0 : index
    %c9_103 = arith.constant 9 : index
    %c0_104 = arith.constant 0 : index
    %184 = vector.load %arg2[%c0_102, %c9_103, %c0_104] : memref<1x32x128xf32, #tpu.memory_space<vmem>>, vector<1x1x128xf32>
    %185 = vector.shape_cast %184 : vector<1x1x128xf32> to vector<1x128xf32>
    %c9_105 = arith.constant 9 : index
    %c0_106 = arith.constant 0 : index
    %c0_107 = arith.constant 0 : index
    %186 = vector.load %arg3[%c9_105, %c0_106, %c0_107] : memref<32x32x128xf32, #tpu.memory_space<vmem>>, vector<1x32x128xf32>
    %187 = vector.shape_cast %186 : vector<1x32x128xf32> to vector<32x128xf32>
    %c9_108 = arith.constant 9 : index
    %c0_109 = arith.constant 0 : index
    %c0_110 = arith.constant 0 : index
    %188 = vector.load %arg4[%c9_108, %c0_109, %c0_110] : memref<32x32x128xf32, #tpu.memory_space<vmem>>, vector<1x32x128xf32>
    %189 = vector.shape_cast %188 : vector<1x32x128xf32> to vector<32x128xf32>
    %190 = vector.broadcast %183 : vector<1x128xf32> to vector<32x128xf32>
    %191 = arith.mulf %190, %187 : vector<32x128xf32>
    %192 = vector.broadcast %185 : vector<1x128xf32> to vector<32x128xf32>
    %193 = arith.mulf %192, %189 : vector<32x128xf32>
    %194 = arith.subf %191, %193 : vector<32x128xf32>
    %195 = arith.addf %175, %194 : vector<32x128xf32>
    %196 = vector.broadcast %183 : vector<1x128xf32> to vector<32x128xf32>
    %197 = arith.mulf %196, %189 : vector<32x128xf32>
    %198 = vector.broadcast %185 : vector<1x128xf32> to vector<32x128xf32>
    %199 = arith.mulf %198, %187 : vector<32x128xf32>
    %200 = arith.addf %197, %199 : vector<32x128xf32>
    %201 = arith.addf %181, %200 : vector<32x128xf32>
    %c0_111 = arith.constant 0 : index
    %c10 = arith.constant 10 : index
    %c0_112 = arith.constant 0 : index
    %202 = vector.load %arg1[%c0_111, %c10, %c0_112] : memref<1x32x128xf32, #tpu.memory_space<vmem>>, vector<1x1x128xf32>
    %203 = vector.shape_cast %202 : vector<1x1x128xf32> to vector<1x128xf32>
    %c0_113 = arith.constant 0 : index
    %c10_114 = arith.constant 10 : index
    %c0_115 = arith.constant 0 : index
    %204 = vector.load %arg2[%c0_113, %c10_114, %c0_115] : memref<1x32x128xf32, #tpu.memory_space<vmem>>, vector<1x1x128xf32>
    %205 = vector.shape_cast %204 : vector<1x1x128xf32> to vector<1x128xf32>
    %c10_116 = arith.constant 10 : index
    %c0_117 = arith.constant 0 : index
    %c0_118 = arith.constant 0 : index
    %206 = vector.load %arg3[%c10_116, %c0_117, %c0_118] : memref<32x32x128xf32, #tpu.memory_space<vmem>>, vector<1x32x128xf32>
    %207 = vector.shape_cast %206 : vector<1x32x128xf32> to vector<32x128xf32>
    %c10_119 = arith.constant 10 : index
    %c0_120 = arith.constant 0 : index
    %c0_121 = arith.constant 0 : index
    %208 = vector.load %arg4[%c10_119, %c0_120, %c0_121] : memref<32x32x128xf32, #tpu.memory_space<vmem>>, vector<1x32x128xf32>
    %209 = vector.shape_cast %208 : vector<1x32x128xf32> to vector<32x128xf32>
    %210 = vector.broadcast %203 : vector<1x128xf32> to vector<32x128xf32>
    %211 = arith.mulf %210, %207 : vector<32x128xf32>
    %212 = vector.broadcast %205 : vector<1x128xf32> to vector<32x128xf32>
    %213 = arith.mulf %212, %209 : vector<32x128xf32>
    %214 = arith.subf %211, %213 : vector<32x128xf32>
    %215 = arith.addf %195, %214 : vector<32x128xf32>
    %216 = vector.broadcast %203 : vector<1x128xf32> to vector<32x128xf32>
    %217 = arith.mulf %216, %209 : vector<32x128xf32>
    %218 = vector.broadcast %205 : vector<1x128xf32> to vector<32x128xf32>
    %219 = arith.mulf %218, %207 : vector<32x128xf32>
    %220 = arith.addf %217, %219 : vector<32x128xf32>
    %221 = arith.addf %201, %220 : vector<32x128xf32>
    %c0_122 = arith.constant 0 : index
    %c11 = arith.constant 11 : index
    %c0_123 = arith.constant 0 : index
    %222 = vector.load %arg1[%c0_122, %c11, %c0_123] : memref<1x32x128xf32, #tpu.memory_space<vmem>>, vector<1x1x128xf32>
    %223 = vector.shape_cast %222 : vector<1x1x128xf32> to vector<1x128xf32>
    %c0_124 = arith.constant 0 : index
    %c11_125 = arith.constant 11 : index
    %c0_126 = arith.constant 0 : index
    %224 = vector.load %arg2[%c0_124, %c11_125, %c0_126] : memref<1x32x128xf32, #tpu.memory_space<vmem>>, vector<1x1x128xf32>
    %225 = vector.shape_cast %224 : vector<1x1x128xf32> to vector<1x128xf32>
    %c11_127 = arith.constant 11 : index
    %c0_128 = arith.constant 0 : index
    %c0_129 = arith.constant 0 : index
    %226 = vector.load %arg3[%c11_127, %c0_128, %c0_129] : memref<32x32x128xf32, #tpu.memory_space<vmem>>, vector<1x32x128xf32>
    %227 = vector.shape_cast %226 : vector<1x32x128xf32> to vector<32x128xf32>
    %c11_130 = arith.constant 11 : index
    %c0_131 = arith.constant 0 : index
    %c0_132 = arith.constant 0 : index
    %228 = vector.load %arg4[%c11_130, %c0_131, %c0_132] : memref<32x32x128xf32, #tpu.memory_space<vmem>>, vector<1x32x128xf32>
    %229 = vector.shape_cast %228 : vector<1x32x128xf32> to vector<32x128xf32>
    %230 = vector.broadcast %223 : vector<1x128xf32> to vector<32x128xf32>
    %231 = arith.mulf %230, %227 : vector<32x128xf32>
    %232 = vector.broadcast %225 : vector<1x128xf32> to vector<32x128xf32>
    %233 = arith.mulf %232, %229 : vector<32x128xf32>
    %234 = arith.subf %231, %233 : vector<32x128xf32>
    %235 = arith.addf %215, %234 : vector<32x128xf32>
    %236 = vector.broadcast %223 : vector<1x128xf32> to vector<32x128xf32>
    %237 = arith.mulf %236, %229 : vector<32x128xf32>
    %238 = vector.broadcast %225 : vector<1x128xf32> to vector<32x128xf32>
    %239 = arith.mulf %238, %227 : vector<32x128xf32>
    %240 = arith.addf %237, %239 : vector<32x128xf32>
    %241 = arith.addf %221, %240 : vector<32x128xf32>
    %c0_133 = arith.constant 0 : index
    %c12 = arith.constant 12 : index
    %c0_134 = arith.constant 0 : index
    %242 = vector.load %arg1[%c0_133, %c12, %c0_134] : memref<1x32x128xf32, #tpu.memory_space<vmem>>, vector<1x1x128xf32>
    %243 = vector.shape_cast %242 : vector<1x1x128xf32> to vector<1x128xf32>
    %c0_135 = arith.constant 0 : index
    %c12_136 = arith.constant 12 : index
    %c0_137 = arith.constant 0 : index
    %244 = vector.load %arg2[%c0_135, %c12_136, %c0_137] : memref<1x32x128xf32, #tpu.memory_space<vmem>>, vector<1x1x128xf32>
    %245 = vector.shape_cast %244 : vector<1x1x128xf32> to vector<1x128xf32>
    %c12_138 = arith.constant 12 : index
    %c0_139 = arith.constant 0 : index
    %c0_140 = arith.constant 0 : index
    %246 = vector.load %arg3[%c12_138, %c0_139, %c0_140] : memref<32x32x128xf32, #tpu.memory_space<vmem>>, vector<1x32x128xf32>
    %247 = vector.shape_cast %246 : vector<1x32x128xf32> to vector<32x128xf32>
    %c12_141 = arith.constant 12 : index
    %c0_142 = arith.constant 0 : index
    %c0_143 = arith.constant 0 : index
    %248 = vector.load %arg4[%c12_141, %c0_142, %c0_143] : memref<32x32x128xf32, #tpu.memory_space<vmem>>, vector<1x32x128xf32>
    %249 = vector.shape_cast %248 : vector<1x32x128xf32> to vector<32x128xf32>
    %250 = vector.broadcast %243 : vector<1x128xf32> to vector<32x128xf32>
    %251 = arith.mulf %250, %247 : vector<32x128xf32>
    %252 = vector.broadcast %245 : vector<1x128xf32> to vector<32x128xf32>
    %253 = arith.mulf %252, %249 : vector<32x128xf32>
    %254 = arith.subf %251, %253 : vector<32x128xf32>
    %255 = arith.addf %235, %254 : vector<32x128xf32>
    %256 = vector.broadcast %243 : vector<1x128xf32> to vector<32x128xf32>
    %257 = arith.mulf %256, %249 : vector<32x128xf32>
    %258 = vector.broadcast %245 : vector<1x128xf32> to vector<32x128xf32>
    %259 = arith.mulf %258, %247 : vector<32x128xf32>
    %260 = arith.addf %257, %259 : vector<32x128xf32>
    %261 = arith.addf %241, %260 : vector<32x128xf32>
    %c0_144 = arith.constant 0 : index
    %c13 = arith.constant 13 : index
    %c0_145 = arith.constant 0 : index
    %262 = vector.load %arg1[%c0_144, %c13, %c0_145] : memref<1x32x128xf32, #tpu.memory_space<vmem>>, vector<1x1x128xf32>
    %263 = vector.shape_cast %262 : vector<1x1x128xf32> to vector<1x128xf32>
    %c0_146 = arith.constant 0 : index
    %c13_147 = arith.constant 13 : index
    %c0_148 = arith.constant 0 : index
    %264 = vector.load %arg2[%c0_146, %c13_147, %c0_148] : memref<1x32x128xf32, #tpu.memory_space<vmem>>, vector<1x1x128xf32>
    %265 = vector.shape_cast %264 : vector<1x1x128xf32> to vector<1x128xf32>
    %c13_149 = arith.constant 13 : index
    %c0_150 = arith.constant 0 : index
    %c0_151 = arith.constant 0 : index
    %266 = vector.load %arg3[%c13_149, %c0_150, %c0_151] : memref<32x32x128xf32, #tpu.memory_space<vmem>>, vector<1x32x128xf32>
    %267 = vector.shape_cast %266 : vector<1x32x128xf32> to vector<32x128xf32>
    %c13_152 = arith.constant 13 : index
    %c0_153 = arith.constant 0 : index
    %c0_154 = arith.constant 0 : index
    %268 = vector.load %arg4[%c13_152, %c0_153, %c0_154] : memref<32x32x128xf32, #tpu.memory_space<vmem>>, vector<1x32x128xf32>
    %269 = vector.shape_cast %268 : vector<1x32x128xf32> to vector<32x128xf32>
    %270 = vector.broadcast %263 : vector<1x128xf32> to vector<32x128xf32>
    %271 = arith.mulf %270, %267 : vector<32x128xf32>
    %272 = vector.broadcast %265 : vector<1x128xf32> to vector<32x128xf32>
    %273 = arith.mulf %272, %269 : vector<32x128xf32>
    %274 = arith.subf %271, %273 : vector<32x128xf32>
    %275 = arith.addf %255, %274 : vector<32x128xf32>
    %276 = vector.broadcast %263 : vector<1x128xf32> to vector<32x128xf32>
    %277 = arith.mulf %276, %269 : vector<32x128xf32>
    %278 = vector.broadcast %265 : vector<1x128xf32> to vector<32x128xf32>
    %279 = arith.mulf %278, %267 : vector<32x128xf32>
    %280 = arith.addf %277, %279 : vector<32x128xf32>
    %281 = arith.addf %261, %280 : vector<32x128xf32>
    %c0_155 = arith.constant 0 : index
    %c14 = arith.constant 14 : index
    %c0_156 = arith.constant 0 : index
    %282 = vector.load %arg1[%c0_155, %c14, %c0_156] : memref<1x32x128xf32, #tpu.memory_space<vmem>>, vector<1x1x128xf32>
    %283 = vector.shape_cast %282 : vector<1x1x128xf32> to vector<1x128xf32>
    %c0_157 = arith.constant 0 : index
    %c14_158 = arith.constant 14 : index
    %c0_159 = arith.constant 0 : index
    %284 = vector.load %arg2[%c0_157, %c14_158, %c0_159] : memref<1x32x128xf32, #tpu.memory_space<vmem>>, vector<1x1x128xf32>
    %285 = vector.shape_cast %284 : vector<1x1x128xf32> to vector<1x128xf32>
    %c14_160 = arith.constant 14 : index
    %c0_161 = arith.constant 0 : index
    %c0_162 = arith.constant 0 : index
    %286 = vector.load %arg3[%c14_160, %c0_161, %c0_162] : memref<32x32x128xf32, #tpu.memory_space<vmem>>, vector<1x32x128xf32>
    %287 = vector.shape_cast %286 : vector<1x32x128xf32> to vector<32x128xf32>
    %c14_163 = arith.constant 14 : index
    %c0_164 = arith.constant 0 : index
    %c0_165 = arith.constant 0 : index
    %288 = vector.load %arg4[%c14_163, %c0_164, %c0_165] : memref<32x32x128xf32, #tpu.memory_space<vmem>>, vector<1x32x128xf32>
    %289 = vector.shape_cast %288 : vector<1x32x128xf32> to vector<32x128xf32>
    %290 = vector.broadcast %283 : vector<1x128xf32> to vector<32x128xf32>
    %291 = arith.mulf %290, %287 : vector<32x128xf32>
    %292 = vector.broadcast %285 : vector<1x128xf32> to vector<32x128xf32>
    %293 = arith.mulf %292, %289 : vector<32x128xf32>
    %294 = arith.subf %291, %293 : vector<32x128xf32>
    %295 = arith.addf %275, %294 : vector<32x128xf32>
    %296 = vector.broadcast %283 : vector<1x128xf32> to vector<32x128xf32>
    %297 = arith.mulf %296, %289 : vector<32x128xf32>
    %298 = vector.broadcast %285 : vector<1x128xf32> to vector<32x128xf32>
    %299 = arith.mulf %298, %287 : vector<32x128xf32>
    %300 = arith.addf %297, %299 : vector<32x128xf32>
    %301 = arith.addf %281, %300 : vector<32x128xf32>
    %c0_166 = arith.constant 0 : index
    %c15 = arith.constant 15 : index
    %c0_167 = arith.constant 0 : index
    %302 = vector.load %arg1[%c0_166, %c15, %c0_167] : memref<1x32x128xf32, #tpu.memory_space<vmem>>, vector<1x1x128xf32>
    %303 = vector.shape_cast %302 : vector<1x1x128xf32> to vector<1x128xf32>
    %c0_168 = arith.constant 0 : index
    %c15_169 = arith.constant 15 : index
    %c0_170 = arith.constant 0 : index
    %304 = vector.load %arg2[%c0_168, %c15_169, %c0_170] : memref<1x32x128xf32, #tpu.memory_space<vmem>>, vector<1x1x128xf32>
    %305 = vector.shape_cast %304 : vector<1x1x128xf32> to vector<1x128xf32>
    %c15_171 = arith.constant 15 : index
    %c0_172 = arith.constant 0 : index
    %c0_173 = arith.constant 0 : index
    %306 = vector.load %arg3[%c15_171, %c0_172, %c0_173] : memref<32x32x128xf32, #tpu.memory_space<vmem>>, vector<1x32x128xf32>
    %307 = vector.shape_cast %306 : vector<1x32x128xf32> to vector<32x128xf32>
    %c15_174 = arith.constant 15 : index
    %c0_175 = arith.constant 0 : index
    %c0_176 = arith.constant 0 : index
    %308 = vector.load %arg4[%c15_174, %c0_175, %c0_176] : memref<32x32x128xf32, #tpu.memory_space<vmem>>, vector<1x32x128xf32>
    %309 = vector.shape_cast %308 : vector<1x32x128xf32> to vector<32x128xf32>
    %310 = vector.broadcast %303 : vector<1x128xf32> to vector<32x128xf32>
    %311 = arith.mulf %310, %307 : vector<32x128xf32>
    %312 = vector.broadcast %305 : vector<1x128xf32> to vector<32x128xf32>
    %313 = arith.mulf %312, %309 : vector<32x128xf32>
    %314 = arith.subf %311, %313 : vector<32x128xf32>
    %315 = arith.addf %295, %314 : vector<32x128xf32>
    %316 = vector.broadcast %303 : vector<1x128xf32> to vector<32x128xf32>
    %317 = arith.mulf %316, %309 : vector<32x128xf32>
    %318 = vector.broadcast %305 : vector<1x128xf32> to vector<32x128xf32>
    %319 = arith.mulf %318, %307 : vector<32x128xf32>
    %320 = arith.addf %317, %319 : vector<32x128xf32>
    %321 = arith.addf %301, %320 : vector<32x128xf32>
    %c0_177 = arith.constant 0 : index
    %c16 = arith.constant 16 : index
    %c0_178 = arith.constant 0 : index
    %322 = vector.load %arg1[%c0_177, %c16, %c0_178] : memref<1x32x128xf32, #tpu.memory_space<vmem>>, vector<1x1x128xf32>
    %323 = vector.shape_cast %322 : vector<1x1x128xf32> to vector<1x128xf32>
    %c0_179 = arith.constant 0 : index
    %c16_180 = arith.constant 16 : index
    %c0_181 = arith.constant 0 : index
    %324 = vector.load %arg2[%c0_179, %c16_180, %c0_181] : memref<1x32x128xf32, #tpu.memory_space<vmem>>, vector<1x1x128xf32>
    %325 = vector.shape_cast %324 : vector<1x1x128xf32> to vector<1x128xf32>
    %c16_182 = arith.constant 16 : index
    %c0_183 = arith.constant 0 : index
    %c0_184 = arith.constant 0 : index
    %326 = vector.load %arg3[%c16_182, %c0_183, %c0_184] : memref<32x32x128xf32, #tpu.memory_space<vmem>>, vector<1x32x128xf32>
    %327 = vector.shape_cast %326 : vector<1x32x128xf32> to vector<32x128xf32>
    %c16_185 = arith.constant 16 : index
    %c0_186 = arith.constant 0 : index
    %c0_187 = arith.constant 0 : index
    %328 = vector.load %arg4[%c16_185, %c0_186, %c0_187] : memref<32x32x128xf32, #tpu.memory_space<vmem>>, vector<1x32x128xf32>
    %329 = vector.shape_cast %328 : vector<1x32x128xf32> to vector<32x128xf32>
    %330 = vector.broadcast %323 : vector<1x128xf32> to vector<32x128xf32>
    %331 = arith.mulf %330, %327 : vector<32x128xf32>
    %332 = vector.broadcast %325 : vector<1x128xf32> to vector<32x128xf32>
    %333 = arith.mulf %332, %329 : vector<32x128xf32>
    %334 = arith.subf %331, %333 : vector<32x128xf32>
    %335 = arith.addf %315, %334 : vector<32x128xf32>
    %336 = vector.broadcast %323 : vector<1x128xf32> to vector<32x128xf32>
    %337 = arith.mulf %336, %329 : vector<32x128xf32>
    %338 = vector.broadcast %325 : vector<1x128xf32> to vector<32x128xf32>
    %339 = arith.mulf %338, %327 : vector<32x128xf32>
    %340 = arith.addf %337, %339 : vector<32x128xf32>
    %341 = arith.addf %321, %340 : vector<32x128xf32>
    %c0_188 = arith.constant 0 : index
    %c17 = arith.constant 17 : index
    %c0_189 = arith.constant 0 : index
    %342 = vector.load %arg1[%c0_188, %c17, %c0_189] : memref<1x32x128xf32, #tpu.memory_space<vmem>>, vector<1x1x128xf32>
    %343 = vector.shape_cast %342 : vector<1x1x128xf32> to vector<1x128xf32>
    %c0_190 = arith.constant 0 : index
    %c17_191 = arith.constant 17 : index
    %c0_192 = arith.constant 0 : index
    %344 = vector.load %arg2[%c0_190, %c17_191, %c0_192] : memref<1x32x128xf32, #tpu.memory_space<vmem>>, vector<1x1x128xf32>
    %345 = vector.shape_cast %344 : vector<1x1x128xf32> to vector<1x128xf32>
    %c17_193 = arith.constant 17 : index
    %c0_194 = arith.constant 0 : index
    %c0_195 = arith.constant 0 : index
    %346 = vector.load %arg3[%c17_193, %c0_194, %c0_195] : memref<32x32x128xf32, #tpu.memory_space<vmem>>, vector<1x32x128xf32>
    %347 = vector.shape_cast %346 : vector<1x32x128xf32> to vector<32x128xf32>
    %c17_196 = arith.constant 17 : index
    %c0_197 = arith.constant 0 : index
    %c0_198 = arith.constant 0 : index
    %348 = vector.load %arg4[%c17_196, %c0_197, %c0_198] : memref<32x32x128xf32, #tpu.memory_space<vmem>>, vector<1x32x128xf32>
    %349 = vector.shape_cast %348 : vector<1x32x128xf32> to vector<32x128xf32>
    %350 = vector.broadcast %343 : vector<1x128xf32> to vector<32x128xf32>
    %351 = arith.mulf %350, %347 : vector<32x128xf32>
    %352 = vector.broadcast %345 : vector<1x128xf32> to vector<32x128xf32>
    %353 = arith.mulf %352, %349 : vector<32x128xf32>
    %354 = arith.subf %351, %353 : vector<32x128xf32>
    %355 = arith.addf %335, %354 : vector<32x128xf32>
    %356 = vector.broadcast %343 : vector<1x128xf32> to vector<32x128xf32>
    %357 = arith.mulf %356, %349 : vector<32x128xf32>
    %358 = vector.broadcast %345 : vector<1x128xf32> to vector<32x128xf32>
    %359 = arith.mulf %358, %347 : vector<32x128xf32>
    %360 = arith.addf %357, %359 : vector<32x128xf32>
    %361 = arith.addf %341, %360 : vector<32x128xf32>
    %c0_199 = arith.constant 0 : index
    %c18 = arith.constant 18 : index
    %c0_200 = arith.constant 0 : index
    %362 = vector.load %arg1[%c0_199, %c18, %c0_200] : memref<1x32x128xf32, #tpu.memory_space<vmem>>, vector<1x1x128xf32>
    %363 = vector.shape_cast %362 : vector<1x1x128xf32> to vector<1x128xf32>
    %c0_201 = arith.constant 0 : index
    %c18_202 = arith.constant 18 : index
    %c0_203 = arith.constant 0 : index
    %364 = vector.load %arg2[%c0_201, %c18_202, %c0_203] : memref<1x32x128xf32, #tpu.memory_space<vmem>>, vector<1x1x128xf32>
    %365 = vector.shape_cast %364 : vector<1x1x128xf32> to vector<1x128xf32>
    %c18_204 = arith.constant 18 : index
    %c0_205 = arith.constant 0 : index
    %c0_206 = arith.constant 0 : index
    %366 = vector.load %arg3[%c18_204, %c0_205, %c0_206] : memref<32x32x128xf32, #tpu.memory_space<vmem>>, vector<1x32x128xf32>
    %367 = vector.shape_cast %366 : vector<1x32x128xf32> to vector<32x128xf32>
    %c18_207 = arith.constant 18 : index
    %c0_208 = arith.constant 0 : index
    %c0_209 = arith.constant 0 : index
    %368 = vector.load %arg4[%c18_207, %c0_208, %c0_209] : memref<32x32x128xf32, #tpu.memory_space<vmem>>, vector<1x32x128xf32>
    %369 = vector.shape_cast %368 : vector<1x32x128xf32> to vector<32x128xf32>
    %370 = vector.broadcast %363 : vector<1x128xf32> to vector<32x128xf32>
    %371 = arith.mulf %370, %367 : vector<32x128xf32>
    %372 = vector.broadcast %365 : vector<1x128xf32> to vector<32x128xf32>
    %373 = arith.mulf %372, %369 : vector<32x128xf32>
    %374 = arith.subf %371, %373 : vector<32x128xf32>
    %375 = arith.addf %355, %374 : vector<32x128xf32>
    %376 = vector.broadcast %363 : vector<1x128xf32> to vector<32x128xf32>
    %377 = arith.mulf %376, %369 : vector<32x128xf32>
    %378 = vector.broadcast %365 : vector<1x128xf32> to vector<32x128xf32>
    %379 = arith.mulf %378, %367 : vector<32x128xf32>
    %380 = arith.addf %377, %379 : vector<32x128xf32>
    %381 = arith.addf %361, %380 : vector<32x128xf32>
    %c0_210 = arith.constant 0 : index
    %c19 = arith.constant 19 : index
    %c0_211 = arith.constant 0 : index
    %382 = vector.load %arg1[%c0_210, %c19, %c0_211] : memref<1x32x128xf32, #tpu.memory_space<vmem>>, vector<1x1x128xf32>
    %383 = vector.shape_cast %382 : vector<1x1x128xf32> to vector<1x128xf32>
    %c0_212 = arith.constant 0 : index
    %c19_213 = arith.constant 19 : index
    %c0_214 = arith.constant 0 : index
    %384 = vector.load %arg2[%c0_212, %c19_213, %c0_214] : memref<1x32x128xf32, #tpu.memory_space<vmem>>, vector<1x1x128xf32>
    %385 = vector.shape_cast %384 : vector<1x1x128xf32> to vector<1x128xf32>
    %c19_215 = arith.constant 19 : index
    %c0_216 = arith.constant 0 : index
    %c0_217 = arith.constant 0 : index
    %386 = vector.load %arg3[%c19_215, %c0_216, %c0_217] : memref<32x32x128xf32, #tpu.memory_space<vmem>>, vector<1x32x128xf32>
    %387 = vector.shape_cast %386 : vector<1x32x128xf32> to vector<32x128xf32>
    %c19_218 = arith.constant 19 : index
    %c0_219 = arith.constant 0 : index
    %c0_220 = arith.constant 0 : index
    %388 = vector.load %arg4[%c19_218, %c0_219, %c0_220] : memref<32x32x128xf32, #tpu.memory_space<vmem>>, vector<1x32x128xf32>
    %389 = vector.shape_cast %388 : vector<1x32x128xf32> to vector<32x128xf32>
    %390 = vector.broadcast %383 : vector<1x128xf32> to vector<32x128xf32>
    %391 = arith.mulf %390, %387 : vector<32x128xf32>
    %392 = vector.broadcast %385 : vector<1x128xf32> to vector<32x128xf32>
    %393 = arith.mulf %392, %389 : vector<32x128xf32>
    %394 = arith.subf %391, %393 : vector<32x128xf32>
    %395 = arith.addf %375, %394 : vector<32x128xf32>
    %396 = vector.broadcast %383 : vector<1x128xf32> to vector<32x128xf32>
    %397 = arith.mulf %396, %389 : vector<32x128xf32>
    %398 = vector.broadcast %385 : vector<1x128xf32> to vector<32x128xf32>
    %399 = arith.mulf %398, %387 : vector<32x128xf32>
    %400 = arith.addf %397, %399 : vector<32x128xf32>
    %401 = arith.addf %381, %400 : vector<32x128xf32>
    %c0_221 = arith.constant 0 : index
    %c20 = arith.constant 20 : index
    %c0_222 = arith.constant 0 : index
    %402 = vector.load %arg1[%c0_221, %c20, %c0_222] : memref<1x32x128xf32, #tpu.memory_space<vmem>>, vector<1x1x128xf32>
    %403 = vector.shape_cast %402 : vector<1x1x128xf32> to vector<1x128xf32>
    %c0_223 = arith.constant 0 : index
    %c20_224 = arith.constant 20 : index
    %c0_225 = arith.constant 0 : index
    %404 = vector.load %arg2[%c0_223, %c20_224, %c0_225] : memref<1x32x128xf32, #tpu.memory_space<vmem>>, vector<1x1x128xf32>
    %405 = vector.shape_cast %404 : vector<1x1x128xf32> to vector<1x128xf32>
    %c20_226 = arith.constant 20 : index
    %c0_227 = arith.constant 0 : index
    %c0_228 = arith.constant 0 : index
    %406 = vector.load %arg3[%c20_226, %c0_227, %c0_228] : memref<32x32x128xf32, #tpu.memory_space<vmem>>, vector<1x32x128xf32>
    %407 = vector.shape_cast %406 : vector<1x32x128xf32> to vector<32x128xf32>
    %c20_229 = arith.constant 20 : index
    %c0_230 = arith.constant 0 : index
    %c0_231 = arith.constant 0 : index
    %408 = vector.load %arg4[%c20_229, %c0_230, %c0_231] : memref<32x32x128xf32, #tpu.memory_space<vmem>>, vector<1x32x128xf32>
    %409 = vector.shape_cast %408 : vector<1x32x128xf32> to vector<32x128xf32>
    %410 = vector.broadcast %403 : vector<1x128xf32> to vector<32x128xf32>
    %411 = arith.mulf %410, %407 : vector<32x128xf32>
    %412 = vector.broadcast %405 : vector<1x128xf32> to vector<32x128xf32>
    %413 = arith.mulf %412, %409 : vector<32x128xf32>
    %414 = arith.subf %411, %413 : vector<32x128xf32>
    %415 = arith.addf %395, %414 : vector<32x128xf32>
    %416 = vector.broadcast %403 : vector<1x128xf32> to vector<32x128xf32>
    %417 = arith.mulf %416, %409 : vector<32x128xf32>
    %418 = vector.broadcast %405 : vector<1x128xf32> to vector<32x128xf32>
    %419 = arith.mulf %418, %407 : vector<32x128xf32>
    %420 = arith.addf %417, %419 : vector<32x128xf32>
    %421 = arith.addf %401, %420 : vector<32x128xf32>
    %c0_232 = arith.constant 0 : index
    %c21 = arith.constant 21 : index
    %c0_233 = arith.constant 0 : index
    %422 = vector.load %arg1[%c0_232, %c21, %c0_233] : memref<1x32x128xf32, #tpu.memory_space<vmem>>, vector<1x1x128xf32>
    %423 = vector.shape_cast %422 : vector<1x1x128xf32> to vector<1x128xf32>
    %c0_234 = arith.constant 0 : index
    %c21_235 = arith.constant 21 : index
    %c0_236 = arith.constant 0 : index
    %424 = vector.load %arg2[%c0_234, %c21_235, %c0_236] : memref<1x32x128xf32, #tpu.memory_space<vmem>>, vector<1x1x128xf32>
    %425 = vector.shape_cast %424 : vector<1x1x128xf32> to vector<1x128xf32>
    %c21_237 = arith.constant 21 : index
    %c0_238 = arith.constant 0 : index
    %c0_239 = arith.constant 0 : index
    %426 = vector.load %arg3[%c21_237, %c0_238, %c0_239] : memref<32x32x128xf32, #tpu.memory_space<vmem>>, vector<1x32x128xf32>
    %427 = vector.shape_cast %426 : vector<1x32x128xf32> to vector<32x128xf32>
    %c21_240 = arith.constant 21 : index
    %c0_241 = arith.constant 0 : index
    %c0_242 = arith.constant 0 : index
    %428 = vector.load %arg4[%c21_240, %c0_241, %c0_242] : memref<32x32x128xf32, #tpu.memory_space<vmem>>, vector<1x32x128xf32>
    %429 = vector.shape_cast %428 : vector<1x32x128xf32> to vector<32x128xf32>
    %430 = vector.broadcast %423 : vector<1x128xf32> to vector<32x128xf32>
    %431 = arith.mulf %430, %427 : vector<32x128xf32>
    %432 = vector.broadcast %425 : vector<1x128xf32> to vector<32x128xf32>
    %433 = arith.mulf %432, %429 : vector<32x128xf32>
    %434 = arith.subf %431, %433 : vector<32x128xf32>
    %435 = arith.addf %415, %434 : vector<32x128xf32>
    %436 = vector.broadcast %423 : vector<1x128xf32> to vector<32x128xf32>
    %437 = arith.mulf %436, %429 : vector<32x128xf32>
    %438 = vector.broadcast %425 : vector<1x128xf32> to vector<32x128xf32>
    %439 = arith.mulf %438, %427 : vector<32x128xf32>
    %440 = arith.addf %437, %439 : vector<32x128xf32>
    %441 = arith.addf %421, %440 : vector<32x128xf32>
    %c0_243 = arith.constant 0 : index
    %c22 = arith.constant 22 : index
    %c0_244 = arith.constant 0 : index
    %442 = vector.load %arg1[%c0_243, %c22, %c0_244] : memref<1x32x128xf32, #tpu.memory_space<vmem>>, vector<1x1x128xf32>
    %443 = vector.shape_cast %442 : vector<1x1x128xf32> to vector<1x128xf32>
    %c0_245 = arith.constant 0 : index
    %c22_246 = arith.constant 22 : index
    %c0_247 = arith.constant 0 : index
    %444 = vector.load %arg2[%c0_245, %c22_246, %c0_247] : memref<1x32x128xf32, #tpu.memory_space<vmem>>, vector<1x1x128xf32>
    %445 = vector.shape_cast %444 : vector<1x1x128xf32> to vector<1x128xf32>
    %c22_248 = arith.constant 22 : index
    %c0_249 = arith.constant 0 : index
    %c0_250 = arith.constant 0 : index
    %446 = vector.load %arg3[%c22_248, %c0_249, %c0_250] : memref<32x32x128xf32, #tpu.memory_space<vmem>>, vector<1x32x128xf32>
    %447 = vector.shape_cast %446 : vector<1x32x128xf32> to vector<32x128xf32>
    %c22_251 = arith.constant 22 : index
    %c0_252 = arith.constant 0 : index
    %c0_253 = arith.constant 0 : index
    %448 = vector.load %arg4[%c22_251, %c0_252, %c0_253] : memref<32x32x128xf32, #tpu.memory_space<vmem>>, vector<1x32x128xf32>
    %449 = vector.shape_cast %448 : vector<1x32x128xf32> to vector<32x128xf32>
    %450 = vector.broadcast %443 : vector<1x128xf32> to vector<32x128xf32>
    %451 = arith.mulf %450, %447 : vector<32x128xf32>
    %452 = vector.broadcast %445 : vector<1x128xf32> to vector<32x128xf32>
    %453 = arith.mulf %452, %449 : vector<32x128xf32>
    %454 = arith.subf %451, %453 : vector<32x128xf32>
    %455 = arith.addf %435, %454 : vector<32x128xf32>
    %456 = vector.broadcast %443 : vector<1x128xf32> to vector<32x128xf32>
    %457 = arith.mulf %456, %449 : vector<32x128xf32>
    %458 = vector.broadcast %445 : vector<1x128xf32> to vector<32x128xf32>
    %459 = arith.mulf %458, %447 : vector<32x128xf32>
    %460 = arith.addf %457, %459 : vector<32x128xf32>
    %461 = arith.addf %441, %460 : vector<32x128xf32>
    %c0_254 = arith.constant 0 : index
    %c23 = arith.constant 23 : index
    %c0_255 = arith.constant 0 : index
    %462 = vector.load %arg1[%c0_254, %c23, %c0_255] : memref<1x32x128xf32, #tpu.memory_space<vmem>>, vector<1x1x128xf32>
    %463 = vector.shape_cast %462 : vector<1x1x128xf32> to vector<1x128xf32>
    %c0_256 = arith.constant 0 : index
    %c23_257 = arith.constant 23 : index
    %c0_258 = arith.constant 0 : index
    %464 = vector.load %arg2[%c0_256, %c23_257, %c0_258] : memref<1x32x128xf32, #tpu.memory_space<vmem>>, vector<1x1x128xf32>
    %465 = vector.shape_cast %464 : vector<1x1x128xf32> to vector<1x128xf32>
    %c23_259 = arith.constant 23 : index
    %c0_260 = arith.constant 0 : index
    %c0_261 = arith.constant 0 : index
    %466 = vector.load %arg3[%c23_259, %c0_260, %c0_261] : memref<32x32x128xf32, #tpu.memory_space<vmem>>, vector<1x32x128xf32>
    %467 = vector.shape_cast %466 : vector<1x32x128xf32> to vector<32x128xf32>
    %c23_262 = arith.constant 23 : index
    %c0_263 = arith.constant 0 : index
    %c0_264 = arith.constant 0 : index
    %468 = vector.load %arg4[%c23_262, %c0_263, %c0_264] : memref<32x32x128xf32, #tpu.memory_space<vmem>>, vector<1x32x128xf32>
    %469 = vector.shape_cast %468 : vector<1x32x128xf32> to vector<32x128xf32>
    %470 = vector.broadcast %463 : vector<1x128xf32> to vector<32x128xf32>
    %471 = arith.mulf %470, %467 : vector<32x128xf32>
    %472 = vector.broadcast %465 : vector<1x128xf32> to vector<32x128xf32>
    %473 = arith.mulf %472, %469 : vector<32x128xf32>
    %474 = arith.subf %471, %473 : vector<32x128xf32>
    %475 = arith.addf %455, %474 : vector<32x128xf32>
    %476 = vector.broadcast %463 : vector<1x128xf32> to vector<32x128xf32>
    %477 = arith.mulf %476, %469 : vector<32x128xf32>
    %478 = vector.broadcast %465 : vector<1x128xf32> to vector<32x128xf32>
    %479 = arith.mulf %478, %467 : vector<32x128xf32>
    %480 = arith.addf %477, %479 : vector<32x128xf32>
    %481 = arith.addf %461, %480 : vector<32x128xf32>
    %c0_265 = arith.constant 0 : index
    %c24 = arith.constant 24 : index
    %c0_266 = arith.constant 0 : index
    %482 = vector.load %arg1[%c0_265, %c24, %c0_266] : memref<1x32x128xf32, #tpu.memory_space<vmem>>, vector<1x1x128xf32>
    %483 = vector.shape_cast %482 : vector<1x1x128xf32> to vector<1x128xf32>
    %c0_267 = arith.constant 0 : index
    %c24_268 = arith.constant 24 : index
    %c0_269 = arith.constant 0 : index
    %484 = vector.load %arg2[%c0_267, %c24_268, %c0_269] : memref<1x32x128xf32, #tpu.memory_space<vmem>>, vector<1x1x128xf32>
    %485 = vector.shape_cast %484 : vector<1x1x128xf32> to vector<1x128xf32>
    %c24_270 = arith.constant 24 : index
    %c0_271 = arith.constant 0 : index
    %c0_272 = arith.constant 0 : index
    %486 = vector.load %arg3[%c24_270, %c0_271, %c0_272] : memref<32x32x128xf32, #tpu.memory_space<vmem>>, vector<1x32x128xf32>
    %487 = vector.shape_cast %486 : vector<1x32x128xf32> to vector<32x128xf32>
    %c24_273 = arith.constant 24 : index
    %c0_274 = arith.constant 0 : index
    %c0_275 = arith.constant 0 : index
    %488 = vector.load %arg4[%c24_273, %c0_274, %c0_275] : memref<32x32x128xf32, #tpu.memory_space<vmem>>, vector<1x32x128xf32>
    %489 = vector.shape_cast %488 : vector<1x32x128xf32> to vector<32x128xf32>
    %490 = vector.broadcast %483 : vector<1x128xf32> to vector<32x128xf32>
    %491 = arith.mulf %490, %487 : vector<32x128xf32>
    %492 = vector.broadcast %485 : vector<1x128xf32> to vector<32x128xf32>
    %493 = arith.mulf %492, %489 : vector<32x128xf32>
    %494 = arith.subf %491, %493 : vector<32x128xf32>
    %495 = arith.addf %475, %494 : vector<32x128xf32>
    %496 = vector.broadcast %483 : vector<1x128xf32> to vector<32x128xf32>
    %497 = arith.mulf %496, %489 : vector<32x128xf32>
    %498 = vector.broadcast %485 : vector<1x128xf32> to vector<32x128xf32>
    %499 = arith.mulf %498, %487 : vector<32x128xf32>
    %500 = arith.addf %497, %499 : vector<32x128xf32>
    %501 = arith.addf %481, %500 : vector<32x128xf32>
    %c0_276 = arith.constant 0 : index
    %c25 = arith.constant 25 : index
    %c0_277 = arith.constant 0 : index
    %502 = vector.load %arg1[%c0_276, %c25, %c0_277] : memref<1x32x128xf32, #tpu.memory_space<vmem>>, vector<1x1x128xf32>
    %503 = vector.shape_cast %502 : vector<1x1x128xf32> to vector<1x128xf32>
    %c0_278 = arith.constant 0 : index
    %c25_279 = arith.constant 25 : index
    %c0_280 = arith.constant 0 : index
    %504 = vector.load %arg2[%c0_278, %c25_279, %c0_280] : memref<1x32x128xf32, #tpu.memory_space<vmem>>, vector<1x1x128xf32>
    %505 = vector.shape_cast %504 : vector<1x1x128xf32> to vector<1x128xf32>
    %c25_281 = arith.constant 25 : index
    %c0_282 = arith.constant 0 : index
    %c0_283 = arith.constant 0 : index
    %506 = vector.load %arg3[%c25_281, %c0_282, %c0_283] : memref<32x32x128xf32, #tpu.memory_space<vmem>>, vector<1x32x128xf32>
    %507 = vector.shape_cast %506 : vector<1x32x128xf32> to vector<32x128xf32>
    %c25_284 = arith.constant 25 : index
    %c0_285 = arith.constant 0 : index
    %c0_286 = arith.constant 0 : index
    %508 = vector.load %arg4[%c25_284, %c0_285, %c0_286] : memref<32x32x128xf32, #tpu.memory_space<vmem>>, vector<1x32x128xf32>
    %509 = vector.shape_cast %508 : vector<1x32x128xf32> to vector<32x128xf32>
    %510 = vector.broadcast %503 : vector<1x128xf32> to vector<32x128xf32>
    %511 = arith.mulf %510, %507 : vector<32x128xf32>
    %512 = vector.broadcast %505 : vector<1x128xf32> to vector<32x128xf32>
    %513 = arith.mulf %512, %509 : vector<32x128xf32>
    %514 = arith.subf %511, %513 : vector<32x128xf32>
    %515 = arith.addf %495, %514 : vector<32x128xf32>
    %516 = vector.broadcast %503 : vector<1x128xf32> to vector<32x128xf32>
    %517 = arith.mulf %516, %509 : vector<32x128xf32>
    %518 = vector.broadcast %505 : vector<1x128xf32> to vector<32x128xf32>
    %519 = arith.mulf %518, %507 : vector<32x128xf32>
    %520 = arith.addf %517, %519 : vector<32x128xf32>
    %521 = arith.addf %501, %520 : vector<32x128xf32>
    %c0_287 = arith.constant 0 : index
    %c26 = arith.constant 26 : index
    %c0_288 = arith.constant 0 : index
    %522 = vector.load %arg1[%c0_287, %c26, %c0_288] : memref<1x32x128xf32, #tpu.memory_space<vmem>>, vector<1x1x128xf32>
    %523 = vector.shape_cast %522 : vector<1x1x128xf32> to vector<1x128xf32>
    %c0_289 = arith.constant 0 : index
    %c26_290 = arith.constant 26 : index
    %c0_291 = arith.constant 0 : index
    %524 = vector.load %arg2[%c0_289, %c26_290, %c0_291] : memref<1x32x128xf32, #tpu.memory_space<vmem>>, vector<1x1x128xf32>
    %525 = vector.shape_cast %524 : vector<1x1x128xf32> to vector<1x128xf32>
    %c26_292 = arith.constant 26 : index
    %c0_293 = arith.constant 0 : index
    %c0_294 = arith.constant 0 : index
    %526 = vector.load %arg3[%c26_292, %c0_293, %c0_294] : memref<32x32x128xf32, #tpu.memory_space<vmem>>, vector<1x32x128xf32>
    %527 = vector.shape_cast %526 : vector<1x32x128xf32> to vector<32x128xf32>
    %c26_295 = arith.constant 26 : index
    %c0_296 = arith.constant 0 : index
    %c0_297 = arith.constant 0 : index
    %528 = vector.load %arg4[%c26_295, %c0_296, %c0_297] : memref<32x32x128xf32, #tpu.memory_space<vmem>>, vector<1x32x128xf32>
    %529 = vector.shape_cast %528 : vector<1x32x128xf32> to vector<32x128xf32>
    %530 = vector.broadcast %523 : vector<1x128xf32> to vector<32x128xf32>
    %531 = arith.mulf %530, %527 : vector<32x128xf32>
    %532 = vector.broadcast %525 : vector<1x128xf32> to vector<32x128xf32>
    %533 = arith.mulf %532, %529 : vector<32x128xf32>
    %534 = arith.subf %531, %533 : vector<32x128xf32>
    %535 = arith.addf %515, %534 : vector<32x128xf32>
    %536 = vector.broadcast %523 : vector<1x128xf32> to vector<32x128xf32>
    %537 = arith.mulf %536, %529 : vector<32x128xf32>
    %538 = vector.broadcast %525 : vector<1x128xf32> to vector<32x128xf32>
    %539 = arith.mulf %538, %527 : vector<32x128xf32>
    %540 = arith.addf %537, %539 : vector<32x128xf32>
    %541 = arith.addf %521, %540 : vector<32x128xf32>
    %c0_298 = arith.constant 0 : index
    %c27 = arith.constant 27 : index
    %c0_299 = arith.constant 0 : index
    %542 = vector.load %arg1[%c0_298, %c27, %c0_299] : memref<1x32x128xf32, #tpu.memory_space<vmem>>, vector<1x1x128xf32>
    %543 = vector.shape_cast %542 : vector<1x1x128xf32> to vector<1x128xf32>
    %c0_300 = arith.constant 0 : index
    %c27_301 = arith.constant 27 : index
    %c0_302 = arith.constant 0 : index
    %544 = vector.load %arg2[%c0_300, %c27_301, %c0_302] : memref<1x32x128xf32, #tpu.memory_space<vmem>>, vector<1x1x128xf32>
    %545 = vector.shape_cast %544 : vector<1x1x128xf32> to vector<1x128xf32>
    %c27_303 = arith.constant 27 : index
    %c0_304 = arith.constant 0 : index
    %c0_305 = arith.constant 0 : index
    %546 = vector.load %arg3[%c27_303, %c0_304, %c0_305] : memref<32x32x128xf32, #tpu.memory_space<vmem>>, vector<1x32x128xf32>
    %547 = vector.shape_cast %546 : vector<1x32x128xf32> to vector<32x128xf32>
    %c27_306 = arith.constant 27 : index
    %c0_307 = arith.constant 0 : index
    %c0_308 = arith.constant 0 : index
    %548 = vector.load %arg4[%c27_306, %c0_307, %c0_308] : memref<32x32x128xf32, #tpu.memory_space<vmem>>, vector<1x32x128xf32>
    %549 = vector.shape_cast %548 : vector<1x32x128xf32> to vector<32x128xf32>
    %550 = vector.broadcast %543 : vector<1x128xf32> to vector<32x128xf32>
    %551 = arith.mulf %550, %547 : vector<32x128xf32>
    %552 = vector.broadcast %545 : vector<1x128xf32> to vector<32x128xf32>
    %553 = arith.mulf %552, %549 : vector<32x128xf32>
    %554 = arith.subf %551, %553 : vector<32x128xf32>
    %555 = arith.addf %535, %554 : vector<32x128xf32>
    %556 = vector.broadcast %543 : vector<1x128xf32> to vector<32x128xf32>
    %557 = arith.mulf %556, %549 : vector<32x128xf32>
    %558 = vector.broadcast %545 : vector<1x128xf32> to vector<32x128xf32>
    %559 = arith.mulf %558, %547 : vector<32x128xf32>
    %560 = arith.addf %557, %559 : vector<32x128xf32>
    %561 = arith.addf %541, %560 : vector<32x128xf32>
    %c0_309 = arith.constant 0 : index
    %c28 = arith.constant 28 : index
    %c0_310 = arith.constant 0 : index
    %562 = vector.load %arg1[%c0_309, %c28, %c0_310] : memref<1x32x128xf32, #tpu.memory_space<vmem>>, vector<1x1x128xf32>
    %563 = vector.shape_cast %562 : vector<1x1x128xf32> to vector<1x128xf32>
    %c0_311 = arith.constant 0 : index
    %c28_312 = arith.constant 28 : index
    %c0_313 = arith.constant 0 : index
    %564 = vector.load %arg2[%c0_311, %c28_312, %c0_313] : memref<1x32x128xf32, #tpu.memory_space<vmem>>, vector<1x1x128xf32>
    %565 = vector.shape_cast %564 : vector<1x1x128xf32> to vector<1x128xf32>
    %c28_314 = arith.constant 28 : index
    %c0_315 = arith.constant 0 : index
    %c0_316 = arith.constant 0 : index
    %566 = vector.load %arg3[%c28_314, %c0_315, %c0_316] : memref<32x32x128xf32, #tpu.memory_space<vmem>>, vector<1x32x128xf32>
    %567 = vector.shape_cast %566 : vector<1x32x128xf32> to vector<32x128xf32>
    %c28_317 = arith.constant 28 : index
    %c0_318 = arith.constant 0 : index
    %c0_319 = arith.constant 0 : index
    %568 = vector.load %arg4[%c28_317, %c0_318, %c0_319] : memref<32x32x128xf32, #tpu.memory_space<vmem>>, vector<1x32x128xf32>
    %569 = vector.shape_cast %568 : vector<1x32x128xf32> to vector<32x128xf32>
    %570 = vector.broadcast %563 : vector<1x128xf32> to vector<32x128xf32>
    %571 = arith.mulf %570, %567 : vector<32x128xf32>
    %572 = vector.broadcast %565 : vector<1x128xf32> to vector<32x128xf32>
    %573 = arith.mulf %572, %569 : vector<32x128xf32>
    %574 = arith.subf %571, %573 : vector<32x128xf32>
    %575 = arith.addf %555, %574 : vector<32x128xf32>
    %576 = vector.broadcast %563 : vector<1x128xf32> to vector<32x128xf32>
    %577 = arith.mulf %576, %569 : vector<32x128xf32>
    %578 = vector.broadcast %565 : vector<1x128xf32> to vector<32x128xf32>
    %579 = arith.mulf %578, %567 : vector<32x128xf32>
    %580 = arith.addf %577, %579 : vector<32x128xf32>
    %581 = arith.addf %561, %580 : vector<32x128xf32>
    %c0_320 = arith.constant 0 : index
    %c29 = arith.constant 29 : index
    %c0_321 = arith.constant 0 : index
    %582 = vector.load %arg1[%c0_320, %c29, %c0_321] : memref<1x32x128xf32, #tpu.memory_space<vmem>>, vector<1x1x128xf32>
    %583 = vector.shape_cast %582 : vector<1x1x128xf32> to vector<1x128xf32>
    %c0_322 = arith.constant 0 : index
    %c29_323 = arith.constant 29 : index
    %c0_324 = arith.constant 0 : index
    %584 = vector.load %arg2[%c0_322, %c29_323, %c0_324] : memref<1x32x128xf32, #tpu.memory_space<vmem>>, vector<1x1x128xf32>
    %585 = vector.shape_cast %584 : vector<1x1x128xf32> to vector<1x128xf32>
    %c29_325 = arith.constant 29 : index
    %c0_326 = arith.constant 0 : index
    %c0_327 = arith.constant 0 : index
    %586 = vector.load %arg3[%c29_325, %c0_326, %c0_327] : memref<32x32x128xf32, #tpu.memory_space<vmem>>, vector<1x32x128xf32>
    %587 = vector.shape_cast %586 : vector<1x32x128xf32> to vector<32x128xf32>
    %c29_328 = arith.constant 29 : index
    %c0_329 = arith.constant 0 : index
    %c0_330 = arith.constant 0 : index
    %588 = vector.load %arg4[%c29_328, %c0_329, %c0_330] : memref<32x32x128xf32, #tpu.memory_space<vmem>>, vector<1x32x128xf32>
    %589 = vector.shape_cast %588 : vector<1x32x128xf32> to vector<32x128xf32>
    %590 = vector.broadcast %583 : vector<1x128xf32> to vector<32x128xf32>
    %591 = arith.mulf %590, %587 : vector<32x128xf32>
    %592 = vector.broadcast %585 : vector<1x128xf32> to vector<32x128xf32>
    %593 = arith.mulf %592, %589 : vector<32x128xf32>
    %594 = arith.subf %591, %593 : vector<32x128xf32>
    %595 = arith.addf %575, %594 : vector<32x128xf32>
    %596 = vector.broadcast %583 : vector<1x128xf32> to vector<32x128xf32>
    %597 = arith.mulf %596, %589 : vector<32x128xf32>
    %598 = vector.broadcast %585 : vector<1x128xf32> to vector<32x128xf32>
    %599 = arith.mulf %598, %587 : vector<32x128xf32>
    %600 = arith.addf %597, %599 : vector<32x128xf32>
    %601 = arith.addf %581, %600 : vector<32x128xf32>
    %c0_331 = arith.constant 0 : index
    %c30 = arith.constant 30 : index
    %c0_332 = arith.constant 0 : index
    %602 = vector.load %arg1[%c0_331, %c30, %c0_332] : memref<1x32x128xf32, #tpu.memory_space<vmem>>, vector<1x1x128xf32>
    %603 = vector.shape_cast %602 : vector<1x1x128xf32> to vector<1x128xf32>
    %c0_333 = arith.constant 0 : index
    %c30_334 = arith.constant 30 : index
    %c0_335 = arith.constant 0 : index
    %604 = vector.load %arg2[%c0_333, %c30_334, %c0_335] : memref<1x32x128xf32, #tpu.memory_space<vmem>>, vector<1x1x128xf32>
    %605 = vector.shape_cast %604 : vector<1x1x128xf32> to vector<1x128xf32>
    %c30_336 = arith.constant 30 : index
    %c0_337 = arith.constant 0 : index
    %c0_338 = arith.constant 0 : index
    %606 = vector.load %arg3[%c30_336, %c0_337, %c0_338] : memref<32x32x128xf32, #tpu.memory_space<vmem>>, vector<1x32x128xf32>
    %607 = vector.shape_cast %606 : vector<1x32x128xf32> to vector<32x128xf32>
    %c30_339 = arith.constant 30 : index
    %c0_340 = arith.constant 0 : index
    %c0_341 = arith.constant 0 : index
    %608 = vector.load %arg4[%c30_339, %c0_340, %c0_341] : memref<32x32x128xf32, #tpu.memory_space<vmem>>, vector<1x32x128xf32>
    %609 = vector.shape_cast %608 : vector<1x32x128xf32> to vector<32x128xf32>
    %610 = vector.broadcast %603 : vector<1x128xf32> to vector<32x128xf32>
    %611 = arith.mulf %610, %607 : vector<32x128xf32>
    %612 = vector.broadcast %605 : vector<1x128xf32> to vector<32x128xf32>
    %613 = arith.mulf %612, %609 : vector<32x128xf32>
    %614 = arith.subf %611, %613 : vector<32x128xf32>
    %615 = arith.addf %595, %614 : vector<32x128xf32>
    %616 = vector.broadcast %603 : vector<1x128xf32> to vector<32x128xf32>
    %617 = arith.mulf %616, %609 : vector<32x128xf32>
    %618 = vector.broadcast %605 : vector<1x128xf32> to vector<32x128xf32>
    %619 = arith.mulf %618, %607 : vector<32x128xf32>
    %620 = arith.addf %617, %619 : vector<32x128xf32>
    %621 = arith.addf %601, %620 : vector<32x128xf32>
    %c0_342 = arith.constant 0 : index
    %c31 = arith.constant 31 : index
    %c0_343 = arith.constant 0 : index
    %622 = vector.load %arg1[%c0_342, %c31, %c0_343] : memref<1x32x128xf32, #tpu.memory_space<vmem>>, vector<1x1x128xf32>
    %623 = vector.shape_cast %622 : vector<1x1x128xf32> to vector<1x128xf32>
    %c0_344 = arith.constant 0 : index
    %c31_345 = arith.constant 31 : index
    %c0_346 = arith.constant 0 : index
    %624 = vector.load %arg2[%c0_344, %c31_345, %c0_346] : memref<1x32x128xf32, #tpu.memory_space<vmem>>, vector<1x1x128xf32>
    %625 = vector.shape_cast %624 : vector<1x1x128xf32> to vector<1x128xf32>
    %c31_347 = arith.constant 31 : index
    %c0_348 = arith.constant 0 : index
    %c0_349 = arith.constant 0 : index
    %626 = vector.load %arg3[%c31_347, %c0_348, %c0_349] : memref<32x32x128xf32, #tpu.memory_space<vmem>>, vector<1x32x128xf32>
    %627 = vector.shape_cast %626 : vector<1x32x128xf32> to vector<32x128xf32>
    %c31_350 = arith.constant 31 : index
    %c0_351 = arith.constant 0 : index
    %c0_352 = arith.constant 0 : index
    %628 = vector.load %arg4[%c31_350, %c0_351, %c0_352] : memref<32x32x128xf32, #tpu.memory_space<vmem>>, vector<1x32x128xf32>
    %629 = vector.shape_cast %628 : vector<1x32x128xf32> to vector<32x128xf32>
    %630 = vector.broadcast %623 : vector<1x128xf32> to vector<32x128xf32>
    %631 = arith.mulf %630, %627 : vector<32x128xf32>
    %632 = vector.broadcast %625 : vector<1x128xf32> to vector<32x128xf32>
    %633 = arith.mulf %632, %629 : vector<32x128xf32>
    %634 = arith.subf %631, %633 : vector<32x128xf32>
    %635 = arith.addf %615, %634 : vector<32x128xf32>
    %636 = vector.broadcast %623 : vector<1x128xf32> to vector<32x128xf32>
    %637 = arith.mulf %636, %629 : vector<32x128xf32>
    %638 = vector.broadcast %625 : vector<1x128xf32> to vector<32x128xf32>
    %639 = arith.mulf %638, %627 : vector<32x128xf32>
    %640 = arith.addf %637, %639 : vector<32x128xf32>
    %641 = arith.addf %621, %640 : vector<32x128xf32>
    %c0_353 = arith.constant 0 : index
    %c0_354 = arith.constant 0 : index
    %c0_355 = arith.constant 0 : index
    %642 = vector.load %arg5[%c0_353, %c0_354, %c0_355] : memref<1x32x128xf32, #tpu.memory_space<vmem>>, vector<1x32x128xf32>
    %643 = vector.shape_cast %642 : vector<1x32x128xf32> to vector<32x128xf32>
    %644 = vector.shape_cast %635 : vector<32x128xf32> to vector<1x32x128xf32>
    tpu.vector_store %arg5[%c0_353, %c0_354, %c0_355], %644 {strides = array<i32>} : memref<1x32x128xf32, #tpu.memory_space<vmem>>, vector<1x32x128xf32>,
    %c0_356 = arith.constant 0 : index
    %c0_357 = arith.constant 0 : index
    %c0_358 = arith.constant 0 : index
    %645 = vector.load %arg6[%c0_356, %c0_357, %c0_358] : memref<1x32x128xf32, #tpu.memory_space<vmem>>, vector<1x32x128xf32>
    %646 = vector.shape_cast %645 : vector<1x32x128xf32> to vector<32x128xf32>
    %647 = vector.shape_cast %641 : vector<32x128xf32> to vector<1x32x128xf32>
    tpu.vector_store %arg6[%c0_356, %c0_357, %c0_358], %647 {strides = array<i32>} : memref<1x32x128xf32, #tpu.memory_space<vmem>>, vector<1x32x128xf32>,
    return
  }
  func.func @transform_0(%arg0: i32) -> (i32, i32, i32) {
    %c0_i32 = arith.constant 0 : i32
    %c0_i32_0 = arith.constant 0 : i32
    %c0_i32_1 = arith.constant 0 : i32
    return %arg0, %c0_i32, %c0_i32_0 : i32, i32, i32
  }
  func.func @transform_1(%arg0: i32) -> (i32, i32, i32) {
    %c0_i32 = arith.constant 0 : i32
    %c0_i32_0 = arith.constant 0 : i32
    %c0_i32_1 = arith.constant 0 : i32
    return %arg0, %c0_i32, %c0_i32_0 : i32, i32, i32
  }
  func.func @transform_2(%arg0: i32) -> (i32, i32, i32) {
    %c0_i32 = arith.constant 0 : i32
    %c0_i32_0 = arith.constant 0 : i32
    %c0_i32_1 = arith.constant 0 : i32
    %c0_i32_2 = arith.constant 0 : i32
    return %c0_i32, %c0_i32_0, %c0_i32_1 : i32, i32, i32
  }
  func.func @transform_3(%arg0: i32) -> (i32, i32, i32) {
    %c0_i32 = arith.constant 0 : i32
    %c0_i32_0 = arith.constant 0 : i32
    %c0_i32_1 = arith.constant 0 : i32
    %c0_i32_2 = arith.constant 0 : i32
    return %c0_i32, %c0_i32_0, %c0_i32_1 : i32, i32, i32
  }
  func.func @transform_4(%arg0: i32) -> (i32, i32, i32) {
    %c0_i32 = arith.constant 0 : i32
    %c0_i32_0 = arith.constant 0 : i32
    %c0_i32_1 = arith.constant 0 : i32
    return %arg0, %c0_i32, %c0_i32_0 : i32, i32, i32
  }
  func.func @transform_5(%arg0: i32) -> (i32, i32, i32) {
    %c0_i32 = arith.constant 0 : i32
    %c0_i32_0 = arith.constant 0 : i32
    %c0_i32_1 = arith.constant 0 : i32
    return %arg0, %c0_i32, %c0_i32_0 : i32, i32, i32
  }
}

module attributes {stable_mosaic.version = 11 : i64} {
  func.func @_linear_cm_kernel(%arg0: i32, %arg1: i32, %arg2: memref<1x32x256xbf16, #tpu.memory_space<vmem>>, %arg3: memref<32x32xbf16, #tpu.memory_space<vmem>>, %arg4: memref<32x1xf32, #tpu.memory_space<vmem>>, %arg5: memref<1x32x256xf32, #tpu.memory_space<vmem>>, %arg6: memref<1x32x256xbf16, #tpu.memory_space<vmem>>) attributes {dimension_semantics = [#tpu.dimension_semantics<parallel>, #tpu.dimension_semantics<parallel>], iteration_bounds = array<i64: 2, 1>, scalar_prefetch = 0 : i64, scratch_operands = 0 : i64, tpu.core_type = #tpu.core_type<tc>, window_params = [{transform_indices = @transform_0, window_bounds = array<i64: 1, 32, 256>}, {pipeline_mode = #tpu.pipeline_mode<synchronous>, transform_indices = @transform_1, window_bounds = array<i64: 32, 32>}, {pipeline_mode = #tpu.pipeline_mode<synchronous>, transform_indices = @transform_2, window_bounds = array<i64: 32, 1>}, {transform_indices = @transform_3, window_bounds = array<i64: 1, 32, 256>}, {transform_indices = @transform_4, window_bounds = array<i64: 1, 32, 256>}]} {
    %c0 = arith.constant 0 : index
    %c0_0 = arith.constant 0 : index
    %c0_1 = arith.constant 0 : index
    %0 = vector.load %arg2[%c0, %c0_0, %c0_1] : memref<1x32x256xbf16, #tpu.memory_space<vmem>>, vector<1x32x256xbf16>
    %1 = vector.shape_cast %0 : vector<1x32x256xbf16> to vector<32x256xbf16>
    %c0_2 = arith.constant 0 : index
    %c0_3 = arith.constant 0 : index
    %2 = vector.load %arg3[%c0_2, %c0_3] : memref<32x32xbf16, #tpu.memory_space<vmem>>, vector<32x32xbf16>
    %cst = arith.constant dense<0.000000e+00> : vector<32x256xf32>
    %3 = tpu.matmul %2, %1, %cst {dimension_numbers = #tpu.dot_dimension_numbers<[1], [0], [0], [1], [0, 0, 1, 1], [], []>} : vector<32x32xbf16>, vector<32x256xbf16>, vector<32x256xf32> -> vector<32x256xf32>
    %c0_4 = arith.constant 0 : index
    %c0_5 = arith.constant 0 : index
    %4 = vector.load %arg4[%c0_4, %c0_5] : memref<32x1xf32, #tpu.memory_space<vmem>>, vector<32x1xf32>
    %5 = vector.broadcast %4 : vector<32x1xf32> to vector<32x256xf32>
    %6 = arith.addf %3, %5 : vector<32x256xf32>
    %c0_6 = arith.constant 0 : index
    %c0_7 = arith.constant 0 : index
    %c0_8 = arith.constant 0 : index
    %7 = vector.load %arg5[%c0_6, %c0_7, %c0_8] : memref<1x32x256xf32, #tpu.memory_space<vmem>>, vector<1x32x256xf32>
    %8 = vector.shape_cast %7 : vector<1x32x256xf32> to vector<32x256xf32>
    %9 = arith.addf %6, %8 : vector<32x256xf32>
    %cst_9 = arith.constant 5.000000e-01 : f32
    %10 = vector.broadcast %cst_9 : f32 to vector<32x256xf32>
    %11 = arith.mulf %10, %9 : vector<32x256xf32>
    %cst_10 = arith.constant 0.707106769 : f32
    %12 = vector.broadcast %cst_10 : f32 to vector<32x256xf32>
    %13 = arith.mulf %9, %12 : vector<32x256xf32>
    %14 = math.erf %13 : vector<32x256xf32>
    %cst_11 = arith.constant 1.000000e+00 : f32
    %15 = vector.broadcast %cst_11 : f32 to vector<32x256xf32>
    %16 = arith.addf %15, %14 : vector<32x256xf32>
    %17 = arith.mulf %11, %16 : vector<32x256xf32>
    %18 = arith.truncf %17 : vector<32x256xf32> to vector<32x256xbf16>
    %c0_12 = arith.constant 0 : index
    %c0_13 = arith.constant 0 : index
    %c0_14 = arith.constant 0 : index
    %19 = vector.load %arg6[%c0_12, %c0_13, %c0_14] : memref<1x32x256xbf16, #tpu.memory_space<vmem>>, vector<1x32x256xbf16>
    %20 = vector.shape_cast %19 : vector<1x32x256xbf16> to vector<32x256xbf16>
    %21 = vector.shape_cast %18 : vector<32x256xbf16> to vector<1x32x256xbf16>
    tpu.vector_store %arg6[%c0_12, %c0_13, %c0_14], %21 {strides = array<i32>} : memref<1x32x256xbf16, #tpu.memory_space<vmem>>, vector<1x32x256xbf16>,
    return
  }
  func.func @transform_0(%arg0: i32, %arg1: i32) -> (i32, i32, i32) {
    %c0_i32 = arith.constant 0 : i32
    %c0_i32_0 = arith.constant 0 : i32
    return %arg0, %c0_i32, %arg1 : i32, i32, i32
  }
  func.func @transform_1(%arg0: i32, %arg1: i32) -> (i32, i32) {
    %c0_i32 = arith.constant 0 : i32
    %c0_i32_0 = arith.constant 0 : i32
    %c0_i32_1 = arith.constant 0 : i32
    return %c0_i32, %c0_i32_0 : i32, i32
  }
  func.func @transform_2(%arg0: i32, %arg1: i32) -> (i32, i32) {
    %c0_i32 = arith.constant 0 : i32
    %c0_i32_0 = arith.constant 0 : i32
    %c0_i32_1 = arith.constant 0 : i32
    return %c0_i32, %c0_i32_0 : i32, i32
  }
  func.func @transform_3(%arg0: i32, %arg1: i32) -> (i32, i32, i32) {
    %c0_i32 = arith.constant 0 : i32
    %c0_i32_0 = arith.constant 0 : i32
    return %arg0, %c0_i32, %arg1 : i32, i32, i32
  }
  func.func @transform_4(%arg0: i32, %arg1: i32) -> (i32, i32, i32) {
    %c0_i32 = arith.constant 0 : i32
    %c0_i32_0 = arith.constant 0 : i32
    return %arg0, %c0_i32, %arg1 : i32, i32, i32
  }
}

module attributes {stable_mosaic.version = 11 : i64} {
  func.func @_linear_cm_kernel(%arg0: i32, %arg1: i32, %arg2: memref<1x32x256xbf16, #tpu.memory_space<vmem>>, %arg3: memref<32x32xbf16, #tpu.memory_space<vmem>>, %arg4: memref<32x1xf32, #tpu.memory_space<vmem>>, %arg5: memref<1x32x256xf32, #tpu.memory_space<vmem>>, %arg6: memref<1x32x256xbf16, #tpu.memory_space<vmem>>) attributes {dimension_semantics = [#tpu.dimension_semantics<parallel>, #tpu.dimension_semantics<parallel>], iteration_bounds = array<i64: 2, 1>, scalar_prefetch = 0 : i64, scratch_operands = 0 : i64, tpu.core_type = #tpu.core_type<tc>, window_params = [{transform_indices = @transform_0, window_bounds = array<i64: 1, 32, 256>}, {pipeline_mode = #tpu.pipeline_mode<synchronous>, transform_indices = @transform_1, window_bounds = array<i64: 32, 32>}, {pipeline_mode = #tpu.pipeline_mode<synchronous>, transform_indices = @transform_2, window_bounds = array<i64: 32, 1>}, {transform_indices = @transform_3, window_bounds = array<i64: 1, 32, 256>}, {transform_indices = @transform_4, window_bounds = array<i64: 1, 32, 256>}]} {
    %c0 = arith.constant 0 : index
    %c0_0 = arith.constant 0 : index
    %c0_1 = arith.constant 0 : index
    %0 = vector.load %arg2[%c0, %c0_0, %c0_1] : memref<1x32x256xbf16, #tpu.memory_space<vmem>>, vector<1x32x256xbf16>
    %1 = vector.shape_cast %0 : vector<1x32x256xbf16> to vector<32x256xbf16>
    %c0_2 = arith.constant 0 : index
    %c0_3 = arith.constant 0 : index
    %2 = vector.load %arg3[%c0_2, %c0_3] : memref<32x32xbf16, #tpu.memory_space<vmem>>, vector<32x32xbf16>
    %cst = arith.constant dense<0.000000e+00> : vector<32x256xf32>
    %3 = tpu.matmul %2, %1, %cst {dimension_numbers = #tpu.dot_dimension_numbers<[1], [0], [0], [1], [0, 0, 1, 1], [], []>} : vector<32x32xbf16>, vector<32x256xbf16>, vector<32x256xf32> -> vector<32x256xf32>
    %c0_4 = arith.constant 0 : index
    %c0_5 = arith.constant 0 : index
    %4 = vector.load %arg4[%c0_4, %c0_5] : memref<32x1xf32, #tpu.memory_space<vmem>>, vector<32x1xf32>
    %5 = vector.broadcast %4 : vector<32x1xf32> to vector<32x256xf32>
    %6 = arith.addf %3, %5 : vector<32x256xf32>
    %c0_6 = arith.constant 0 : index
    %c0_7 = arith.constant 0 : index
    %c0_8 = arith.constant 0 : index
    %7 = vector.load %arg5[%c0_6, %c0_7, %c0_8] : memref<1x32x256xf32, #tpu.memory_space<vmem>>, vector<1x32x256xf32>
    %8 = vector.shape_cast %7 : vector<1x32x256xf32> to vector<32x256xf32>
    %9 = arith.addf %6, %8 : vector<32x256xf32>
    %10 = arith.truncf %9 : vector<32x256xf32> to vector<32x256xbf16>
    %c0_9 = arith.constant 0 : index
    %c0_10 = arith.constant 0 : index
    %c0_11 = arith.constant 0 : index
    %11 = vector.load %arg6[%c0_9, %c0_10, %c0_11] : memref<1x32x256xbf16, #tpu.memory_space<vmem>>, vector<1x32x256xbf16>
    %12 = vector.shape_cast %11 : vector<1x32x256xbf16> to vector<32x256xbf16>
    %13 = vector.shape_cast %10 : vector<32x256xbf16> to vector<1x32x256xbf16>
    tpu.vector_store %arg6[%c0_9, %c0_10, %c0_11], %13 {strides = array<i32>} : memref<1x32x256xbf16, #tpu.memory_space<vmem>>, vector<1x32x256xbf16>,
    return
  }
  func.func @transform_0(%arg0: i32, %arg1: i32) -> (i32, i32, i32) {
    %c0_i32 = arith.constant 0 : i32
    %c0_i32_0 = arith.constant 0 : i32
    return %arg0, %c0_i32, %arg1 : i32, i32, i32
  }
  func.func @transform_1(%arg0: i32, %arg1: i32) -> (i32, i32) {
    %c0_i32 = arith.constant 0 : i32
    %c0_i32_0 = arith.constant 0 : i32
    %c0_i32_1 = arith.constant 0 : i32
    return %c0_i32, %c0_i32_0 : i32, i32
  }
  func.func @transform_2(%arg0: i32, %arg1: i32) -> (i32, i32) {
    %c0_i32 = arith.constant 0 : i32
    %c0_i32_0 = arith.constant 0 : i32
    %c0_i32_1 = arith.constant 0 : i32
    return %c0_i32, %c0_i32_0 : i32, i32
  }
  func.func @transform_3(%arg0: i32, %arg1: i32) -> (i32, i32, i32) {
    %c0_i32 = arith.constant 0 : i32
    %c0_i32_0 = arith.constant 0 : i32
    return %arg0, %c0_i32, %arg1 : i32, i32, i32
  }
  func.func @transform_4(%arg0: i32, %arg1: i32) -> (i32, i32, i32) {
    %c0_i32 = arith.constant 0 : i32
    %c0_i32_0 = arith.constant 0 : i32
    return %arg0, %c0_i32, %arg1 : i32, i32, i32
  }
}

module attributes {stable_mosaic.version = 11 : i64} {
  func.func @_head_kernel(%arg0: i32, %arg1: i32, %arg2: memref<1x32x256xbf16, #tpu.memory_space<vmem>>, %arg3: memref<128x32xbf16, #tpu.memory_space<vmem>>, %arg4: memref<128x1xf32, #tpu.memory_space<vmem>>, %arg5: memref<3x128xbf16, #tpu.memory_space<vmem>>, %arg6: memref<3x1xf32, #tpu.memory_space<vmem>>, %arg7: memref<1x3x256xf32, #tpu.memory_space<vmem>>, %arg8: memref<128x256xbf16, #tpu.memory_space<vmem>>) attributes {dimension_semantics = [#tpu.dimension_semantics<parallel>, #tpu.dimension_semantics<parallel>], iteration_bounds = array<i64: 2, 1>, scalar_prefetch = 0 : i64, scratch_operands = 1 : i64, tpu.core_type = #tpu.core_type<tc>, window_params = [{transform_indices = @transform_0, window_bounds = array<i64: 1, 32, 256>}, {pipeline_mode = #tpu.pipeline_mode<synchronous>, transform_indices = @transform_1, window_bounds = array<i64: 128, 32>}, {pipeline_mode = #tpu.pipeline_mode<synchronous>, transform_indices = @transform_2, window_bounds = array<i64: 128, 1>}, {pipeline_mode = #tpu.pipeline_mode<synchronous>, transform_indices = @transform_3, window_bounds = array<i64: 3, 128>}, {pipeline_mode = #tpu.pipeline_mode<synchronous>, transform_indices = @transform_4, window_bounds = array<i64: 3, 1>}, {transform_indices = @transform_5, window_bounds = array<i64: 1, 3, 256>}]} {
    %c0 = arith.constant 0 : index
    %c0_0 = arith.constant 0 : index
    %c0_1 = arith.constant 0 : index
    %0 = vector.load %arg2[%c0, %c0_0, %c0_1] : memref<1x32x256xbf16, #tpu.memory_space<vmem>>, vector<1x32x256xbf16>
    %1 = vector.shape_cast %0 : vector<1x32x256xbf16> to vector<32x256xbf16>
    %c0_2 = arith.constant 0 : index
    %c0_3 = arith.constant 0 : index
    %2 = vector.load %arg3[%c0_2, %c0_3] : memref<128x32xbf16, #tpu.memory_space<vmem>>, vector<128x32xbf16>
    %cst = arith.constant dense<0.000000e+00> : vector<128x256xf32>
    %3 = tpu.matmul %2, %1, %cst {dimension_numbers = #tpu.dot_dimension_numbers<[1], [0], [0], [1], [0, 0, 1, 1], [], []>} : vector<128x32xbf16>, vector<32x256xbf16>, vector<128x256xf32> -> vector<128x256xf32>
    %c0_4 = arith.constant 0 : index
    %c0_5 = arith.constant 0 : index
    %4 = vector.load %arg4[%c0_4, %c0_5] : memref<128x1xf32, #tpu.memory_space<vmem>>, vector<128x1xf32>
    %5 = vector.broadcast %4 : vector<128x1xf32> to vector<128x256xf32>
    %6 = arith.addf %3, %5 : vector<128x256xf32>
    %cst_6 = arith.constant 5.000000e-01 : f32
    %7 = vector.broadcast %cst_6 : f32 to vector<128x256xf32>
    %8 = arith.mulf %7, %6 : vector<128x256xf32>
    %cst_7 = arith.constant 0.707106769 : f32
    %9 = vector.broadcast %cst_7 : f32 to vector<128x256xf32>
    %10 = arith.mulf %6, %9 : vector<128x256xf32>
    %11 = math.erf %10 : vector<128x256xf32>
    %cst_8 = arith.constant 1.000000e+00 : f32
    %12 = vector.broadcast %cst_8 : f32 to vector<128x256xf32>
    %13 = arith.addf %12, %11 : vector<128x256xf32>
    %14 = arith.mulf %8, %13 : vector<128x256xf32>
    %15 = arith.truncf %14 : vector<128x256xf32> to vector<128x256xbf16>
    %c0_9 = arith.constant 0 : index
    %c0_10 = arith.constant 0 : index
    %16 = vector.load %arg8[%c0_9, %c0_10] : memref<128x256xbf16, #tpu.memory_space<vmem>>, vector<128x256xbf16>
    tpu.vector_store %arg8[%c0_9, %c0_10], %15 {strides = array<i32>} : memref<128x256xbf16, #tpu.memory_space<vmem>>, vector<128x256xbf16>,
    %c0_11 = arith.constant 0 : index
    %c0_12 = arith.constant 0 : index
    %17 = vector.load %arg5[%c0_11, %c0_12] : memref<3x128xbf16, #tpu.memory_space<vmem>>, vector<3x128xbf16>
    %c0_13 = arith.constant 0 : index
    %c0_14 = arith.constant 0 : index
    %18 = vector.load %arg8[%c0_13, %c0_14] : memref<128x256xbf16, #tpu.memory_space<vmem>>, vector<128x256xbf16>
    %cst_15 = arith.constant dense<0.000000e+00> : vector<3x256xf32>
    %19 = tpu.matmul %17, %18, %cst_15 {dimension_numbers = #tpu.dot_dimension_numbers<[1], [0], [0], [1], [0, 0, 1, 1], [], []>} : vector<3x128xbf16>, vector<128x256xbf16>, vector<3x256xf32> -> vector<3x256xf32>
    %c0_16 = arith.constant 0 : index
    %c0_17 = arith.constant 0 : index
    %20 = vector.load %arg6[%c0_16, %c0_17] : memref<3x1xf32, #tpu.memory_space<vmem>>, vector<3x1xf32>
    %21 = vector.broadcast %20 : vector<3x1xf32> to vector<3x256xf32>
    %22 = arith.addf %19, %21 : vector<3x256xf32>
    %c0_18 = arith.constant 0 : index
    %c0_19 = arith.constant 0 : index
    %c0_20 = arith.constant 0 : index
    %23 = vector.load %arg7[%c0_18, %c0_19, %c0_20] : memref<1x3x256xf32, #tpu.memory_space<vmem>>, vector<1x3x256xf32>
    %24 = vector.shape_cast %23 : vector<1x3x256xf32> to vector<3x256xf32>
    %25 = vector.shape_cast %22 : vector<3x256xf32> to vector<1x3x256xf32>
    tpu.vector_store %arg7[%c0_18, %c0_19, %c0_20], %25 {strides = array<i32>} : memref<1x3x256xf32, #tpu.memory_space<vmem>>, vector<1x3x256xf32>,
    return
  }
  func.func @transform_0(%arg0: i32, %arg1: i32) -> (i32, i32, i32) {
    %c0_i32 = arith.constant 0 : i32
    %c0_i32_0 = arith.constant 0 : i32
    return %arg0, %c0_i32, %arg1 : i32, i32, i32
  }
  func.func @transform_1(%arg0: i32, %arg1: i32) -> (i32, i32) {
    %c0_i32 = arith.constant 0 : i32
    %c0_i32_0 = arith.constant 0 : i32
    %c0_i32_1 = arith.constant 0 : i32
    return %c0_i32, %c0_i32_0 : i32, i32
  }
  func.func @transform_2(%arg0: i32, %arg1: i32) -> (i32, i32) {
    %c0_i32 = arith.constant 0 : i32
    %c0_i32_0 = arith.constant 0 : i32
    %c0_i32_1 = arith.constant 0 : i32
    return %c0_i32, %c0_i32_0 : i32, i32
  }
  func.func @transform_3(%arg0: i32, %arg1: i32) -> (i32, i32) {
    %c0_i32 = arith.constant 0 : i32
    %c0_i32_0 = arith.constant 0 : i32
    %c0_i32_1 = arith.constant 0 : i32
    return %c0_i32, %c0_i32_0 : i32, i32
  }
  func.func @transform_4(%arg0: i32, %arg1: i32) -> (i32, i32) {
    %c0_i32 = arith.constant 0 : i32
    %c0_i32_0 = arith.constant 0 : i32
    %c0_i32_1 = arith.constant 0 : i32
    return %c0_i32, %c0_i32_0 : i32, i32
  }
  func.func @transform_5(%arg0: i32, %arg1: i32) -> (i32, i32, i32) {
    %c0_i32 = arith.constant 0 : i32
    %c0_i32_0 = arith.constant 0 : i32
    return %arg0, %c0_i32, %arg1 : i32, i32, i32
  }
}

</mosaic_0001>

<bundles_post_ra>
// kernel: fno2d_forward.10
= control target key start
LH: loop header
LB: loop body
LE: loop exit
PB: predicated region body
PF: predicated region fallthrough
CT: control target
= control target key end

     0   :  { %s545_s12 = smov 0   ;;  %s547_s13 = smov 0   ;;  %s600_s0 = inlined_call_operand.vmem [shape: f32[2,17,256], index: 0, kind: input, shape index: {}]   ;;  %s601_s1 = inlined_call_operand.vmem [shape: bf16[32,17], index: 1, kind: input, shape index: {}]   ;;  %s602_s2 = inlined_call_operand.vmem [shape: f32[32,1], index: 2, kind: input, shape index: {}]   ;;  %s603_s3 = inlined_call_operand.vmem [shape: bf16[2,32,256], index: 3, kind: output, shape index: {}]  }
   0x1   :  { %s549_s14 = smov 0  }
   0x2 LB: > { %s25_s15 = sadd.s32 1, %s518_s13  ;;  %p447_p0 = scmp.ge.s32.totalorder %s522_s14, 1  ;;  %s522_s14 = sphi %s549_s14, %s13_s14   ;;  %s518_s13 = sphi %s547_s13, %s605_s13   ;;  %s514_s12 = sphi %s545_s12, %s604_s12  }
   0x3   : > { %p27_p1 = scmp.ge.s32.totalorder %s25_s15, 2  ;;  %p158_p2 = scmp.lt.s32.totalorder %s522_s14, 3 }
   0x5   : > { %s607_s15 = smov (%p27_p1, %s25_s15), 0  ;;  %p159_p3 = pnand %p447_p0, %p158_p2 }
   0x6   : > { %p191_p4 = scmp.lt.s32.totalorder (!%p159_p3), %s514_s12, 1  ;;  %v524_v0 = vmov (!%p159_p3), 0   ;;  %v227_v1 = vld [vmem:[%s602_s2 + $0x10] sm:$0xff] (!%p159_p3)  ;;  %v225_v2 = vld [vmem:[%s602_s2] sm:$0xff] (!%p159_p3)  ;;  %v228_v3 = vld [vmem:[%s602_s2 + $0x18] sm:$0xff] (!%p159_p3)  ;;  %vm266_vm0 = vcmask (!%p159_p3), 1040384  }
   0x7   : > { %162 = sbr.rel (%p159_p3) target bundleno = 249 (0xf9), region = 32  ;;  %307 = vmatprep.mubr.bf16.mxu0 (!%p159_p3), %v524_v0  ;;  %317 = vmatprep.mubr.bf16.mxu1 (!%p159_p3), %v524_v0  ;;  %v226_v4 = vld [vmem:[%s602_s2 + $0x8] sm:$0xff] (!%p159_p3)  ;;  %v268_v11 = vsel (!%p159_p3), %vm266_vm0, 65535, %v524_v0  ;;  %v498_v18 = vld [vmem:[%s601_s1] sm:$0xff] (!%p159_p3)   ;;  %vm259_vm1 = vcmask (!%p159_p3), 138240  }
   0x8   : > { %497 = vset.pattern.permute.xlu1 (!%p159_p3), %v524_v0  ;;  %496 = vset.pattern.permute.xlu0 (!%p159_p3), %v524_v0  ;;  %v499_v19 = vld [vmem:[%s601_s1 + $0x8] sm:$0xff] (!%p159_p3)  }
   0x9   : > { %241 = vperm.xlu1 (!%p159_p3), %497, %v227_v1   ;;  %231 = vperm.xlu0 (!%p159_p3), %496, %v225_v2  }
   0xd   : > { %246 = vperm.xlu1 (!%p159_p3), %497, %v228_v3   ;;  %236 = vperm.xlu0 (!%p159_p3), %496, %v226_v4  }
   0xe   : > { %s609_s12 = smov (!%p191_p4, %s514_s12), 1 }
   0xf   : > { %s470_s20 = smul.u32 48, %s609_s12  ;;  %s461_s5 = sshll.u32 %s609_s12, 5 }
  0x10   : > { %s208_s8 = scalar_lea.vmem %s603_s3, %s461_s5 }
  0x11   : > { %s198_s27 = scalar_lea.vmem %s600_s0, %s470_s20 }
  0x12   : > { %v212_v5 = vld [vmem:[%s198_s27 + $0x8] sm:$0xff]  ;;  %v214_v6 = vld [vmem:[%s198_s27 + $0x18] sm:$0xff]  ;;  %v211_v7 = vld [vmem:[%s198_s27] sm:$0xff] }
  0x13   : > { %v218_v8 = vpack.c.bf16 %v214_v6, %v212_v5  ;;  %v213_v9 = vld [vmem:[%s198_s27 + $0x10] sm:$0xff]  ;;  %v216_v10 = vld [vmem:[%s198_s27 + $0x28] sm:$0x1]  ;;  %v215_v12 = vld [vmem:[%s198_s27 + $0x20] sm:$0x1] }
  0x14   : > { %v217_v13 = vpack.c.bf16 %v213_v9, %v211_v7  ;;  %v220_v14 = vpack.c.bf16 %v216_v10, %v216_v10  ;;  %v219_v15 = vpack.c.bf16 %v215_v12, %v215_v12 }
  0x15   : > { %275 = vmatprep.subr.bf16.mxu0 %v218_v8  ;;  %466 = vmatprep.subr.bf16.mxu1 %v218_v8 }
  0x16   : > { %276 = vmatpush1.bf16.msra.mxu0 %v217_v13  ;;  %468 = vmatpush1.bf16.msra.mxu1 %v217_v13  ;;  %v273_v16 = vand.u32 %v268_v11, %v220_v14  ;;  %v270_v17 = vand.u32 %v268_v11, %v219_v15 }
  0x18   : > { %277 = vmatprep.subr.bf16.mxu0 %v273_v16  ;;  %467 = vmatprep.subr.bf16.mxu1 %v273_v16 }
  0x1a   : > { %278 = vmatpush1.bf16.msra.mxu0 %v270_v17  ;;  %469 = vmatpush1.bf16.msra.mxu1 %v270_v17 }
  0x1d   : > { %453 = vmatmul.mubr.msk.bf16.vlgmr.msra.gmra.mrb[0].mxu0 %vm259_vm1, %v498_v18  ;;  %454 = vmatmul.mubr.msk.bf16.vlgmr.msra.gmra.mrb[0].mxu1 %vm259_vm1, %v499_v19 }
  0x88   : > { %v242_v20 = vpop.permute.xlu1 %241  ;;  %v232_v21 = vpop.permute.xlu0 %231 }
  0x8c   : > { %v247_v22 = vpop.permute.xlu1 %246  ;;  %v237_v23 = vpop.permute.xlu0 %236 }
  0xf0   : > { %v309_v24 = vpop.f32.mrb[0].mxu0  ;;  %v319_v25 = vpop.f32.mrb[0].mxu1 }
  0xf1   : > { %v310_v26 = vadd.f32 %v309_v24, %v232_v21  ;;  %v320_v27 = vadd.f32 %v319_v25, %v242_v20  ;;  %v311_v28 = vpop.f32.mrb[1].mxu0  ;;  %v321_v29 = vpop.f32.mrb[1].mxu1 }
  0xf2   : > { %v312_v30 = vadd.f32 %v311_v28, %v232_v21  ;;  %v322_v31 = vadd.f32 %v321_v29, %v242_v20  ;;  %v313_v32 = vpop.f32.mrb[2].mxu0  ;;  %v323_v33 = vpop.f32.mrb[2].mxu1 }
  0xf3   : > { %v314_v34 = vadd.f32 %v313_v32, %v237_v23  ;;  %v324_v35 = vadd.f32 %v323_v33, %v247_v22  ;;  %v315_v36 = vpop.f32.mrb[3].mxu0  ;;  %v325_v37 = vpop.f32.mrb[3].mxu1 }
  0xf4   : > { %v462_v38 = vpack.c.bf16 %v312_v30, %v310_v26  ;;  %v464_v39 = vpack.c.bf16 %v322_v31, %v320_v27  ;;  %v316_v40 = vadd.f32 %v315_v36, %v237_v23  ;;  %v326_v41 = vadd.f32 %v325_v37, %v247_v22 }
  0xf6   : > { %352 = vst [vmem:[%s208_s8] sm:$0xff] %v462_v38  ;;  %354 = vst [vmem:[%s208_s8 + $0x10] sm:$0xff] %v464_v39  ;;  %v463_v42 = vpack.c.bf16 %v316_v40, %v314_v34  ;;  %v465_v43 = vpack.c.bf16 %v326_v41, %v324_v35 }
  0xf8   : > { %353 = vst [vmem:[%s208_s8 + $0x8] sm:$0xff] %v463_v42  ;;  %355 = vst [vmem:[%s208_s8 + $0x18] sm:$0xff] %v465_v43 }
  0xf9 PF: > { %s13_s14 = sadd.s32 1, %s522_s14   ;;  %s604_s12 = smov %s518_s13 }
  0xfa   : > { %p10_p5 = scmp.ge.s32.totalorder %s13_s14, 4   ;;  %s605_s13 = smov %s607_s15 }
  0xfc   :  { %12 = sbr.rel (!%p10_p5) target bundleno = 2 (0x2), region = 62 }

// kernel: custom-call.3
= control target key start
LH: loop header
LB: loop body
LE: loop exit
PB: predicated region body
PF: predicated region fallthrough
CT: control target
= control target key end

     0   :  { %s841_s0 = inlined_call_operand.vmem [shape: c64[32,32,4,4], index: 0, kind: input, shape index: {}]   ;;  %s842_s1 = inlined_call_operand.vmem [shape: f32[32,32,4,4], index: 1, kind: output, shape index: {}]  }
   0x1   :  { %v320_v0 = vld [vmem:[%s841_s0 + $0x200] sm:$0xff]  ;;  %v321_v1 = vld [vmem:[%s841_s0 + $0x208] sm:$0xff]  ;;  %v323_v2 = vld [vmem:[%s841_s0 + $0x210] sm:$0xff] }
   0x2   :  { %4 = vst [vmem:[%s842_s1] sm:$0xff] %v320_v0  ;;  %322 = vst [vmem:[%s842_s1 + $0x8] sm:$0xff] %v321_v1  ;;  %v325_v3 = vld [vmem:[%s841_s0 + $0x218] sm:$0xff]  ;;  %v327_v4 = vld [vmem:[%s841_s0 + $0x220] sm:$0xff] }
   0x3   :  { %324 = vst [vmem:[%s842_s1 + $0x10] sm:$0xff] %v323_v2  ;;  %v329_v5 = vld [vmem:[%s841_s0 + $0x228] sm:$0xff]  ;;  %326 = vst [vmem:[%s842_s1 + $0x18] sm:$0xff] %v325_v3  ;;  %v331_v6 = vld [vmem:[%s841_s0 + $0x230] sm:$0xff] }
   0x4   :  { %328 = vst [vmem:[%s842_s1 + $0x20] sm:$0xff] %v327_v4  ;;  %330 = vst [vmem:[%s842_s1 + $0x28] sm:$0xff] %v329_v5  ;;  %v333_v7 = vld [vmem:[%s841_s0 + $0x238] sm:$0xff]  ;;  %v335_v8 = vld [vmem:[%s841_s0 + $0x240] sm:$0xff] }
   0x5   :  { %332 = vst [vmem:[%s842_s1 + $0x30] sm:$0xff] %v331_v6  ;;  %334 = vst [vmem:[%s842_s1 + $0x38] sm:$0xff] %v333_v7  ;;  %v337_v9 = vld [vmem:[%s841_s0 + $0x248] sm:$0xff]  ;;  %v339_v10 = vld [vmem:[%s841_s0 + $0x250] sm:$0xff] }
   0x6   :  { %336 = vst [vmem:[%s842_s1 + $0x40] sm:$0xff] %v335_v8  ;;  %v341_v11 = vld [vmem:[%s841_s0 + $0x258] sm:$0xff]  ;;  %338 = vst [vmem:[%s842_s1 + $0x48] sm:$0xff] %v337_v9  ;;  %v343_v12 = vld [vmem:[%s841_s0 + $0x260] sm:$0xff] }
   0x7   :  { %340 = vst [vmem:[%s842_s1 + $0x50] sm:$0xff] %v339_v10  ;;  %342 = vst [vmem:[%s842_s1 + $0x58] sm:$0xff] %v341_v11  ;;  %v345_v13 = vld [vmem:[%s841_s0 + $0x268] sm:$0xff]  ;;  %v347_v14 = vld [vmem:[%s841_s0 + $0x270] sm:$0xff] }
   0x8   :  { %344 = vst [vmem:[%s842_s1 + $0x60] sm:$0xff] %v343_v12  ;;  %346 = vst [vmem:[%s842_s1 + $0x68] sm:$0xff] %v345_v13  ;;  %v349_v15 = vld [vmem:[%s841_s0 + $0x278] sm:$0xff]  ;;  %v351_v16 = vld [vmem:[%s841_s0 + $0x280] sm:$0xff] }
   0x9   :  { %348 = vst [vmem:[%s842_s1 + $0x70] sm:$0xff] %v347_v14  ;;  %v353_v17 = vld [vmem:[%s841_s0 + $0x288] sm:$0xff]  ;;  %350 = vst [vmem:[%s842_s1 + $0x78] sm:$0xff] %v349_v15  ;;  %v355_v18 = vld [vmem:[%s841_s0 + $0x290] sm:$0xff] }
   0xa   :  { %352 = vst [vmem:[%s842_s1 + $0x80] sm:$0xff] %v351_v16  ;;  %354 = vst [vmem:[%s842_s1 + $0x88] sm:$0xff] %v353_v17  ;;  %v357_v19 = vld [vmem:[%s841_s0 + $0x298] sm:$0xff]  ;;  %v359_v20 = vld [vmem:[%s841_s0 + $0x2a0] sm:$0xff] }
   0xb   :  { %356 = vst [vmem:[%s842_s1 + $0x90] sm:$0xff] %v355_v18  ;;  %358 = vst [vmem:[%s842_s1 + $0x98] sm:$0xff] %v357_v19  ;;  %v361_v21 = vld [vmem:[%s841_s0 + $0x2a8] sm:$0xff]  ;;  %v363_v22 = vld [vmem:[%s841_s0 + $0x2b0] sm:$0xff] }
   0xc   :  { %360 = vst [vmem:[%s842_s1 + $0xa0] sm:$0xff] %v359_v20  ;;  %v365_v23 = vld [vmem:[%s841_s0 + $0x2b8] sm:$0xff]  ;;  %362 = vst [vmem:[%s842_s1 + $0xa8] sm:$0xff] %v361_v21  ;;  %v367_v24 = vld [vmem:[%s841_s0 + $0x2c0] sm:$0xff] }
   0xd   :  { %364 = vst [vmem:[%s842_s1 + $0xb0] sm:$0xff] %v363_v22  ;;  %366 = vst [vmem:[%s842_s1 + $0xb8] sm:$0xff] %v365_v23  ;;  %v369_v25 = vld [vmem:[%s841_s0 + $0x2c8] sm:$0xff]  ;;  %v371_v26 = vld [vmem:[%s841_s0 + $0x2d0] sm:$0xff] }
   0xe   :  { %368 = vst [vmem:[%s842_s1 + $0xc0] sm:$0xff] %v367_v24  ;;  %370 = vst [vmem:[%s842_s1 + $0xc8] sm:$0xff] %v369_v25  ;;  %v373_v27 = vld [vmem:[%s841_s0 + $0x2d8] sm:$0xff]  ;;  %v375_v28 = vld [vmem:[%s841_s0 + $0x2e0] sm:$0xff] }
   0xf   :  { %372 = vst [vmem:[%s842_s1 + $0xd0] sm:$0xff] %v371_v26  ;;  %v377_v29 = vld [vmem:[%s841_s0 + $0x2e8] sm:$0xff]  ;;  %374 = vst [vmem:[%s842_s1 + $0xd8] sm:$0xff] %v373_v27  ;;  %v379_v30 = vld [vmem:[%s841_s0 + $0x2f0] sm:$0xff] }
  0x10   :  { %376 = vst [vmem:[%s842_s1 + $0xe0] sm:$0xff] %v375_v28  ;;  %378 = vst [vmem:[%s842_s1 + $0xe8] sm:$0xff] %v377_v29  ;;  %v381_v31 = vld [vmem:[%s841_s0 + $0x2f8] sm:$0xff]  ;;  %v383_v32 = vld [vmem:[%s841_s0 + $0x300] sm:$0xff] }
  0x11   :  { %380 = vst [vmem:[%s842_s1 + $0xf0] sm:$0xff] %v379_v30  ;;  %382 = vst [vmem:[%s842_s1 + $0xf8] sm:$0xff] %v381_v31  ;;  %v385_v33 = vld [vmem:[%s841_s0 + $0x308] sm:$0xff]  ;;  %v387_v34 = vld [vmem:[%s841_s0 + $0x310] sm:$0xff] }
  0x12   :  { %384 = vst [vmem:[%s842_s1 + $0x100] sm:$0xff] %v383_v32  ;;  %v389_v35 = vld [vmem:[%s841_s0 + $0x318] sm:$0xff]  ;;  %386 = vst [vmem:[%s842_s1 + $0x108] sm:$0xff] %v385_v33  ;;  %v391_v36 = vld [vmem:[%s841_s0 + $0x320] sm:$0xff] }
  0x13   :  { %388 = vst [vmem:[%s842_s1 + $0x110] sm:$0xff] %v387_v34  ;;  %390 = vst [vmem:[%s842_s1 + $0x118] sm:$0xff] %v389_v35  ;;  %v393_v37 = vld [vmem:[%s841_s0 + $0x328] sm:$0xff]  ;;  %v395_v38 = vld [vmem:[%s841_s0 + $0x330] sm:$0xff] }
  0x14   :  { %392 = vst [vmem:[%s842_s1 + $0x120] sm:$0xff] %v391_v36  ;;  %394 = vst [vmem:[%s842_s1 + $0x128] sm:$0xff] %v393_v37  ;;  %v397_v39 = vld [vmem:[%s841_s0 + $0x338] sm:$0xff]  ;;  %v399_v40 = vld [vmem:[%s841_s0 + $0x340] sm:$0xff] }
  0x15   :  { %396 = vst [vmem:[%s842_s1 + $0x130] sm:$0xff] %v395_v38  ;;  %v401_v41 = vld [vmem:[%s841_s0 + $0x348] sm:$0xff]  ;;  %398 = vst [vmem:[%s842_s1 + $0x138] sm:$0xff] %v397_v39  ;;  %v403_v42 = vld [vmem:[%s841_s0 + $0x350] sm:$0xff] }
  0x16   :  { %400 = vst [vmem:[%s842_s1 + $0x140] sm:$0xff] %v399_v40  ;;  %402 = vst [vmem:[%s842_s1 + $0x148] sm:$0xff] %v401_v41  ;;  %v405_v43 = vld [vmem:[%s841_s0 + $0x358] sm:$0xff]  ;;  %v407_v44 = vld [vmem:[%s841_s0 + $0x360] sm:$0xff] }
  0x17   :  { %404 = vst [vmem:[%s842_s1 + $0x150] sm:$0xff] %v403_v42  ;;  %406 = vst [vmem:[%s842_s1 + $0x158] sm:$0xff] %v405_v43  ;;  %v409_v45 = vld [vmem:[%s841_s0 + $0x368] sm:$0xff]  ;;  %v411_v46 = vld [vmem:[%s841_s0 + $0x370] sm:$0xff] }
  0x18   :  { %408 = vst [vmem:[%s842_s1 + $0x160] sm:$0xff] %v407_v44  ;;  %v413_v47 = vld [vmem:[%s841_s0 + $0x378] sm:$0xff]  ;;  %410 = vst [vmem:[%s842_s1 + $0x168] sm:$0xff] %v409_v45  ;;  %v415_v48 = vld [vmem:[%s841_s0 + $0x380] sm:$0xff] }
  0x19   :  { %412 = vst [vmem:[%s842_s1 + $0x170] sm:$0xff] %v411_v46  ;;  %414 = vst [vmem:[%s842_s1 + $0x178] sm:$0xff] %v413_v47  ;;  %v417_v49 = vld [vmem:[%s841_s0 + $0x388] sm:$0xff]  ;;  %v419_v50 = vld [vmem:[%s841_s0 + $0x390] sm:$0xff] }
  0x1a   :  { %416 = vst [vmem:[%s842_s1 + $0x180] sm:$0xff] %v415_v48  ;;  %418 = vst [vmem:[%s842_s1 + $0x188] sm:$0xff] %v417_v49  ;;  %v421_v51 = vld [vmem:[%s841_s0 + $0x398] sm:$0xff]  ;;  %v423_v52 = vld [vmem:[%s841_s0 + $0x3a0] sm:$0xff] }
  0x1b   :  { %420 = vst [vmem:[%s842_s1 + $0x190] sm:$0xff] %v419_v50  ;;  %v425_v53 = vld [vmem:[%s841_s0 + $0x3a8] sm:$0xff]  ;;  %422 = vst [vmem:[%s842_s1 + $0x198] sm:$0xff] %v421_v51  ;;  %v427_v54 = vld [vmem:[%s841_s0 + $0x3b0] sm:$0xff] }
  0x1c   :  { %424 = vst [vmem:[%s842_s1 + $0x1a0] sm:$0xff] %v423_v52  ;;  %426 = vst [vmem:[%s842_s1 + $0x1a8] sm:$0xff] %v425_v53  ;;  %v429_v55 = vld [vmem:[%s841_s0 + $0x3b8] sm:$0xff]  ;;  %v431_v56 = vld [vmem:[%s841_s0 + $0x3c0] sm:$0xff] }
  0x1d   :  { %428 = vst [vmem:[%s842_s1 + $0x1b0] sm:$0xff] %v427_v54  ;;  %430 = vst [vmem:[%s842_s1 + $0x1b8] sm:$0xff] %v429_v55  ;;  %v433_v57 = vld [vmem:[%s841_s0 + $0x3c8] sm:$0xff]  ;;  %v435_v58 = vld [vmem:[%s841_s0 + $0x3d0] sm:$0xff] }
  0x1e   :  { %432 = vst [vmem:[%s842_s1 + $0x1c0] sm:$0xff] %v431_v56  ;;  %v437_v59 = vld [vmem:[%s841_s0 + $0x3d8] sm:$0xff]  ;;  %434 = vst [vmem:[%s842_s1 + $0x1c8] sm:$0xff] %v433_v57  ;;  %v439_v60 = vld [vmem:[%s841_s0 + $0x3e0] sm:$0xff] }
  0x1f   :  { %436 = vst [vmem:[%s842_s1 + $0x1d0] sm:$0xff] %v435_v58  ;;  %438 = vst [vmem:[%s842_s1 + $0x1d8] sm:$0xff] %v437_v59  ;;  %v441_v61 = vld [vmem:[%s841_s0 + $0x3e8] sm:$0xff]  ;;  %v443_v62 = vld [vmem:[%s841_s0 + $0x3f0] sm:$0xff] }
  0x20   :  { %440 = vst [vmem:[%s842_s1 + $0x1e0] sm:$0xff] %v439_v60  ;;  %442 = vst [vmem:[%s842_s1 + $0x1e8] sm:$0xff] %v441_v61  ;;  %v445_v63 = vld [vmem:[%s841_s0 + $0x3f8] sm:$0xff] }
  0x21   :  { %444 = vst [vmem:[%s842_s1 + $0x1f0] sm:$0xff] %v443_v62  ;;  %446 = vst [vmem:[%s842_s1 + $0x1f8] sm:$0xff] %v445_v63 }

// kernel: custom-call.2
= control target key start
LH: loop header
LB: loop body
LE: loop exit
PB: predicated region body
PF: predicated region fallthrough
CT: control target
= control target key end

     0   :  { %s776_s0 = inlined_call_operand.vmem [shape: c64[32,32,4,4], index: 0, kind: input, shape index: {}]   ;;  %s777_s1 = inlined_call_operand.vmem [shape: f32[32,32,4,4], index: 1, kind: output, shape index: {}]  }
   0x1   :  { %v2_v0 = vld [vmem:[%s776_s0] sm:$0xff]  ;;  %v256_v1 = vld [vmem:[%s776_s0 + $0x8] sm:$0xff]  ;;  %v258_v2 = vld [vmem:[%s776_s0 + $0x10] sm:$0xff] }
   0x2   :  { %3 = vst [vmem:[%s777_s1] sm:$0xff] %v2_v0  ;;  %257 = vst [vmem:[%s777_s1 + $0x8] sm:$0xff] %v256_v1  ;;  %v260_v3 = vld [vmem:[%s776_s0 + $0x18] sm:$0xff]  ;;  %v262_v4 = vld [vmem:[%s776_s0 + $0x20] sm:$0xff] }
   0x3   :  { %259 = vst [vmem:[%s777_s1 + $0x10] sm:$0xff] %v258_v2  ;;  %v264_v5 = vld [vmem:[%s776_s0 + $0x28] sm:$0xff]  ;;  %261 = vst [vmem:[%s777_s1 + $0x18] sm:$0xff] %v260_v3  ;;  %v266_v6 = vld [vmem:[%s776_s0 + $0x30] sm:$0xff] }
   0x4   :  { %263 = vst [vmem:[%s777_s1 + $0x20] sm:$0xff] %v262_v4  ;;  %265 = vst [vmem:[%s777_s1 + $0x28] sm:$0xff] %v264_v5  ;;  %v268_v7 = vld [vmem:[%s776_s0 + $0x38] sm:$0xff]  ;;  %v270_v8 = vld [vmem:[%s776_s0 + $0x40] sm:$0xff] }
   0x5   :  { %267 = vst [vmem:[%s777_s1 + $0x30] sm:$0xff] %v266_v6  ;;  %269 = vst [vmem:[%s777_s1 + $0x38] sm:$0xff] %v268_v7  ;;  %v272_v9 = vld [vmem:[%s776_s0 + $0x48] sm:$0xff]  ;;  %v274_v10 = vld [vmem:[%s776_s0 + $0x50] sm:$0xff] }
   0x6   :  { %271 = vst [vmem:[%s777_s1 + $0x40] sm:$0xff] %v270_v8  ;;  %v276_v11 = vld [vmem:[%s776_s0 + $0x58] sm:$0xff]  ;;  %273 = vst [vmem:[%s777_s1 + $0x48] sm:$0xff] %v272_v9  ;;  %v278_v12 = vld [vmem:[%s776_s0 + $0x60] sm:$0xff] }
   0x7   :  { %275 = vst [vmem:[%s777_s1 + $0x50] sm:$0xff] %v274_v10  ;;  %277 = vst [vmem:[%s777_s1 + $0x58] sm:$0xff] %v276_v11  ;;  %v280_v13 = vld [vmem:[%s776_s0 + $0x68] sm:$0xff]  ;;  %v282_v14 = vld [vmem:[%s776_s0 + $0x70] sm:$0xff] }
   0x8   :  { %279 = vst [vmem:[%s777_s1 + $0x60] sm:$0xff] %v278_v12  ;;  %281 = vst [vmem:[%s777_s1 + $0x68] sm:$0xff] %v280_v13  ;;  %v284_v15 = vld [vmem:[%s776_s0 + $0x78] sm:$0xff]  ;;  %v286_v16 = vld [vmem:[%s776_s0 + $0x80] sm:$0xff] }
   0x9   :  { %283 = vst [vmem:[%s777_s1 + $0x70] sm:$0xff] %v282_v14  ;;  %v288_v17 = vld [vmem:[%s776_s0 + $0x88] sm:$0xff]  ;;  %285 = vst [vmem:[%s777_s1 + $0x78] sm:$0xff] %v284_v15  ;;  %v290_v18 = vld [vmem:[%s776_s0 + $0x90] sm:$0xff] }
   0xa   :  { %287 = vst [vmem:[%s777_s1 + $0x80] sm:$0xff] %v286_v16  ;;  %289 = vst [vmem:[%s777_s1 + $0x88] sm:$0xff] %v288_v17  ;;  %v292_v19 = vld [vmem:[%s776_s0 + $0x98] sm:$0xff]  ;;  %v294_v20 = vld [vmem:[%s776_s0 + $0xa0] sm:$0xff] }
   0xb   :  { %291 = vst [vmem:[%s777_s1 + $0x90] sm:$0xff] %v290_v18  ;;  %293 = vst [vmem:[%s777_s1 + $0x98] sm:$0xff] %v292_v19  ;;  %v296_v21 = vld [vmem:[%s776_s0 + $0xa8] sm:$0xff]  ;;  %v298_v22 = vld [vmem:[%s776_s0 + $0xb0] sm:$0xff] }
   0xc   :  { %295 = vst [vmem:[%s777_s1 + $0xa0] sm:$0xff] %v294_v20  ;;  %v300_v23 = vld [vmem:[%s776_s0 + $0xb8] sm:$0xff]  ;;  %297 = vst [vmem:[%s777_s1 + $0xa8] sm:$0xff] %v296_v21  ;;  %v302_v24 = vld [vmem:[%s776_s0 + $0xc0] sm:$0xff] }
   0xd   :  { %299 = vst [vmem:[%s777_s1 + $0xb0] sm:$0xff] %v298_v22  ;;  %301 = vst [vmem:[%s777_s1 + $0xb8] sm:$0xff] %v300_v23  ;;  %v304_v25 = vld [vmem:[%s776_s0 + $0xc8] sm:$0xff]  ;;  %v306_v26 = vld [vmem:[%s776_s0 + $0xd0] sm:$0xff] }
   0xe   :  { %303 = vst [vmem:[%s777_s1 + $0xc0] sm:$0xff] %v302_v24  ;;  %305 = vst [vmem:[%s777_s1 + $0xc8] sm:$0xff] %v304_v25  ;;  %v308_v27 = vld [vmem:[%s776_s0 + $0xd8] sm:$0xff]  ;;  %v310_v28 = vld [vmem:[%s776_s0 + $0xe0] sm:$0xff] }
   0xf   :  { %307 = vst [vmem:[%s777_s1 + $0xd0] sm:$0xff] %v306_v26  ;;  %v312_v29 = vld [vmem:[%s776_s0 + $0xe8] sm:$0xff]  ;;  %309 = vst [vmem:[%s777_s1 + $0xd8] sm:$0xff] %v308_v27  ;;  %v314_v30 = vld [vmem:[%s776_s0 + $0xf0] sm:$0xff] }
  0x10   :  { %311 = vst [vmem:[%s777_s1 + $0xe0] sm:$0xff] %v310_v28  ;;  %313 = vst [vmem:[%s777_s1 + $0xe8] sm:$0xff] %v312_v29  ;;  %v316_v31 = vld [vmem:[%s776_s0 + $0xf8] sm:$0xff]  ;;  %v318_v32 = vld [vmem:[%s776_s0 + $0x100] sm:$0xff] }
  0x11   :  { %315 = vst [vmem:[%s777_s1 + $0xf0] sm:$0xff] %v314_v30  ;;  %317 = vst [vmem:[%s777_s1 + $0xf8] sm:$0xff] %v316_v31  ;;  %v320_v33 = vld [vmem:[%s776_s0 + $0x108] sm:$0xff]  ;;  %v322_v34 = vld [vmem:[%s776_s0 + $0x110] sm:$0xff] }
  0x12   :  { %319 = vst [vmem:[%s777_s1 + $0x100] sm:$0xff] %v318_v32  ;;  %v324_v35 = vld [vmem:[%s776_s0 + $0x118] sm:$0xff]  ;;  %321 = vst [vmem:[%s777_s1 + $0x108] sm:$0xff] %v320_v33  ;;  %v326_v36 = vld [vmem:[%s776_s0 + $0x120] sm:$0xff] }
  0x13   :  { %323 = vst [vmem:[%s777_s1 + $0x110] sm:$0xff] %v322_v34  ;;  %325 = vst [vmem:[%s777_s1 + $0x118] sm:$0xff] %v324_v35  ;;  %v328_v37 = vld [vmem:[%s776_s0 + $0x128] sm:$0xff]  ;;  %v330_v38 = vld [vmem:[%s776_s0 + $0x130] sm:$0xff] }
  0x14   :  { %327 = vst [vmem:[%s777_s1 + $0x120] sm:$0xff] %v326_v36  ;;  %329 = vst [vmem:[%s777_s1 + $0x128] sm:$0xff] %v328_v37  ;;  %v332_v39 = vld [vmem:[%s776_s0 + $0x138] sm:$0xff]  ;;  %v334_v40 = vld [vmem:[%s776_s0 + $0x140] sm:$0xff] }
  0x15   :  { %331 = vst [vmem:[%s777_s1 + $0x130] sm:$0xff] %v330_v38  ;;  %v336_v41 = vld [vmem:[%s776_s0 + $0x148] sm:$0xff]  ;;  %333 = vst [vmem:[%s777_s1 + $0x138] sm:$0xff] %v332_v39  ;;  %v338_v42 = vld [vmem:[%s776_s0 + $0x150] sm:$0xff] }
  0x16   :  { %335 = vst [vmem:[%s777_s1 + $0x140] sm:$0xff] %v334_v40  ;;  %337 = vst [vmem:[%s777_s1 + $0x148] sm:$0xff] %v336_v41  ;;  %v340_v43 = vld [vmem:[%s776_s0 + $0x158] sm:$0xff]  ;;  %v342_v44 = vld [vmem:[%s776_s0 + $0x160] sm:$0xff] }
  0x17   :  { %339 = vst [vmem:[%s777_s1 + $0x150] sm:$0xff] %v338_v42  ;;  %341 = vst [vmem:[%s777_s1 + $0x158] sm:$0xff] %v340_v43  ;;  %v344_v45 = vld [vmem:[%s776_s0 + $0x168] sm:$0xff]  ;;  %v346_v46 = vld [vmem:[%s776_s0 + $0x170] sm:$0xff] }
  0x18   :  { %343 = vst [vmem:[%s777_s1 + $0x160] sm:$0xff] %v342_v44  ;;  %v348_v47 = vld [vmem:[%s776_s0 + $0x178] sm:$0xff]  ;;  %345 = vst [vmem:[%s777_s1 + $0x168] sm:$0xff] %v344_v45  ;;  %v350_v48 = vld [vmem:[%s776_s0 + $0x180] sm:$0xff] }
  0x19   :  { %347 = vst [vmem:[%s777_s1 + $0x170] sm:$0xff] %v346_v46  ;;  %349 = vst [vmem:[%s777_s1 + $0x178] sm:$0xff] %v348_v47  ;;  %v352_v49 = vld [vmem:[%s776_s0 + $0x188] sm:$0xff]  ;;  %v354_v50 = vld [vmem:[%s776_s0 + $0x190] sm:$0xff] }
  0x1a   :  { %351 = vst [vmem:[%s777_s1 + $0x180] sm:$0xff] %v350_v48  ;;  %353 = vst [vmem:[%s777_s1 + $0x188] sm:$0xff] %v352_v49  ;;  %v356_v51 = vld [vmem:[%s776_s0 + $0x198] sm:$0xff]  ;;  %v358_v52 = vld [vmem:[%s776_s0 + $0x1a0] sm:$0xff] }
  0x1b   :  { %355 = vst [vmem:[%s777_s1 + $0x190] sm:$0xff] %v354_v50  ;;  %v360_v53 = vld [vmem:[%s776_s0 + $0x1a8] sm:$0xff]  ;;  %357 = vst [vmem:[%s777_s1 + $0x198] sm:$0xff] %v356_v51  ;;  %v362_v54 = vld [vmem:[%s776_s0 + $0x1b0] sm:$0xff] }
  0x1c   :  { %359 = vst [vmem:[%s777_s1 + $0x1a0] sm:$0xff] %v358_v52  ;;  %361 = vst [vmem:[%s777_s1 + $0x1a8] sm:$0xff] %v360_v53  ;;  %v364_v55 = vld [vmem:[%s776_s0 + $0x1b8] sm:$0xff]  ;;  %v366_v56 = vld [vmem:[%s776_s0 + $0x1c0] sm:$0xff] }
  0x1d   :  { %363 = vst [vmem:[%s777_s1 + $0x1b0] sm:$0xff] %v362_v54  ;;  %365 = vst [vmem:[%s777_s1 + $0x1b8] sm:$0xff] %v364_v55  ;;  %v368_v57 = vld [vmem:[%s776_s0 + $0x1c8] sm:$0xff]  ;;  %v370_v58 = vld [vmem:[%s776_s0 + $0x1d0] sm:$0xff] }
  0x1e   :  { %367 = vst [vmem:[%s777_s1 + $0x1c0] sm:$0xff] %v366_v56  ;;  %v372_v59 = vld [vmem:[%s776_s0 + $0x1d8] sm:$0xff]  ;;  %369 = vst [vmem:[%s777_s1 + $0x1c8] sm:$0xff] %v368_v57  ;;  %v374_v60 = vld [vmem:[%s776_s0 + $0x1e0] sm:$0xff] }
  0x1f   :  { %371 = vst [vmem:[%s777_s1 + $0x1d0] sm:$0xff] %v370_v58  ;;  %373 = vst [vmem:[%s777_s1 + $0x1d8] sm:$0xff] %v372_v59  ;;  %v376_v61 = vld [vmem:[%s776_s0 + $0x1e8] sm:$0xff]  ;;  %v378_v62 = vld [vmem:[%s776_s0 + $0x1f0] sm:$0xff] }
  0x20   :  { %375 = vst [vmem:[%s777_s1 + $0x1e0] sm:$0xff] %v374_v60  ;;  %377 = vst [vmem:[%s777_s1 + $0x1e8] sm:$0xff] %v376_v61  ;;  %v380_v63 = vld [vmem:[%s776_s0 + $0x1f8] sm:$0xff] }
  0x21   :  { %379 = vst [vmem:[%s777_s1 + $0x1f0] sm:$0xff] %v378_v62  ;;  %381 = vst [vmem:[%s777_s1 + $0x1f8] sm:$0xff] %v380_v63 }

// kernel: fno2d_forward.11
= control target key start
LH: loop header
LB: loop body
LE: loop exit
PB: predicated region body
PF: predicated region fallthrough
CT: control target
= control target key end

     0   :  { %s2405_s18 = smov 0   ;;  %s3270_s0 = inlined_call_operand.vmem [shape: f32[2,32,128], index: 0, kind: input, shape index: {}]   ;;  %s3271_s1 = inlined_call_operand.vmem [shape: f32[2,32,128], index: 1, kind: input, shape index: {}]   ;;  %s3272_s2 = inlined_call_operand.vmem [shape: f32[32,32,128], index: 2, kind: input, shape index: {}]   ;;  %s3273_s3 = inlined_call_operand.vmem [shape: f32[32,32,128], index: 3, kind: input, shape index: {}]   ;;  %s3274_s4 = inlined_call_operand.vmem [shape: f32[2,32,128], index: 4, kind: output, shape index: {0}]   ;;  %s3275_s5 = inlined_call_operand.vmem [shape: f32[2,32,128], index: 5, kind: output, shape index: {1}]  }
   0x1 LB: > { %s2028_s19 = sadd.s32 4294967295, %s2373_s18   ;;  %p2032_p0 = scmp.ge.s32.totalorder %s2373_s18, 1  ;;  %s2373_s18 = sphi %s2405_s18, %s16_s18  }
   0x2   : > { %p200_p1 = scmp.lt.s32.totalorder %s2373_s18, 3 }
   0x4   : > { %p201_p2 = pnand %p2032_p0, %p200_p1 }
   0x5   : > { %p238_p3 = scmp.lt.s32.totalorder (!%p201_p2), %s2028_s19, 1  ;;  %v260_v0 = vld [vmem:[%s3272_s2] sm:$0xff] (!%p201_p2)  ;;  %v261_v1 = vld [vmem:[%s3272_s2 + $0x8] sm:$0xff] (!%p201_p2)  ;;  %v262_v2 = vld [vmem:[%s3272_s2 + $0x10] sm:$0xff] (!%p201_p2) }
   0x6   : > { %204 = sbr.rel (%p201_p2) target bundleno = 275 (0x113), region = 36  ;;  %v263_v3 = vld [vmem:[%s3272_s2 + $0x18] sm:$0xff] (!%p201_p2)  ;;  %v264_v4 = vld [vmem:[%s3273_s3] sm:$0xff] (!%p201_p2)  ;;  %v265_v5 = vld [vmem:[%s3273_s3 + $0x8] sm:$0xff] (!%p201_p2) }
   0x7   : > { %v266_v6 = vld [vmem:[%s3273_s3 + $0x10] sm:$0xff] (!%p201_p2)  ;;  %v267_v7 = vld [vmem:[%s3273_s3 + $0x18] sm:$0xff] (!%p201_p2)  ;;  %v2043_v18 = vld [vmem:[%s3272_s2 + $0x20] sm:$0xff] (!%p201_p2) }
   0x8   : > { %v2044_v19 = vld [vmem:[%s3272_s2 + $0x28] sm:$0xff] (!%p201_p2)  ;;  %v2045_v25 = vld [vmem:[%s3272_s2 + $0x30] sm:$0xff] (!%p201_p2)  ;;  %v2046_v26 = vld [vmem:[%s3272_s2 + $0x38] sm:$0xff] (!%p201_p2) }
   0x9   : > { %v2047_v31 = vld [vmem:[%s3273_s3 + $0x20] sm:$0xff] (!%p201_p2)  ;;  %v2048_v32 = vld [vmem:[%s3273_s3 + $0x28] sm:$0xff] (!%p201_p2)  ;;  %v2049_v38 = vld [vmem:[%s3273_s3 + $0x30] sm:$0xff] (!%p201_p2) }
   0xa   : > { %v2050_v39 = vld [vmem:[%s3273_s3 + $0x38] sm:$0xff] (!%p201_p2)  ;;  %v2053_v60 = vld [vmem:[%s3272_s2 + $0x40] sm:$0xff] (!%p201_p2)  ;;  %v2054_v61 = vld [vmem:[%s3272_s2 + $0x48] sm:$0xff] (!%p201_p2) }
   0xd   : > { %s3277_s19 = smov (!%p238_p3, %s2028_s19), 1 }
   0xe   : > { %s2419_s24 = sshll.u32 %s3277_s19, 5 }
   0xf   : > { %s2434_s8 = scalar_lea.vmem %s3270_s0, %s2419_s24  ;;  %s2440_s11 = scalar_lea.vmem %s3271_s1, %s2419_s24 }
  0x10   : > { %v2041_v8 = vld [vmem:[%s2434_s8] ss:$0 sm:$0xff]  ;;  %v2051_v24 = vld [vmem:[%s2434_s8 + $0x1] ss:$0 sm:$0xff]  ;;  %s252_s9 = scalar_lea.vmem %s3274_s4, %s2419_s24  ;;  %s257_s13 = scalar_lea.vmem %s3275_s5, %s2419_s24 }
  0x11   : > { %v2042_v9 = vld [vmem:[%s2440_s11] ss:$0 sm:$0xff]  ;;  %v272_v10 = vmul.f32 %v2041_v8, %v260_v0  ;;  %v273_v11 = vmul.f32 %v2041_v8, %v261_v1  ;;  %v274_v12 = vmul.f32 %v2041_v8, %v262_v2  ;;  %v275_v13 = vmul.f32 %v2041_v8, %v263_v3  ;;  %v2052_v37 = vld [vmem:[%s2440_s11 + $0x1] ss:$0 sm:$0xff] }
  0x12   : > { %v280_v14 = vmul.f32 %v2042_v9, %v264_v4  ;;  %v281_v15 = vmul.f32 %v2042_v9, %v265_v5  ;;  %v282_v16 = vmul.f32 %v2042_v9, %v266_v6  ;;  %v283_v17 = vmul.f32 %v2042_v9, %v267_v7 }
  0x13   : > { %v292_v20 = vmul.f32 %v2041_v8, %v264_v4  ;;  %v293_v21 = vmul.f32 %v2041_v8, %v265_v5  ;;  %v294_v22 = vmul.f32 %v2041_v8, %v266_v6  ;;  %v295_v23 = vmul.f32 %v2041_v8, %v267_v7  ;;  %v2056_v4 = vld [vmem:[%s3272_s2 + $0x58] sm:$0xff] }
  0x14   : > { %v284_v27 = vsub.f32 %v272_v10, %v280_v14  ;;  %v285_v28 = vsub.f32 %v273_v11, %v281_v15  ;;  %v286_v29 = vsub.f32 %v274_v12, %v282_v16  ;;  %v287_v30 = vsub.f32 %v275_v13, %v283_v17  ;;  %v2057_v10 = vld [vmem:[%s3273_s3 + $0x40] sm:$0xff]  ;;  %v2058_v15 = vld [vmem:[%s3273_s3 + $0x48] sm:$0xff]  ;;  %v2059_v16 = vld [vmem:[%s3273_s3 + $0x50] sm:$0xff] }
  0x15   : > { %v296_v33 = vmul.f32 %v2042_v9, %v260_v0  ;;  %v297_v34 = vmul.f32 %v2042_v9, %v261_v1  ;;  %v298_v35 = vmul.f32 %v2042_v9, %v262_v2  ;;  %v299_v36 = vmul.f32 %v2042_v9, %v263_v3  ;;  %v2061_v2 = vld [vmem:[%s2434_s8 + $0x2] ss:$0 sm:$0xff]  ;;  %v2055_v3 = vld [vmem:[%s3272_s2 + $0x50] sm:$0xff]  ;;  %v2060_v17 = vld [vmem:[%s3273_s3 + $0x58] sm:$0xff] }
  0x16   : > { %v324_v40 = vmul.f32 %v2051_v24, %v2043_v18  ;;  %v325_v41 = vmul.f32 %v2051_v24, %v2044_v19  ;;  %v326_v42 = vmul.f32 %v2051_v24, %v2045_v25  ;;  %v327_v43 = vmul.f32 %v2051_v24, %v2046_v26  ;;  %v2062_v9 = vld [vmem:[%s2440_s11 + $0x2] ss:$0 sm:$0xff] }
  0x17   : > { %v300_v44 = vadd.f32 %v296_v33, %v292_v20  ;;  %v301_v45 = vadd.f32 %v297_v34, %v293_v21  ;;  %v302_v46 = vadd.f32 %v298_v35, %v294_v22  ;;  %v303_v47 = vadd.f32 %v299_v36, %v295_v23 }
  0x18   : > { %v332_v48 = vmul.f32 %v2052_v37, %v2047_v31  ;;  %v333_v49 = vmul.f32 %v2052_v37, %v2048_v32  ;;  %v334_v50 = vmul.f32 %v2052_v37, %v2049_v38  ;;  %v335_v51 = vmul.f32 %v2052_v37, %v2050_v39 }
  0x19   : > { %v344_v52 = vmul.f32 %v2051_v24, %v2047_v31  ;;  %v345_v53 = vmul.f32 %v2051_v24, %v2048_v32  ;;  %v346_v54 = vmul.f32 %v2051_v24, %v2049_v38  ;;  %v347_v55 = vmul.f32 %v2051_v24, %v2050_v39  ;;  %v2071_v38 = vld [vmem:[%s2434_s8 + $0x3] ss:$0 sm:$0xff] }
  0x1a   : > { %v336_v56 = vsub.f32 %v324_v40, %v332_v48  ;;  %v337_v57 = vsub.f32 %v325_v41, %v333_v49  ;;  %v338_v58 = vsub.f32 %v326_v42, %v334_v50  ;;  %v339_v59 = vsub.f32 %v327_v43, %v335_v51  ;;  %v2063_v39 = vld [vmem:[%s3272_s2 + $0x60] sm:$0xff] }
  0x1b   : > { %v348_v62 = vmul.f32 %v2052_v37, %v2043_v18  ;;  %v349_v63 = vmul.f32 %v2052_v37, %v2044_v19  ;;  %v350_v0 = vmul.f32 %v2052_v37, %v2045_v25  ;;  %v351_v1 = vmul.f32 %v2052_v37, %v2046_v26  ;;  %v2072_v51 = vld [vmem:[%s2440_s11 + $0x3] ss:$0 sm:$0xff] }
  0x1c   : > { %v340_v5 = vadd.f32 %v336_v56, %v284_v27  ;;  %v341_v6 = vadd.f32 %v337_v57, %v285_v28  ;;  %v342_v7 = vadd.f32 %v338_v58, %v286_v29  ;;  %v343_v8 = vadd.f32 %v339_v59, %v287_v30  ;;  %v2068_v57 = vld [vmem:[%s3273_s3 + $0x68] sm:$0xff]  ;;  %v2069_v58 = vld [vmem:[%s3273_s3 + $0x70] sm:$0xff]  ;;  %v2070_v59 = vld [vmem:[%s3273_s3 + $0x78] sm:$0xff] }
  0x1d   : > { %v352_v11 = vadd.f32 %v348_v62, %v344_v52  ;;  %v353_v12 = vadd.f32 %v349_v63, %v345_v53  ;;  %v354_v13 = vadd.f32 %v350_v0, %v346_v54  ;;  %v355_v14 = vadd.f32 %v351_v1, %v347_v55  ;;  %v2067_v52 = vld [vmem:[%s3273_s3 + $0x60] sm:$0xff] }
  0x1e   : > { %v376_v18 = vmul.f32 %v2061_v2, %v2053_v60  ;;  %v377_v19 = vmul.f32 %v2061_v2, %v2054_v61  ;;  %v378_v20 = vmul.f32 %v2061_v2, %v2055_v3  ;;  %v379_v21 = vmul.f32 %v2061_v2, %v2056_v4 }
  0x1f   : > { %v356_v22 = vadd.f32 %v352_v11, %v300_v44  ;;  %v357_v23 = vadd.f32 %v353_v12, %v301_v45  ;;  %v358_v24 = vadd.f32 %v354_v13, %v302_v46  ;;  %v359_v25 = vadd.f32 %v355_v14, %v303_v47  ;;  %v2064_v44 = vld [vmem:[%s3272_s2 + $0x68] sm:$0xff]  ;;  %v2065_v45 = vld [vmem:[%s3272_s2 + $0x70] sm:$0xff]  ;;  %v2066_v46 = vld [vmem:[%s3272_s2 + $0x78] sm:$0xff] }
  0x20   : > { %v384_v26 = vmul.f32 %v2062_v9, %v2057_v10  ;;  %v385_v27 = vmul.f32 %v2062_v9, %v2058_v15  ;;  %v386_v28 = vmul.f32 %v2062_v9, %v2059_v16  ;;  %v387_v29 = vmul.f32 %v2062_v9, %v2060_v17 }
  0x21   : > { %v396_v30 = vmul.f32 %v2061_v2, %v2057_v10  ;;  %v397_v31 = vmul.f32 %v2061_v2, %v2058_v15  ;;  %v398_v32 = vmul.f32 %v2061_v2, %v2059_v16  ;;  %v399_v33 = vmul.f32 %v2061_v2, %v2060_v17  ;;  %v2081_v16 = vld [vmem:[%s2434_s8 + $0x4] ss:$0 sm:$0xff] }
  0x22   : > { %v388_v34 = vsub.f32 %v376_v18, %v384_v26  ;;  %v389_v35 = vsub.f32 %v377_v19, %v385_v27  ;;  %v390_v36 = vsub.f32 %v378_v20, %v386_v28  ;;  %v391_v37 = vsub.f32 %v379_v21, %v387_v29  ;;  %v2073_v17 = vld [vmem:[%s3272_s2 + $0x80] sm:$0xff] }
  0x23   : > { %v400_v40 = vmul.f32 %v2062_v9, %v2053_v60  ;;  %v401_v41 = vmul.f32 %v2062_v9, %v2054_v61  ;;  %v402_v42 = vmul.f32 %v2062_v9, %v2055_v3  ;;  %v403_v43 = vmul.f32 %v2062_v9, %v2056_v4  ;;  %v2082_v29 = vld [vmem:[%s2440_s11 + $0x4] ss:$0 sm:$0xff] }
  0x24   : > { %v392_v47 = vadd.f32 %v388_v34, %v340_v5  ;;  %v393_v48 = vadd.f32 %v389_v35, %v341_v6  ;;  %v394_v49 = vadd.f32 %v390_v36, %v342_v7  ;;  %v395_v50 = vadd.f32 %v391_v37, %v343_v8  ;;  %v2078_v35 = vld [vmem:[%s3273_s3 + $0x88] sm:$0xff]  ;;  %v2079_v36 = vld [vmem:[%s3273_s3 + $0x90] sm:$0xff]  ;;  %v2080_v37 = vld [vmem:[%s3273_s3 + $0x98] sm:$0xff] }
  0x25   : > { %v404_v53 = vadd.f32 %v400_v40, %v396_v30  ;;  %v405_v54 = vadd.f32 %v401_v41, %v397_v31  ;;  %v406_v55 = vadd.f32 %v402_v42, %v398_v32  ;;  %v407_v56 = vadd.f32 %v403_v43, %v399_v33  ;;  %v2077_v30 = vld [vmem:[%s3273_s3 + $0x80] sm:$0xff] }
  0x26   : > { %v428_v60 = vmul.f32 %v2071_v38, %v2063_v39  ;;  %v429_v61 = vmul.f32 %v2071_v38, %v2064_v44  ;;  %v430_v62 = vmul.f32 %v2071_v38, %v2065_v45  ;;  %v431_v63 = vmul.f32 %v2071_v38, %v2066_v46 }
  0x27   : > { %v408_v0 = vadd.f32 %v404_v53, %v356_v22  ;;  %v409_v1 = vadd.f32 %v405_v54, %v357_v23  ;;  %v410_v2 = vadd.f32 %v406_v55, %v358_v24  ;;  %v411_v3 = vadd.f32 %v407_v56, %v359_v25  ;;  %v2074_v22 = vld [vmem:[%s3272_s2 + $0x88] sm:$0xff]  ;;  %v2075_v23 = vld [vmem:[%s3272_s2 + $0x90] sm:$0xff]  ;;  %v2076_v24 = vld [vmem:[%s3272_s2 + $0x98] sm:$0xff] }
  0x28   : > { %v436_v4 = vmul.f32 %v2072_v51, %v2067_v52  ;;  %v437_v5 = vmul.f32 %v2072_v51, %v2068_v57  ;;  %v438_v6 = vmul.f32 %v2072_v51, %v2069_v58  ;;  %v439_v7 = vmul.f32 %v2072_v51, %v2070_v59 }
  0x29   : > { %v448_v8 = vmul.f32 %v2071_v38, %v2067_v52  ;;  %v449_v9 = vmul.f32 %v2071_v38, %v2068_v57  ;;  %v450_v10 = vmul.f32 %v2071_v38, %v2069_v58  ;;  %v451_v11 = vmul.f32 %v2071_v38, %v2070_v59  ;;  %v2091_v58 = vld [vmem:[%s2434_s8 + $0x5] ss:$0 sm:$0xff] }
  0x2a   : > { %v440_v12 = vsub.f32 %v428_v60, %v436_v4  ;;  %v441_v13 = vsub.f32 %v429_v61, %v437_v5  ;;  %v442_v14 = vsub.f32 %v430_v62, %v438_v6  ;;  %v443_v15 = vsub.f32 %v431_v63, %v439_v7  ;;  %v2083_v59 = vld [vmem:[%s3272_s2 + $0xa0] sm:$0xff] }
  0x2b   : > { %v452_v18 = vmul.f32 %v2072_v51, %v2063_v39  ;;  %v453_v19 = vmul.f32 %v2072_v51, %v2064_v44  ;;  %v454_v20 = vmul.f32 %v2072_v51, %v2065_v45  ;;  %v455_v21 = vmul.f32 %v2072_v51, %v2066_v46  ;;  %v2092_v7 = vld [vmem:[%s2440_s11 + $0x5] ss:$0 sm:$0xff] }
  0x2c   : > { %v444_v25 = vadd.f32 %v440_v12, %v392_v47  ;;  %v445_v26 = vadd.f32 %v441_v13, %v393_v48  ;;  %v446_v27 = vadd.f32 %v442_v14, %v394_v49  ;;  %v447_v28 = vadd.f32 %v443_v15, %v395_v50  ;;  %v2088_v13 = vld [vmem:[%s3273_s3 + $0xa8] sm:$0xff]  ;;  %v2089_v14 = vld [vmem:[%s3273_s3 + $0xb0] sm:$0xff]  ;;  %v2090_v15 = vld [vmem:[%s3273_s3 + $0xb8] sm:$0xff] }
  0x2d   : > { %v456_v31 = vadd.f32 %v452_v18, %v448_v8  ;;  %v457_v32 = vadd.f32 %v453_v19, %v449_v9  ;;  %v458_v33 = vadd.f32 %v454_v20, %v450_v10  ;;  %v459_v34 = vadd.f32 %v455_v21, %v451_v11  ;;  %v2087_v8 = vld [vmem:[%s3273_s3 + $0xa0] sm:$0xff] }
  0x2e   : > { %v480_v38 = vmul.f32 %v2081_v16, %v2073_v17  ;;  %v481_v39 = vmul.f32 %v2081_v16, %v2074_v22  ;;  %v482_v40 = vmul.f32 %v2081_v16, %v2075_v23  ;;  %v483_v41 = vmul.f32 %v2081_v16, %v2076_v24 }
  0x2f   : > { %v460_v42 = vadd.f32 %v456_v31, %v408_v0  ;;  %v461_v43 = vadd.f32 %v457_v32, %v409_v1  ;;  %v462_v44 = vadd.f32 %v458_v33, %v410_v2  ;;  %v463_v45 = vadd.f32 %v459_v34, %v411_v3  ;;  %v2084_v0 = vld [vmem:[%s3272_s2 + $0xa8] sm:$0xff]  ;;  %v2085_v1 = vld [vmem:[%s3272_s2 + $0xb0] sm:$0xff]  ;;  %v2086_v2 = vld [vmem:[%s3272_s2 + $0xb8] sm:$0xff] }
  0x30   : > { %v488_v46 = vmul.f32 %v2082_v29, %v2077_v30  ;;  %v489_v47 = vmul.f32 %v2082_v29, %v2078_v35  ;;  %v490_v48 = vmul.f32 %v2082_v29, %v2079_v36  ;;  %v491_v49 = vmul.f32 %v2082_v29, %v2080_v37 }
  0x31   : > { %v500_v50 = vmul.f32 %v2081_v16, %v2077_v30  ;;  %v501_v51 = vmul.f32 %v2081_v16, %v2078_v35  ;;  %v502_v52 = vmul.f32 %v2081_v16, %v2079_v36  ;;  %v503_v53 = vmul.f32 %v2081_v16, %v2080_v37  ;;  %v2101_v36 = vld [vmem:[%s2434_s8 + $0x6] ss:$0 sm:$0xff] }
  0x32   : > { %v492_v54 = vsub.f32 %v480_v38, %v488_v46  ;;  %v493_v55 = vsub.f32 %v481_v39, %v489_v47  ;;  %v494_v56 = vsub.f32 %v482_v40, %v490_v48  ;;  %v495_v57 = vsub.f32 %v483_v41, %v491_v49  ;;  %v2093_v37 = vld [vmem:[%s3272_s2 + $0xc0] sm:$0xff] }
  0x33   : > { %v504_v60 = vmul.f32 %v2082_v29, %v2073_v17  ;;  %v505_v61 = vmul.f32 %v2082_v29, %v2074_v22  ;;  %v506_v62 = vmul.f32 %v2082_v29, %v2075_v23  ;;  %v507_v63 = vmul.f32 %v2082_v29, %v2076_v24  ;;  %v2102_v49 = vld [vmem:[%s2440_s11 + $0x6] ss:$0 sm:$0xff] }
  0x34   : > { %v496_v3 = vadd.f32 %v492_v54, %v444_v25  ;;  %v497_v4 = vadd.f32 %v493_v55, %v445_v26  ;;  %v498_v5 = vadd.f32 %v494_v56, %v446_v27  ;;  %v499_v6 = vadd.f32 %v495_v57, %v447_v28  ;;  %v2098_v55 = vld [vmem:[%s3273_s3 + $0xc8] sm:$0xff]  ;;  %v2099_v56 = vld [vmem:[%s3273_s3 + $0xd0] sm:$0xff]  ;;  %v2100_v57 = vld [vmem:[%s3273_s3 + $0xd8] sm:$0xff] }
  0x35   : > { %v508_v9 = vadd.f32 %v504_v60, %v500_v50  ;;  %v509_v10 = vadd.f32 %v505_v61, %v501_v51  ;;  %v510_v11 = vadd.f32 %v506_v62, %v502_v52  ;;  %v511_v12 = vadd.f32 %v507_v63, %v503_v53  ;;  %v2097_v50 = vld [vmem:[%s3273_s3 + $0xc0] sm:$0xff] }
  0x36   : > { %v532_v16 = vmul.f32 %v2091_v58, %v2083_v59  ;;  %v533_v17 = vmul.f32 %v2091_v58, %v2084_v0  ;;  %v534_v18 = vmul.f32 %v2091_v58, %v2085_v1  ;;  %v535_v19 = vmul.f32 %v2091_v58, %v2086_v2 }
  0x37   : > { %v512_v20 = vadd.f32 %v508_v9, %v460_v42  ;;  %v513_v21 = vadd.f32 %v509_v10, %v461_v43  ;;  %v514_v22 = vadd.f32 %v510_v11, %v462_v44  ;;  %v515_v23 = vadd.f32 %v511_v12, %v463_v45  ;;  %v2094_v42 = vld [vmem:[%s3272_s2 + $0xc8] sm:$0xff]  ;;  %v2095_v43 = vld [vmem:[%s3272_s2 + $0xd0] sm:$0xff]  ;;  %v2096_v44 = vld [vmem:[%s3272_s2 + $0xd8] sm:$0xff] }
  0x38   : > { %v540_v24 = vmul.f32 %v2092_v7, %v2087_v8  ;;  %v541_v25 = vmul.f32 %v2092_v7, %v2088_v13  ;;  %v542_v26 = vmul.f32 %v2092_v7, %v2089_v14  ;;  %v543_v27 = vmul.f32 %v2092_v7, %v2090_v15 }
  0x39   : > { %v552_v28 = vmul.f32 %v2091_v58, %v2087_v8  ;;  %v553_v29 = vmul.f32 %v2091_v58, %v2088_v13  ;;  %v554_v30 = vmul.f32 %v2091_v58, %v2089_v14  ;;  %v555_v31 = vmul.f32 %v2091_v58, %v2090_v15  ;;  %v2111_v14 = vld [vmem:[%s2434_s8 + $0x7] ss:$0 sm:$0xff] }
  0x3a   : > { %v544_v32 = vsub.f32 %v532_v16, %v540_v24  ;;  %v545_v33 = vsub.f32 %v533_v17, %v541_v25  ;;  %v546_v34 = vsub.f32 %v534_v18, %v542_v26  ;;  %v547_v35 = vsub.f32 %v535_v19, %v543_v27  ;;  %v2103_v15 = vld [vmem:[%s3272_s2 + $0xe0] sm:$0xff] }
  0x3b   : > { %v556_v38 = vmul.f32 %v2092_v7, %v2083_v59  ;;  %v557_v39 = vmul.f32 %v2092_v7, %v2084_v0  ;;  %v558_v40 = vmul.f32 %v2092_v7, %v2085_v1  ;;  %v559_v41 = vmul.f32 %v2092_v7, %v2086_v2  ;;  %v2112_v27 = vld [vmem:[%s2440_s11 + $0x7] ss:$0 sm:$0xff] }
  0x3c   : > { %v548_v45 = vadd.f32 %v544_v32, %v496_v3  ;;  %v549_v46 = vadd.f32 %v545_v33, %v497_v4  ;;  %v550_v47 = vadd.f32 %v546_v34, %v498_v5  ;;  %v551_v48 = vadd.f32 %v547_v35, %v499_v6  ;;  %v2108_v33 = vld [vmem:[%s3273_s3 + $0xe8] sm:$0xff]  ;;  %v2109_v34 = vld [vmem:[%s3273_s3 + $0xf0] sm:$0xff]  ;;  %v2110_v35 = vld [vmem:[%s3273_s3 + $0xf8] sm:$0xff] }
  0x3d   : > { %v560_v51 = vadd.f32 %v556_v38, %v552_v28  ;;  %v561_v52 = vadd.f32 %v557_v39, %v553_v29  ;;  %v562_v53 = vadd.f32 %v558_v40, %v554_v30  ;;  %v563_v54 = vadd.f32 %v559_v41, %v555_v31  ;;  %v2107_v28 = vld [vmem:[%s3273_s3 + $0xe0] sm:$0xff] }
  0x3e   : > { %v584_v58 = vmul.f32 %v2101_v36, %v2093_v37  ;;  %v585_v59 = vmul.f32 %v2101_v36, %v2094_v42  ;;  %v586_v60 = vmul.f32 %v2101_v36, %v2095_v43  ;;  %v587_v61 = vmul.f32 %v2101_v36, %v2096_v44 }
  0x3f   : > { %v564_v62 = vadd.f32 %v560_v51, %v512_v20  ;;  %v565_v63 = vadd.f32 %v561_v52, %v513_v21  ;;  %v566_v0 = vadd.f32 %v562_v53, %v514_v22  ;;  %v567_v1 = vadd.f32 %v563_v54, %v515_v23  ;;  %v2104_v20 = vld [vmem:[%s3272_s2 + $0xe8] sm:$0xff]  ;;  %v2105_v21 = vld [vmem:[%s3272_s2 + $0xf0] sm:$0xff]  ;;  %v2106_v22 = vld [vmem:[%s3272_s2 + $0xf8] sm:$0xff] }
  0x40   : > { %v592_v2 = vmul.f32 %v2102_v49, %v2097_v50  ;;  %v593_v3 = vmul.f32 %v2102_v49, %v2098_v55  ;;  %v594_v4 = vmul.f32 %v2102_v49, %v2099_v56  ;;  %v595_v5 = vmul.f32 %v2102_v49, %v2100_v57 }
  0x41   : > { %v604_v6 = vmul.f32 %v2101_v36, %v2097_v50  ;;  %v605_v7 = vmul.f32 %v2101_v36, %v2098_v55  ;;  %v606_v8 = vmul.f32 %v2101_v36, %v2099_v56  ;;  %v607_v9 = vmul.f32 %v2101_v36, %v2100_v57  ;;  %v2121_v56 = vld [vmem:[%s2434_s8 + $0x8] ss:$0 sm:$0xff]  ;;  %v2113_v57 = vld [vmem:[%s3272_s2 + $0x100] sm:$0xff] }
  0x42   : > { %v596_v10 = vsub.f32 %v584_v58, %v592_v2  ;;  %v597_v11 = vsub.f32 %v585_v59, %v593_v3  ;;  %v598_v12 = vsub.f32 %v586_v60, %v594_v4  ;;  %v599_v13 = vsub.f32 %v587_v61, %v595_v5  ;;  %v2122_v5 = vld [vmem:[%s2440_s11 + $0x8] ss:$0 sm:$0xff] }
  0x43   : > { %v608_v16 = vmul.f32 %v2102_v49, %v2093_v37  ;;  %v609_v17 = vmul.f32 %v2102_v49, %v2094_v42  ;;  %v610_v18 = vmul.f32 %v2102_v49, %v2095_v43  ;;  %v611_v19 = vmul.f32 %v2102_v49, %v2096_v44 }
  0x44   : > { %v600_v23 = vadd.f32 %v596_v10, %v548_v45  ;;  %v601_v24 = vadd.f32 %v597_v11, %v549_v46  ;;  %v602_v25 = vadd.f32 %v598_v12, %v550_v47  ;;  %v603_v26 = vadd.f32 %v599_v13, %v551_v48  ;;  %v2118_v11 = vld [vmem:[%s3273_s3 + $0x108] sm:$0xff]  ;;  %v2119_v12 = vld [vmem:[%s3273_s3 + $0x110] sm:$0xff]  ;;  %v2120_v13 = vld [vmem:[%s3273_s3 + $0x118] sm:$0xff] }
  0x45   : > { %v612_v29 = vadd.f32 %v608_v16, %v604_v6  ;;  %v613_v30 = vadd.f32 %v609_v17, %v605_v7  ;;  %v614_v31 = vadd.f32 %v610_v18, %v606_v8  ;;  %v615_v32 = vadd.f32 %v611_v19, %v607_v9  ;;  %v2117_v6 = vld [vmem:[%s3273_s3 + $0x100] sm:$0xff] }
  0x46   : > { %v636_v36 = vmul.f32 %v2111_v14, %v2103_v15  ;;  %v637_v37 = vmul.f32 %v2111_v14, %v2104_v20  ;;  %v638_v38 = vmul.f32 %v2111_v14, %v2105_v21  ;;  %v639_v39 = vmul.f32 %v2111_v14, %v2106_v22 }
  0x47   : > { %v616_v40 = vadd.f32 %v612_v29, %v564_v62  ;;  %v617_v41 = vadd.f32 %v613_v30, %v565_v63  ;;  %v618_v42 = vadd.f32 %v614_v31, %v566_v0  ;;  %v619_v43 = vadd.f32 %v615_v32, %v567_v1  ;;  %v2114_v62 = vld [vmem:[%s3272_s2 + $0x108] sm:$0xff]  ;;  %v2115_v63 = vld [vmem:[%s3272_s2 + $0x110] sm:$0xff]  ;;  %v2116_v0 = vld [vmem:[%s3272_s2 + $0x118] sm:$0xff] }
  0x48   : > { %v644_v44 = vmul.f32 %v2112_v27, %v2107_v28  ;;  %v645_v45 = vmul.f32 %v2112_v27, %v2108_v33  ;;  %v646_v46 = vmul.f32 %v2112_v27, %v2109_v34  ;;  %v647_v47 = vmul.f32 %v2112_v27, %v2110_v35 }
  0x49   : > { %v656_v48 = vmul.f32 %v2111_v14, %v2107_v28  ;;  %v657_v49 = vmul.f32 %v2111_v14, %v2108_v33  ;;  %v658_v50 = vmul.f32 %v2111_v14, %v2109_v34  ;;  %v659_v51 = vmul.f32 %v2111_v14, %v2110_v35  ;;  %v2131_v34 = vld [vmem:[%s2434_s8 + $0x9] ss:$0 sm:$0xff]  ;;  %v2123_v35 = vld [vmem:[%s3272_s2 + $0x120] sm:$0xff] }
  0x4a   : > { %v648_v52 = vsub.f32 %v636_v36, %v644_v44  ;;  %v649_v53 = vsub.f32 %v637_v37, %v645_v45  ;;  %v650_v54 = vsub.f32 %v638_v38, %v646_v46  ;;  %v651_v55 = vsub.f32 %v639_v39, %v647_v47  ;;  %v2132_v47 = vld [vmem:[%s2440_s11 + $0x9] ss:$0 sm:$0xff] }
  0x4b   : > { %v660_v58 = vmul.f32 %v2112_v27, %v2103_v15  ;;  %v661_v59 = vmul.f32 %v2112_v27, %v2104_v20  ;;  %v662_v60 = vmul.f32 %v2112_v27, %v2105_v21  ;;  %v663_v61 = vmul.f32 %v2112_v27, %v2106_v22 }
  0x4c   : > { %v652_v1 = vadd.f32 %v648_v52, %v600_v23  ;;  %v653_v2 = vadd.f32 %v649_v53, %v601_v24  ;;  %v654_v3 = vadd.f32 %v650_v54, %v602_v25  ;;  %v655_v4 = vadd.f32 %v651_v55, %v603_v26  ;;  %v2128_v53 = vld [vmem:[%s3273_s3 + $0x128] sm:$0xff]  ;;  %v2129_v54 = vld [vmem:[%s3273_s3 + $0x130] sm:$0xff]  ;;  %v2130_v55 = vld [vmem:[%s3273_s3 + $0x138] sm:$0xff] }
  0x4d   : > { %v664_v7 = vadd.f32 %v660_v58, %v656_v48  ;;  %v665_v8 = vadd.f32 %v661_v59, %v657_v49  ;;  %v666_v9 = vadd.f32 %v662_v60, %v658_v50  ;;  %v667_v10 = vadd.f32 %v663_v61, %v659_v51  ;;  %v2127_v48 = vld [vmem:[%s3273_s3 + $0x120] sm:$0xff] }
  0x4e   : > { %v688_v14 = vmul.f32 %v2121_v56, %v2113_v57  ;;  %v689_v15 = vmul.f32 %v2121_v56, %v2114_v62  ;;  %v690_v16 = vmul.f32 %v2121_v56, %v2115_v63  ;;  %v691_v17 = vmul.f32 %v2121_v56, %v2116_v0 }
  0x4f   : > { %v668_v18 = vadd.f32 %v664_v7, %v616_v40  ;;  %v669_v19 = vadd.f32 %v665_v8, %v617_v41  ;;  %v670_v20 = vadd.f32 %v666_v9, %v618_v42  ;;  %v671_v21 = vadd.f32 %v667_v10, %v619_v43  ;;  %v2124_v40 = vld [vmem:[%s3272_s2 + $0x128] sm:$0xff]  ;;  %v2125_v41 = vld [vmem:[%s3272_s2 + $0x130] sm:$0xff]  ;;  %v2126_v42 = vld [vmem:[%s3272_s2 + $0x138] sm:$0xff] }
  0x50   : > { %v696_v22 = vmul.f32 %v2122_v5, %v2117_v6  ;;  %v697_v23 = vmul.f32 %v2122_v5, %v2118_v11  ;;  %v698_v24 = vmul.f32 %v2122_v5, %v2119_v12  ;;  %v699_v25 = vmul.f32 %v2122_v5, %v2120_v13 }
  0x51   : > { %v708_v26 = vmul.f32 %v2121_v56, %v2117_v6  ;;  %v709_v27 = vmul.f32 %v2121_v56, %v2118_v11  ;;  %v710_v28 = vmul.f32 %v2121_v56, %v2119_v12  ;;  %v711_v29 = vmul.f32 %v2121_v56, %v2120_v13  ;;  %v2141_v12 = vld [vmem:[%s2434_s8 + $0xa] ss:$0 sm:$0xff]  ;;  %v2133_v13 = vld [vmem:[%s3272_s2 + $0x140] sm:$0xff] }
  0x52   : > { %v700_v30 = vsub.f32 %v688_v14, %v696_v22  ;;  %v701_v31 = vsub.f32 %v689_v15, %v697_v23  ;;  %v702_v32 = vsub.f32 %v690_v16, %v698_v24  ;;  %v703_v33 = vsub.f32 %v691_v17, %v699_v25  ;;  %v2142_v25 = vld [vmem:[%s2440_s11 + $0xa] ss:$0 sm:$0xff] }
  0x53   : > { %v712_v36 = vmul.f32 %v2122_v5, %v2113_v57  ;;  %v713_v37 = vmul.f32 %v2122_v5, %v2114_v62  ;;  %v714_v38 = vmul.f32 %v2122_v5, %v2115_v63  ;;  %v715_v39 = vmul.f32 %v2122_v5, %v2116_v0 }
  0x54   : > { %v704_v43 = vadd.f32 %v700_v30, %v652_v1  ;;  %v705_v44 = vadd.f32 %v701_v31, %v653_v2  ;;  %v706_v45 = vadd.f32 %v702_v32, %v654_v3  ;;  %v707_v46 = vadd.f32 %v703_v33, %v655_v4  ;;  %v2138_v31 = vld [vmem:[%s3273_s3 + $0x148] sm:$0xff]  ;;  %v2139_v32 = vld [vmem:[%s3273_s3 + $0x150] sm:$0xff]  ;;  %v2140_v33 = vld [vmem:[%s3273_s3 + $0x158] sm:$0xff] }
  0x55   : > { %v716_v49 = vadd.f32 %v712_v36, %v708_v26  ;;  %v717_v50 = vadd.f32 %v713_v37, %v709_v27  ;;  %v718_v51 = vadd.f32 %v714_v38, %v710_v28  ;;  %v719_v52 = vadd.f32 %v715_v39, %v711_v29  ;;  %v2137_v26 = vld [vmem:[%s3273_s3 + $0x140] sm:$0xff] }
  0x56   : > { %v740_v56 = vmul.f32 %v2131_v34, %v2123_v35  ;;  %v741_v57 = vmul.f32 %v2131_v34, %v2124_v40  ;;  %v742_v58 = vmul.f32 %v2131_v34, %v2125_v41  ;;  %v743_v59 = vmul.f32 %v2131_v34, %v2126_v42 }
  0x57   : > { %v720_v60 = vadd.f32 %v716_v49, %v668_v18  ;;  %v721_v61 = vadd.f32 %v717_v50, %v669_v19  ;;  %v722_v62 = vadd.f32 %v718_v51, %v670_v20  ;;  %v723_v63 = vadd.f32 %v719_v52, %v671_v21  ;;  %v2134_v18 = vld [vmem:[%s3272_s2 + $0x148] sm:$0xff]  ;;  %v2135_v19 = vld [vmem:[%s3272_s2 + $0x150] sm:$0xff]  ;;  %v2136_v20 = vld [vmem:[%s3272_s2 + $0x158] sm:$0xff] }
  0x58   : > { %v748_v0 = vmul.f32 %v2132_v47, %v2127_v48  ;;  %v749_v1 = vmul.f32 %v2132_v47, %v2128_v53  ;;  %v750_v2 = vmul.f32 %v2132_v47, %v2129_v54  ;;  %v751_v3 = vmul.f32 %v2132_v47, %v2130_v55 }
  0x59   : > { %v760_v4 = vmul.f32 %v2131_v34, %v2127_v48  ;;  %v761_v5 = vmul.f32 %v2131_v34, %v2128_v53  ;;  %v762_v6 = vmul.f32 %v2131_v34, %v2129_v54  ;;  %v763_v7 = vmul.f32 %v2131_v34, %v2130_v55  ;;  %v2151_v54 = vld [vmem:[%s2434_s8 + $0xb] ss:$0 sm:$0xff]  ;;  %v2143_v55 = vld [vmem:[%s3272_s2 + $0x160] sm:$0xff] }
  0x5a   : > { %v752_v8 = vsub.f32 %v740_v56, %v748_v0  ;;  %v753_v9 = vsub.f32 %v741_v57, %v749_v1  ;;  %v754_v10 = vsub.f32 %v742_v58, %v750_v2  ;;  %v755_v11 = vsub.f32 %v743_v59, %v751_v3  ;;  %v2152_v3 = vld [vmem:[%s2440_s11 + $0xb] ss:$0 sm:$0xff] }
  0x5b   : > { %v764_v14 = vmul.f32 %v2132_v47, %v2123_v35  ;;  %v765_v15 = vmul.f32 %v2132_v47, %v2124_v40  ;;  %v766_v16 = vmul.f32 %v2132_v47, %v2125_v41  ;;  %v767_v17 = vmul.f32 %v2132_v47, %v2126_v42 }
  0x5c   : > { %v756_v21 = vadd.f32 %v752_v8, %v704_v43  ;;  %v757_v22 = vadd.f32 %v753_v9, %v705_v44  ;;  %v758_v23 = vadd.f32 %v754_v10, %v706_v45  ;;  %v759_v24 = vadd.f32 %v755_v11, %v707_v46  ;;  %v2148_v9 = vld [vmem:[%s3273_s3 + $0x168] sm:$0xff]  ;;  %v2149_v10 = vld [vmem:[%s3273_s3 + $0x170] sm:$0xff]  ;;  %v2150_v11 = vld [vmem:[%s3273_s3 + $0x178] sm:$0xff] }
  0x5d   : > { %v768_v27 = vadd.f32 %v764_v14, %v760_v4  ;;  %v769_v28 = vadd.f32 %v765_v15, %v761_v5  ;;  %v770_v29 = vadd.f32 %v766_v16, %v762_v6  ;;  %v771_v30 = vadd.f32 %v767_v17, %v763_v7  ;;  %v2147_v4 = vld [vmem:[%s3273_s3 + $0x160] sm:$0xff] }
  0x5e   : > { %v792_v34 = vmul.f32 %v2141_v12, %v2133_v13  ;;  %v793_v35 = vmul.f32 %v2141_v12, %v2134_v18  ;;  %v794_v36 = vmul.f32 %v2141_v12, %v2135_v19  ;;  %v795_v37 = vmul.f32 %v2141_v12, %v2136_v20 }
  0x5f   : > { %v772_v38 = vadd.f32 %v768_v27, %v720_v60  ;;  %v773_v39 = vadd.f32 %v769_v28, %v721_v61  ;;  %v774_v40 = vadd.f32 %v770_v29, %v722_v62  ;;  %v775_v41 = vadd.f32 %v771_v30, %v723_v63  ;;  %v2144_v60 = vld [vmem:[%s3272_s2 + $0x168] sm:$0xff]  ;;  %v2145_v61 = vld [vmem:[%s3272_s2 + $0x170] sm:$0xff]  ;;  %v2146_v62 = vld [vmem:[%s3272_s2 + $0x178] sm:$0xff] }
  0x60   : > { %v800_v42 = vmul.f32 %v2142_v25, %v2137_v26  ;;  %v801_v43 = vmul.f32 %v2142_v25, %v2138_v31  ;;  %v802_v44 = vmul.f32 %v2142_v25, %v2139_v32  ;;  %v803_v45 = vmul.f32 %v2142_v25, %v2140_v33 }
  0x61   : > { %v812_v46 = vmul.f32 %v2141_v12, %v2137_v26  ;;  %v813_v47 = vmul.f32 %v2141_v12, %v2138_v31  ;;  %v814_v48 = vmul.f32 %v2141_v12, %v2139_v32  ;;  %v815_v49 = vmul.f32 %v2141_v12, %v2140_v33  ;;  %v2161_v32 = vld [vmem:[%s2434_s8 + $0xc] ss:$0 sm:$0xff]  ;;  %v2153_v33 = vld [vmem:[%s3272_s2 + $0x180] sm:$0xff] }
  0x62   : > { %v804_v50 = vsub.f32 %v792_v34, %v800_v42  ;;  %v805_v51 = vsub.f32 %v793_v35, %v801_v43  ;;  %v806_v52 = vsub.f32 %v794_v36, %v802_v44  ;;  %v807_v53 = vsub.f32 %v795_v37, %v803_v45  ;;  %v2162_v45 = vld [vmem:[%s2440_s11 + $0xc] ss:$0 sm:$0xff] }
  0x63   : > { %v816_v56 = vmul.f32 %v2142_v25, %v2133_v13  ;;  %v817_v57 = vmul.f32 %v2142_v25, %v2134_v18  ;;  %v818_v58 = vmul.f32 %v2142_v25, %v2135_v19  ;;  %v819_v59 = vmul.f32 %v2142_v25, %v2136_v20 }
  0x64   : > { %v808_v63 = vadd.f32 %v804_v50, %v756_v21  ;;  %v809_v0 = vadd.f32 %v805_v51, %v757_v22  ;;  %v810_v1 = vadd.f32 %v806_v52, %v758_v23  ;;  %v811_v2 = vadd.f32 %v807_v53, %v759_v24  ;;  %v2158_v51 = vld [vmem:[%s3273_s3 + $0x188] sm:$0xff]  ;;  %v2159_v52 = vld [vmem:[%s3273_s3 + $0x190] sm:$0xff]  ;;  %v2160_v53 = vld [vmem:[%s3273_s3 + $0x198] sm:$0xff] }
  0x65   : > { %v820_v5 = vadd.f32 %v816_v56, %v812_v46  ;;  %v821_v6 = vadd.f32 %v817_v57, %v813_v47  ;;  %v822_v7 = vadd.f32 %v818_v58, %v814_v48  ;;  %v823_v8 = vadd.f32 %v819_v59, %v815_v49  ;;  %v2157_v46 = vld [vmem:[%s3273_s3 + $0x180] sm:$0xff] }
  0x66   : > { %v844_v12 = vmul.f32 %v2151_v54, %v2143_v55  ;;  %v845_v13 = vmul.f32 %v2151_v54, %v2144_v60  ;;  %v846_v14 = vmul.f32 %v2151_v54, %v2145_v61  ;;  %v847_v15 = vmul.f32 %v2151_v54, %v2146_v62 }
  0x67   : > { %v824_v16 = vadd.f32 %v820_v5, %v772_v38  ;;  %v825_v17 = vadd.f32 %v821_v6, %v773_v39  ;;  %v826_v18 = vadd.f32 %v822_v7, %v774_v40  ;;  %v827_v19 = vadd.f32 %v823_v8, %v775_v41  ;;  %v2154_v38 = vld [vmem:[%s3272_s2 + $0x188] sm:$0xff]  ;;  %v2155_v39 = vld [vmem:[%s3272_s2 + $0x190] sm:$0xff]  ;;  %v2156_v40 = vld [vmem:[%s3272_s2 + $0x198] sm:$0xff] }
  0x68   : > { %v852_v20 = vmul.f32 %v2152_v3, %v2147_v4  ;;  %v853_v21 = vmul.f32 %v2152_v3, %v2148_v9  ;;  %v854_v22 = vmul.f32 %v2152_v3, %v2149_v10  ;;  %v855_v23 = vmul.f32 %v2152_v3, %v2150_v11 }
  0x69   : > { %v864_v24 = vmul.f32 %v2151_v54, %v2147_v4  ;;  %v865_v25 = vmul.f32 %v2151_v54, %v2148_v9  ;;  %v866_v26 = vmul.f32 %v2151_v54, %v2149_v10  ;;  %v867_v27 = vmul.f32 %v2151_v54, %v2150_v11  ;;  %v2171_v10 = vld [vmem:[%s2434_s8 + $0xd] ss:$0 sm:$0xff]  ;;  %v2163_v11 = vld [vmem:[%s3272_s2 + $0x1a0] sm:$0xff] }
  0x6a   : > { %v856_v28 = vsub.f32 %v844_v12, %v852_v20  ;;  %v857_v29 = vsub.f32 %v845_v13, %v853_v21  ;;  %v858_v30 = vsub.f32 %v846_v14, %v854_v22  ;;  %v859_v31 = vsub.f32 %v847_v15, %v855_v23  ;;  %v2172_v23 = vld [vmem:[%s2440_s11 + $0xd] ss:$0 sm:$0xff] }
  0x6b   : > { %v868_v34 = vmul.f32 %v2152_v3, %v2143_v55  ;;  %v869_v35 = vmul.f32 %v2152_v3, %v2144_v60  ;;  %v870_v36 = vmul.f32 %v2152_v3, %v2145_v61  ;;  %v871_v37 = vmul.f32 %v2152_v3, %v2146_v62 }
  0x6c   : > { %v860_v41 = vadd.f32 %v856_v28, %v808_v63  ;;  %v861_v42 = vadd.f32 %v857_v29, %v809_v0  ;;  %v862_v43 = vadd.f32 %v858_v30, %v810_v1  ;;  %v863_v44 = vadd.f32 %v859_v31, %v811_v2  ;;  %v2168_v29 = vld [vmem:[%s3273_s3 + $0x1a8] sm:$0xff]  ;;  %v2169_v30 = vld [vmem:[%s3273_s3 + $0x1b0] sm:$0xff]  ;;  %v2170_v31 = vld [vmem:[%s3273_s3 + $0x1b8] sm:$0xff] }
  0x6d   : > { %v872_v47 = vadd.f32 %v868_v34, %v864_v24  ;;  %v873_v48 = vadd.f32 %v869_v35, %v865_v25  ;;  %v874_v49 = vadd.f32 %v870_v36, %v866_v26  ;;  %v875_v50 = vadd.f32 %v871_v37, %v867_v27  ;;  %v2167_v24 = vld [vmem:[%s3273_s3 + $0x1a0] sm:$0xff] }
  0x6e   : > { %v896_v54 = vmul.f32 %v2161_v32, %v2153_v33  ;;  %v897_v55 = vmul.f32 %v2161_v32, %v2154_v38  ;;  %v898_v56 = vmul.f32 %v2161_v32, %v2155_v39  ;;  %v899_v57 = vmul.f32 %v2161_v32, %v2156_v40 }
  0x6f   : > { %v876_v58 = vadd.f32 %v872_v47, %v824_v16  ;;  %v877_v59 = vadd.f32 %v873_v48, %v825_v17  ;;  %v878_v60 = vadd.f32 %v874_v49, %v826_v18  ;;  %v879_v61 = vadd.f32 %v875_v50, %v827_v19  ;;  %v2164_v16 = vld [vmem:[%s3272_s2 + $0x1a8] sm:$0xff]  ;;  %v2165_v17 = vld [vmem:[%s3272_s2 + $0x1b0] sm:$0xff]  ;;  %v2166_v18 = vld [vmem:[%s3272_s2 + $0x1b8] sm:$0xff] }
  0x70   : > { %v904_v62 = vmul.f32 %v2162_v45, %v2157_v46  ;;  %v905_v63 = vmul.f32 %v2162_v45, %v2158_v51  ;;  %v906_v0 = vmul.f32 %v2162_v45, %v2159_v52  ;;  %v907_v1 = vmul.f32 %v2162_v45, %v2160_v53 }
  0x71   : > { %v916_v2 = vmul.f32 %v2161_v32, %v2157_v46  ;;  %v917_v3 = vmul.f32 %v2161_v32, %v2158_v51  ;;  %v918_v4 = vmul.f32 %v2161_v32, %v2159_v52  ;;  %v919_v5 = vmul.f32 %v2161_v32, %v2160_v53  ;;  %v2181_v52 = vld [vmem:[%s2434_s8 + $0xe] ss:$0 sm:$0xff]  ;;  %v2173_v53 = vld [vmem:[%s3272_s2 + $0x1c0] sm:$0xff] }
  0x72   : > { %v908_v6 = vsub.f32 %v896_v54, %v904_v62  ;;  %v909_v7 = vsub.f32 %v897_v55, %v905_v63  ;;  %v910_v8 = vsub.f32 %v898_v56, %v906_v0  ;;  %v911_v9 = vsub.f32 %v899_v57, %v907_v1  ;;  %v2182_v1 = vld [vmem:[%s2440_s11 + $0xe] ss:$0 sm:$0xff] }
  0x73   : > { %v920_v12 = vmul.f32 %v2162_v45, %v2153_v33  ;;  %v921_v13 = vmul.f32 %v2162_v45, %v2154_v38  ;;  %v922_v14 = vmul.f32 %v2162_v45, %v2155_v39  ;;  %v923_v15 = vmul.f32 %v2162_v45, %v2156_v40 }
  0x74   : > { %v912_v19 = vadd.f32 %v908_v6, %v860_v41  ;;  %v913_v20 = vadd.f32 %v909_v7, %v861_v42  ;;  %v914_v21 = vadd.f32 %v910_v8, %v862_v43  ;;  %v915_v22 = vadd.f32 %v911_v9, %v863_v44  ;;  %v2178_v7 = vld [vmem:[%s3273_s3 + $0x1c8] sm:$0xff]  ;;  %v2179_v8 = vld [vmem:[%s3273_s3 + $0x1d0] sm:$0xff]  ;;  %v2180_v9 = vld [vmem:[%s3273_s3 + $0x1d8] sm:$0xff] }
  0x75   : > { %v924_v25 = vadd.f32 %v920_v12, %v916_v2  ;;  %v925_v26 = vadd.f32 %v921_v13, %v917_v3  ;;  %v926_v27 = vadd.f32 %v922_v14, %v918_v4  ;;  %v927_v28 = vadd.f32 %v923_v15, %v919_v5  ;;  %v2177_v2 = vld [vmem:[%s3273_s3 + $0x1c0] sm:$0xff] }
  0x76   : > { %v948_v32 = vmul.f32 %v2171_v10, %v2163_v11  ;;  %v949_v33 = vmul.f32 %v2171_v10, %v2164_v16  ;;  %v950_v34 = vmul.f32 %v2171_v10, %v2165_v17  ;;  %v951_v35 = vmul.f32 %v2171_v10, %v2166_v18 }
  0x77   : > { %v928_v36 = vadd.f32 %v924_v25, %v876_v58  ;;  %v929_v37 = vadd.f32 %v925_v26, %v877_v59  ;;  %v930_v38 = vadd.f32 %v926_v27, %v878_v60  ;;  %v931_v39 = vadd.f32 %v927_v28, %v879_v61  ;;  %v2174_v58 = vld [vmem:[%s3272_s2 + $0x1c8] sm:$0xff]  ;;  %v2175_v59 = vld [vmem:[%s3272_s2 + $0x1d0] sm:$0xff]  ;;  %v2176_v60 = vld [vmem:[%s3272_s2 + $0x1d8] sm:$0xff] }
  0x78   : > { %v956_v40 = vmul.f32 %v2172_v23, %v2167_v24  ;;  %v957_v41 = vmul.f32 %v2172_v23, %v2168_v29  ;;  %v958_v42 = vmul.f32 %v2172_v23, %v2169_v30  ;;  %v959_v43 = vmul.f32 %v2172_v23, %v2170_v31 }
  0x79   : > { %v968_v44 = vmul.f32 %v2171_v10, %v2167_v24  ;;  %v969_v45 = vmul.f32 %v2171_v10, %v2168_v29  ;;  %v970_v46 = vmul.f32 %v2171_v10, %v2169_v30  ;;  %v971_v47 = vmul.f32 %v2171_v10, %v2170_v31  ;;  %v2191_v30 = vld [vmem:[%s2434_s8 + $0xf] ss:$0 sm:$0xff]  ;;  %v2183_v31 = vld [vmem:[%s3272_s2 + $0x1e0] sm:$0xff] }
  0x7a   : > { %v960_v48 = vsub.f32 %v948_v32, %v956_v40  ;;  %v961_v49 = vsub.f32 %v949_v33, %v957_v41  ;;  %v962_v50 = vsub.f32 %v950_v34, %v958_v42  ;;  %v963_v51 = vsub.f32 %v951_v35, %v959_v43  ;;  %v2192_v43 = vld [vmem:[%s2440_s11 + $0xf] ss:$0 sm:$0xff] }
  0x7b   : > { %v972_v54 = vmul.f32 %v2172_v23, %v2163_v11  ;;  %v973_v55 = vmul.f32 %v2172_v23, %v2164_v16  ;;  %v974_v56 = vmul.f32 %v2172_v23, %v2165_v17  ;;  %v975_v57 = vmul.f32 %v2172_v23, %v2166_v18 }
  0x7c   : > { %v964_v61 = vadd.f32 %v960_v48, %v912_v19  ;;  %v965_v62 = vadd.f32 %v961_v49, %v913_v20  ;;  %v966_v63 = vadd.f32 %v962_v50, %v914_v21  ;;  %v967_v0 = vadd.f32 %v963_v51, %v915_v22  ;;  %v2188_v49 = vld [vmem:[%s3273_s3 + $0x1e8] sm:$0xff]  ;;  %v2189_v50 = vld [vmem:[%s3273_s3 + $0x1f0] sm:$0xff]  ;;  %v2190_v51 = vld [vmem:[%s3273_s3 + $0x1f8] sm:$0xff] }
  0x7d   : > { %v976_v3 = vadd.f32 %v972_v54, %v968_v44  ;;  %v977_v4 = vadd.f32 %v973_v55, %v969_v45  ;;  %v978_v5 = vadd.f32 %v974_v56, %v970_v46  ;;  %v979_v6 = vadd.f32 %v975_v57, %v971_v47  ;;  %v2187_v44 = vld [vmem:[%s3273_s3 + $0x1e0] sm:$0xff] }
  0x7e   : > { %v1000_v10 = vmul.f32 %v2181_v52, %v2173_v53  ;;  %v1001_v11 = vmul.f32 %v2181_v52, %v2174_v58  ;;  %v1002_v12 = vmul.f32 %v2181_v52, %v2175_v59  ;;  %v1003_v13 = vmul.f32 %v2181_v52, %v2176_v60 }
  0x7f   : > { %v980_v14 = vadd.f32 %v976_v3, %v928_v36  ;;  %v981_v15 = vadd.f32 %v977_v4, %v929_v37  ;;  %v982_v16 = vadd.f32 %v978_v5, %v930_v38  ;;  %v983_v17 = vadd.f32 %v979_v6, %v931_v39  ;;  %v2184_v36 = vld [vmem:[%s3272_s2 + $0x1e8] sm:$0xff]  ;;  %v2185_v37 = vld [vmem:[%s3272_s2 + $0x1f0] sm:$0xff]  ;;  %v2186_v38 = vld [vmem:[%s3272_s2 + $0x1f8] sm:$0xff] }
  0x80   : > { %v1008_v18 = vmul.f32 %v2182_v1, %v2177_v2  ;;  %v1009_v19 = vmul.f32 %v2182_v1, %v2178_v7  ;;  %v1010_v20 = vmul.f32 %v2182_v1, %v2179_v8  ;;  %v1011_v21 = vmul.f32 %v2182_v1, %v2180_v9 }
  0x81   : > { %v1020_v22 = vmul.f32 %v2181_v52, %v2177_v2  ;;  %v1021_v23 = vmul.f32 %v2181_v52, %v2178_v7  ;;  %v1022_v24 = vmul.f32 %v2181_v52, %v2179_v8  ;;  %v1023_v25 = vmul.f32 %v2181_v52, %v2180_v9  ;;  %v2201_v8 = vld [vmem:[%s2434_s8 + $0x10] ss:$0 sm:$0xff]  ;;  %v2193_v9 = vld [vmem:[%s3272_s2 + $0x200] sm:$0xff] }
  0x82   : > { %v1012_v26 = vsub.f32 %v1000_v10, %v1008_v18  ;;  %v1013_v27 = vsub.f32 %v1001_v11, %v1009_v19  ;;  %v1014_v28 = vsub.f32 %v1002_v12, %v1010_v20  ;;  %v1015_v29 = vsub.f32 %v1003_v13, %v1011_v21  ;;  %v2202_v21 = vld [vmem:[%s2440_s11 + $0x10] ss:$0 sm:$0xff] }
  0x83   : > { %v1024_v32 = vmul.f32 %v2182_v1, %v2173_v53  ;;  %v1025_v33 = vmul.f32 %v2182_v1, %v2174_v58  ;;  %v1026_v34 = vmul.f32 %v2182_v1, %v2175_v59  ;;  %v1027_v35 = vmul.f32 %v2182_v1, %v2176_v60 }
  0x84   : > { %v1016_v39 = vadd.f32 %v1012_v26, %v964_v61  ;;  %v1017_v40 = vadd.f32 %v1013_v27, %v965_v62  ;;  %v1018_v41 = vadd.f32 %v1014_v28, %v966_v63  ;;  %v1019_v42 = vadd.f32 %v1015_v29, %v967_v0  ;;  %v2198_v27 = vld [vmem:[%s3273_s3 + $0x208] sm:$0xff]  ;;  %v2199_v28 = vld [vmem:[%s3273_s3 + $0x210] sm:$0xff]  ;;  %v2200_v29 = vld [vmem:[%s3273_s3 + $0x218] sm:$0xff] }
  0x85   : > { %v1028_v45 = vadd.f32 %v1024_v32, %v1020_v22  ;;  %v1029_v46 = vadd.f32 %v1025_v33, %v1021_v23  ;;  %v1030_v47 = vadd.f32 %v1026_v34, %v1022_v24  ;;  %v1031_v48 = vadd.f32 %v1027_v35, %v1023_v25  ;;  %v2197_v22 = vld [vmem:[%s3273_s3 + $0x200] sm:$0xff] }
  0x86   : > { %v1052_v52 = vmul.f32 %v2191_v30, %v2183_v31  ;;  %v1053_v53 = vmul.f32 %v2191_v30, %v2184_v36  ;;  %v1054_v54 = vmul.f32 %v2191_v30, %v2185_v37  ;;  %v1055_v55 = vmul.f32 %v2191_v30, %v2186_v38 }
  0x87   : > { %v1032_v56 = vadd.f32 %v1028_v45, %v980_v14  ;;  %v1033_v57 = vadd.f32 %v1029_v46, %v981_v15  ;;  %v1034_v58 = vadd.f32 %v1030_v47, %v982_v16  ;;  %v1035_v59 = vadd.f32 %v1031_v48, %v983_v17  ;;  %v2194_v14 = vld [vmem:[%s3272_s2 + $0x208] sm:$0xff]  ;;  %v2195_v15 = vld [vmem:[%s3272_s2 + $0x210] sm:$0xff]  ;;  %v2196_v16 = vld [vmem:[%s3272_s2 + $0x218] sm:$0xff] }
  0x88   : > { %v1060_v60 = vmul.f32 %v2192_v43, %v2187_v44  ;;  %v1061_v61 = vmul.f32 %v2192_v43, %v2188_v49  ;;  %v1062_v62 = vmul.f32 %v2192_v43, %v2189_v50  ;;  %v1063_v63 = vmul.f32 %v2192_v43, %v2190_v51 }
  0x89   : > { %v1072_v0 = vmul.f32 %v2191_v30, %v2187_v44  ;;  %v1073_v1 = vmul.f32 %v2191_v30, %v2188_v49  ;;  %v1074_v2 = vmul.f32 %v2191_v30, %v2189_v50  ;;  %v1075_v3 = vmul.f32 %v2191_v30, %v2190_v51  ;;  %v2211_v50 = vld [vmem:[%s2434_s8 + $0x11] ss:$0 sm:$0xff]  ;;  %v2203_v51 = vld [vmem:[%s3272_s2 + $0x220] sm:$0xff] }
  0x8a   : > { %v1064_v4 = vsub.f32 %v1052_v52, %v1060_v60  ;;  %v1065_v5 = vsub.f32 %v1053_v53, %v1061_v61  ;;  %v1066_v6 = vsub.f32 %v1054_v54, %v1062_v62  ;;  %v1067_v7 = vsub.f32 %v1055_v55, %v1063_v63  ;;  %v2212_v63 = vld [vmem:[%s2440_s11 + $0x11] ss:$0 sm:$0xff] }
  0x8b   : > { %v1076_v10 = vmul.f32 %v2192_v43, %v2183_v31  ;;  %v1077_v11 = vmul.f32 %v2192_v43, %v2184_v36  ;;  %v1078_v12 = vmul.f32 %v2192_v43, %v2185_v37  ;;  %v1079_v13 = vmul.f32 %v2192_v43, %v2186_v38 }
  0x8c   : > { %v1068_v17 = vadd.f32 %v1064_v4, %v1016_v39  ;;  %v1069_v18 = vadd.f32 %v1065_v5, %v1017_v40  ;;  %v1070_v19 = vadd.f32 %v1066_v6, %v1018_v41  ;;  %v1071_v20 = vadd.f32 %v1067_v7, %v1019_v42  ;;  %v2208_v5 = vld [vmem:[%s3273_s3 + $0x228] sm:$0xff]  ;;  %v2209_v6 = vld [vmem:[%s3273_s3 + $0x230] sm:$0xff]  ;;  %v2210_v7 = vld [vmem:[%s3273_s3 + $0x238] sm:$0xff] }
  0x8d   : > { %v1080_v23 = vadd.f32 %v1076_v10, %v1072_v0  ;;  %v1081_v24 = vadd.f32 %v1077_v11, %v1073_v1  ;;  %v1082_v25 = vadd.f32 %v1078_v12, %v1074_v2  ;;  %v1083_v26 = vadd.f32 %v1079_v13, %v1075_v3  ;;  %v2207_v0 = vld [vmem:[%s3273_s3 + $0x220] sm:$0xff] }
  0x8e   : > { %v1104_v30 = vmul.f32 %v2201_v8, %v2193_v9  ;;  %v1105_v31 = vmul.f32 %v2201_v8, %v2194_v14  ;;  %v1106_v32 = vmul.f32 %v2201_v8, %v2195_v15  ;;  %v1107_v33 = vmul.f32 %v2201_v8, %v2196_v16 }
  0x8f   : > { %v1084_v34 = vadd.f32 %v1080_v23, %v1032_v56  ;;  %v1085_v35 = vadd.f32 %v1081_v24, %v1033_v57  ;;  %v1086_v36 = vadd.f32 %v1082_v25, %v1034_v58  ;;  %v1087_v37 = vadd.f32 %v1083_v26, %v1035_v59  ;;  %v2204_v56 = vld [vmem:[%s3272_s2 + $0x228] sm:$0xff]  ;;  %v2205_v57 = vld [vmem:[%s3272_s2 + $0x230] sm:$0xff]  ;;  %v2206_v58 = vld [vmem:[%s3272_s2 + $0x238] sm:$0xff] }
  0x90   : > { %v1112_v38 = vmul.f32 %v2202_v21, %v2197_v22  ;;  %v1113_v39 = vmul.f32 %v2202_v21, %v2198_v27  ;;  %v1114_v40 = vmul.f32 %v2202_v21, %v2199_v28  ;;  %v1115_v41 = vmul.f32 %v2202_v21, %v2200_v29 }
  0x91   : > { %v1124_v42 = vmul.f32 %v2201_v8, %v2197_v22  ;;  %v1125_v43 = vmul.f32 %v2201_v8, %v2198_v27  ;;  %v1126_v44 = vmul.f32 %v2201_v8, %v2199_v28  ;;  %v1127_v45 = vmul.f32 %v2201_v8, %v2200_v29  ;;  %v2221_v28 = vld [vmem:[%s2434_s8 + $0x12] ss:$0 sm:$0xff]  ;;  %v2213_v29 = vld [vmem:[%s3272_s2 + $0x240] sm:$0xff] }
  0x92   : > { %v1116_v46 = vsub.f32 %v1104_v30, %v1112_v38  ;;  %v1117_v47 = vsub.f32 %v1105_v31, %v1113_v39  ;;  %v1118_v48 = vsub.f32 %v1106_v32, %v1114_v40  ;;  %v1119_v49 = vsub.f32 %v1107_v33, %v1115_v41  ;;  %v2222_v41 = vld [vmem:[%s2440_s11 + $0x12] ss:$0 sm:$0xff] }
  0x93   : > { %v1128_v52 = vmul.f32 %v2202_v21, %v2193_v9  ;;  %v1129_v53 = vmul.f32 %v2202_v21, %v2194_v14  ;;  %v1130_v54 = vmul.f32 %v2202_v21, %v2195_v15  ;;  %v1131_v55 = vmul.f32 %v2202_v21, %v2196_v16 }
  0x94   : > { %v1120_v59 = vadd.f32 %v1116_v46, %v1068_v17  ;;  %v1121_v60 = vadd.f32 %v1117_v47, %v1069_v18  ;;  %v1122_v61 = vadd.f32 %v1118_v48, %v1070_v19  ;;  %v1123_v62 = vadd.f32 %v1119_v49, %v1071_v20  ;;  %v2218_v47 = vld [vmem:[%s3273_s3 + $0x248] sm:$0xff]  ;;  %v2219_v48 = vld [vmem:[%s3273_s3 + $0x250] sm:$0xff]  ;;  %v2220_v49 = vld [vmem:[%s3273_s3 + $0x258] sm:$0xff] }
  0x95   : > { %v1132_v1 = vadd.f32 %v1128_v52, %v1124_v42  ;;  %v1133_v2 = vadd.f32 %v1129_v53, %v1125_v43  ;;  %v1134_v3 = vadd.f32 %v1130_v54, %v1126_v44  ;;  %v1135_v4 = vadd.f32 %v1131_v55, %v1127_v45  ;;  %v2217_v42 = vld [vmem:[%s3273_s3 + $0x240] sm:$0xff] }
  0x96   : > { %v1156_v8 = vmul.f32 %v2211_v50, %v2203_v51  ;;  %v1157_v9 = vmul.f32 %v2211_v50, %v2204_v56  ;;  %v1158_v10 = vmul.f32 %v2211_v50, %v2205_v57  ;;  %v1159_v11 = vmul.f32 %v2211_v50, %v2206_v58 }
  0x97   : > { %v1136_v12 = vadd.f32 %v1132_v1, %v1084_v34  ;;  %v1137_v13 = vadd.f32 %v1133_v2, %v1085_v35  ;;  %v1138_v14 = vadd.f32 %v1134_v3, %v1086_v36  ;;  %v1139_v15 = vadd.f32 %v1135_v4, %v1087_v37  ;;  %v2214_v34 = vld [vmem:[%s3272_s2 + $0x248] sm:$0xff]  ;;  %v2215_v35 = vld [vmem:[%s3272_s2 + $0x250] sm:$0xff]  ;;  %v2216_v36 = vld [vmem:[%s3272_s2 + $0x258] sm:$0xff] }
  0x98   : > { %v1164_v16 = vmul.f32 %v2212_v63, %v2207_v0  ;;  %v1165_v17 = vmul.f32 %v2212_v63, %v2208_v5  ;;  %v1166_v18 = vmul.f32 %v2212_v63, %v2209_v6  ;;  %v1167_v19 = vmul.f32 %v2212_v63, %v2210_v7 }
  0x99   : > { %v1176_v20 = vmul.f32 %v2211_v50, %v2207_v0  ;;  %v1177_v21 = vmul.f32 %v2211_v50, %v2208_v5  ;;  %v1178_v22 = vmul.f32 %v2211_v50, %v2209_v6  ;;  %v1179_v23 = vmul.f32 %v2211_v50, %v2210_v7  ;;  %v2231_v6 = vld [vmem:[%s2434_s8 + $0x13] ss:$0 sm:$0xff]  ;;  %v2223_v7 = vld [vmem:[%s3272_s2 + $0x260] sm:$0xff] }
  0x9a   : > { %v1168_v24 = vsub.f32 %v1156_v8, %v1164_v16  ;;  %v1169_v25 = vsub.f32 %v1157_v9, %v1165_v17  ;;  %v1170_v26 = vsub.f32 %v1158_v10, %v1166_v18  ;;  %v1171_v27 = vsub.f32 %v1159_v11, %v1167_v19  ;;  %v2232_v19 = vld [vmem:[%s2440_s11 + $0x13] ss:$0 sm:$0xff] }
  0x9b   : > { %v1180_v30 = vmul.f32 %v2212_v63, %v2203_v51  ;;  %v1181_v31 = vmul.f32 %v2212_v63, %v2204_v56  ;;  %v1182_v32 = vmul.f32 %v2212_v63, %v2205_v57  ;;  %v1183_v33 = vmul.f32 %v2212_v63, %v2206_v58 }
  0x9c   : > { %v1172_v37 = vadd.f32 %v1168_v24, %v1120_v59  ;;  %v1173_v38 = vadd.f32 %v1169_v25, %v1121_v60  ;;  %v1174_v39 = vadd.f32 %v1170_v26, %v1122_v61  ;;  %v1175_v40 = vadd.f32 %v1171_v27, %v1123_v62  ;;  %v2228_v25 = vld [vmem:[%s3273_s3 + $0x268] sm:$0xff]  ;;  %v2229_v26 = vld [vmem:[%s3273_s3 + $0x270] sm:$0xff]  ;;  %v2230_v27 = vld [vmem:[%s3273_s3 + $0x278] sm:$0xff] }
  0x9d   : > { %v1184_v43 = vadd.f32 %v1180_v30, %v1176_v20  ;;  %v1185_v44 = vadd.f32 %v1181_v31, %v1177_v21  ;;  %v1186_v45 = vadd.f32 %v1182_v32, %v1178_v22  ;;  %v1187_v46 = vadd.f32 %v1183_v33, %v1179_v23  ;;  %v2227_v20 = vld [vmem:[%s3273_s3 + $0x260] sm:$0xff] }
  0x9e   : > { %v1208_v50 = vmul.f32 %v2221_v28, %v2213_v29  ;;  %v1209_v51 = vmul.f32 %v2221_v28, %v2214_v34  ;;  %v1210_v52 = vmul.f32 %v2221_v28, %v2215_v35  ;;  %v1211_v53 = vmul.f32 %v2221_v28, %v2216_v36 }
  0x9f   : > { %v1188_v54 = vadd.f32 %v1184_v43, %v1136_v12  ;;  %v1189_v55 = vadd.f32 %v1185_v44, %v1137_v13  ;;  %v1190_v56 = vadd.f32 %v1186_v45, %v1138_v14  ;;  %v1191_v57 = vadd.f32 %v1187_v46, %v1139_v15  ;;  %v2224_v12 = vld [vmem:[%s3272_s2 + $0x268] sm:$0xff]  ;;  %v2225_v13 = vld [vmem:[%s3272_s2 + $0x270] sm:$0xff]  ;;  %v2226_v14 = vld [vmem:[%s3272_s2 + $0x278] sm:$0xff] }
  0xa0   : > { %v1216_v58 = vmul.f32 %v2222_v41, %v2217_v42  ;;  %v1217_v59 = vmul.f32 %v2222_v41, %v2218_v47  ;;  %v1218_v60 = vmul.f32 %v2222_v41, %v2219_v48  ;;  %v1219_v61 = vmul.f32 %v2222_v41, %v2220_v49 }
  0xa1   : > { %v1228_v62 = vmul.f32 %v2221_v28, %v2217_v42  ;;  %v1229_v63 = vmul.f32 %v2221_v28, %v2218_v47  ;;  %v1230_v0 = vmul.f32 %v2221_v28, %v2219_v48  ;;  %v1231_v1 = vmul.f32 %v2221_v28, %v2220_v49  ;;  %v2241_v48 = vld [vmem:[%s2434_s8 + $0x14] ss:$0 sm:$0xff]  ;;  %v2233_v49 = vld [vmem:[%s3272_s2 + $0x280] sm:$0xff] }
  0xa2   : > { %v1220_v2 = vsub.f32 %v1208_v50, %v1216_v58  ;;  %v1221_v3 = vsub.f32 %v1209_v51, %v1217_v59  ;;  %v1222_v4 = vsub.f32 %v1210_v52, %v1218_v60  ;;  %v1223_v5 = vsub.f32 %v1211_v53, %v1219_v61  ;;  %v2242_v61 = vld [vmem:[%s2440_s11 + $0x14] ss:$0 sm:$0xff] }
  0xa3   : > { %v1232_v8 = vmul.f32 %v2222_v41, %v2213_v29  ;;  %v1233_v9 = vmul.f32 %v2222_v41, %v2214_v34  ;;  %v1234_v10 = vmul.f32 %v2222_v41, %v2215_v35  ;;  %v1235_v11 = vmul.f32 %v2222_v41, %v2216_v36 }
  0xa4   : > { %v1224_v15 = vadd.f32 %v1220_v2, %v1172_v37  ;;  %v1225_v16 = vadd.f32 %v1221_v3, %v1173_v38  ;;  %v1226_v17 = vadd.f32 %v1222_v4, %v1174_v39  ;;  %v1227_v18 = vadd.f32 %v1223_v5, %v1175_v40  ;;  %v2238_v3 = vld [vmem:[%s3273_s3 + $0x288] sm:$0xff]  ;;  %v2239_v4 = vld [vmem:[%s3273_s3 + $0x290] sm:$0xff]  ;;  %v2240_v5 = vld [vmem:[%s3273_s3 + $0x298] sm:$0xff] }
  0xa5   : > { %v1236_v21 = vadd.f32 %v1232_v8, %v1228_v62  ;;  %v1237_v22 = vadd.f32 %v1233_v9, %v1229_v63  ;;  %v1238_v23 = vadd.f32 %v1234_v10, %v1230_v0  ;;  %v1239_v24 = vadd.f32 %v1235_v11, %v1231_v1  ;;  %v2237_v62 = vld [vmem:[%s3273_s3 + $0x280] sm:$0xff] }
  0xa6   : > { %v1260_v28 = vmul.f32 %v2231_v6, %v2223_v7  ;;  %v1261_v29 = vmul.f32 %v2231_v6, %v2224_v12  ;;  %v1262_v30 = vmul.f32 %v2231_v6, %v2225_v13  ;;  %v1263_v31 = vmul.f32 %v2231_v6, %v2226_v14 }
  0xa7   : > { %v1240_v32 = vadd.f32 %v1236_v21, %v1188_v54  ;;  %v1241_v33 = vadd.f32 %v1237_v22, %v1189_v55  ;;  %v1242_v34 = vadd.f32 %v1238_v23, %v1190_v56  ;;  %v1243_v35 = vadd.f32 %v1239_v24, %v1191_v57  ;;  %v2234_v54 = vld [vmem:[%s3272_s2 + $0x288] sm:$0xff]  ;;  %v2235_v55 = vld [vmem:[%s3272_s2 + $0x290] sm:$0xff]  ;;  %v2236_v56 = vld [vmem:[%s3272_s2 + $0x298] sm:$0xff] }
  0xa8   : > { %v1268_v36 = vmul.f32 %v2232_v19, %v2227_v20  ;;  %v1269_v37 = vmul.f32 %v2232_v19, %v2228_v25  ;;  %v1270_v38 = vmul.f32 %v2232_v19, %v2229_v26  ;;  %v1271_v39 = vmul.f32 %v2232_v19, %v2230_v27 }
  0xa9   : > { %v1280_v40 = vmul.f32 %v2231_v6, %v2227_v20  ;;  %v1281_v41 = vmul.f32 %v2231_v6, %v2228_v25  ;;  %v1282_v42 = vmul.f32 %v2231_v6, %v2229_v26  ;;  %v1283_v43 = vmul.f32 %v2231_v6, %v2230_v27  ;;  %v2251_v26 = vld [vmem:[%s2434_s8 + $0x15] ss:$0 sm:$0xff]  ;;  %v2243_v27 = vld [vmem:[%s3272_s2 + $0x2a0] sm:$0xff] }
  0xaa   : > { %v1272_v44 = vsub.f32 %v1260_v28, %v1268_v36  ;;  %v1273_v45 = vsub.f32 %v1261_v29, %v1269_v37  ;;  %v1274_v46 = vsub.f32 %v1262_v30, %v1270_v38  ;;  %v1275_v47 = vsub.f32 %v1263_v31, %v1271_v39  ;;  %v2252_v39 = vld [vmem:[%s2440_s11 + $0x15] ss:$0 sm:$0xff] }
  0xab   : > { %v1284_v50 = vmul.f32 %v2232_v19, %v2223_v7  ;;  %v1285_v51 = vmul.f32 %v2232_v19, %v2224_v12  ;;  %v1286_v52 = vmul.f32 %v2232_v19, %v2225_v13  ;;  %v1287_v53 = vmul.f32 %v2232_v19, %v2226_v14 }
  0xac   : > { %v1276_v57 = vadd.f32 %v1272_v44, %v1224_v15  ;;  %v1277_v58 = vadd.f32 %v1273_v45, %v1225_v16  ;;  %v1278_v59 = vadd.f32 %v1274_v46, %v1226_v17  ;;  %v1279_v60 = vadd.f32 %v1275_v47, %v1227_v18  ;;  %v2248_v45 = vld [vmem:[%s3273_s3 + $0x2a8] sm:$0xff]  ;;  %v2249_v46 = vld [vmem:[%s3273_s3 + $0x2b0] sm:$0xff]  ;;  %v2250_v47 = vld [vmem:[%s3273_s3 + $0x2b8] sm:$0xff] }
  0xad   : > { %v1288_v63 = vadd.f32 %v1284_v50, %v1280_v40  ;;  %v1289_v0 = vadd.f32 %v1285_v51, %v1281_v41  ;;  %v1290_v1 = vadd.f32 %v1286_v52, %v1282_v42  ;;  %v1291_v2 = vadd.f32 %v1287_v53, %v1283_v43  ;;  %v2247_v40 = vld [vmem:[%s3273_s3 + $0x2a0] sm:$0xff] }
  0xae   : > { %v1312_v6 = vmul.f32 %v2241_v48, %v2233_v49  ;;  %v1313_v7 = vmul.f32 %v2241_v48, %v2234_v54  ;;  %v1314_v8 = vmul.f32 %v2241_v48, %v2235_v55  ;;  %v1315_v9 = vmul.f32 %v2241_v48, %v2236_v56 }
  0xaf   : > { %v1292_v10 = vadd.f32 %v1288_v63, %v1240_v32  ;;  %v1293_v11 = vadd.f32 %v1289_v0, %v1241_v33  ;;  %v1294_v12 = vadd.f32 %v1290_v1, %v1242_v34  ;;  %v1295_v13 = vadd.f32 %v1291_v2, %v1243_v35  ;;  %v2244_v32 = vld [vmem:[%s3272_s2 + $0x2a8] sm:$0xff]  ;;  %v2245_v33 = vld [vmem:[%s3272_s2 + $0x2b0] sm:$0xff]  ;;  %v2246_v34 = vld [vmem:[%s3272_s2 + $0x2b8] sm:$0xff] }
  0xb0   : > { %v1320_v14 = vmul.f32 %v2242_v61, %v2237_v62  ;;  %v1321_v15 = vmul.f32 %v2242_v61, %v2238_v3  ;;  %v1322_v16 = vmul.f32 %v2242_v61, %v2239_v4  ;;  %v1323_v17 = vmul.f32 %v2242_v61, %v2240_v5 }
  0xb1   : > { %v1332_v18 = vmul.f32 %v2241_v48, %v2237_v62  ;;  %v1333_v19 = vmul.f32 %v2241_v48, %v2238_v3  ;;  %v1334_v20 = vmul.f32 %v2241_v48, %v2239_v4  ;;  %v1335_v21 = vmul.f32 %v2241_v48, %v2240_v5  ;;  %v2261_v4 = vld [vmem:[%s2434_s8 + $0x16] ss:$0 sm:$0xff]  ;;  %v2253_v5 = vld [vmem:[%s3272_s2 + $0x2c0] sm:$0xff] }
  0xb2   : > { %v1324_v22 = vsub.f32 %v1312_v6, %v1320_v14  ;;  %v1325_v23 = vsub.f32 %v1313_v7, %v1321_v15  ;;  %v1326_v24 = vsub.f32 %v1314_v8, %v1322_v16  ;;  %v1327_v25 = vsub.f32 %v1315_v9, %v1323_v17  ;;  %v2262_v17 = vld [vmem:[%s2440_s11 + $0x16] ss:$0 sm:$0xff] }
  0xb3   : > { %v1336_v28 = vmul.f32 %v2242_v61, %v2233_v49  ;;  %v1337_v29 = vmul.f32 %v2242_v61, %v2234_v54  ;;  %v1338_v30 = vmul.f32 %v2242_v61, %v2235_v55  ;;  %v1339_v31 = vmul.f32 %v2242_v61, %v2236_v56 }
  0xb4   : > { %v1328_v35 = vadd.f32 %v1324_v22, %v1276_v57  ;;  %v1329_v36 = vadd.f32 %v1325_v23, %v1277_v58  ;;  %v1330_v37 = vadd.f32 %v1326_v24, %v1278_v59  ;;  %v1331_v38 = vadd.f32 %v1327_v25, %v1279_v60  ;;  %v2258_v23 = vld [vmem:[%s3273_s3 + $0x2c8] sm:$0xff]  ;;  %v2259_v24 = vld [vmem:[%s3273_s3 + $0x2d0] sm:$0xff]  ;;  %v2260_v25 = vld [vmem:[%s3273_s3 + $0x2d8] sm:$0xff] }
  0xb5   : > { %v1340_v41 = vadd.f32 %v1336_v28, %v1332_v18  ;;  %v1341_v42 = vadd.f32 %v1337_v29, %v1333_v19  ;;  %v1342_v43 = vadd.f32 %v1338_v30, %v1334_v20  ;;  %v1343_v44 = vadd.f32 %v1339_v31, %v1335_v21  ;;  %v2257_v18 = vld [vmem:[%s3273_s3 + $0x2c0] sm:$0xff] }
  0xb6   : > { %v1364_v48 = vmul.f32 %v2251_v26, %v2243_v27  ;;  %v1365_v49 = vmul.f32 %v2251_v26, %v2244_v32  ;;  %v1366_v50 = vmul.f32 %v2251_v26, %v2245_v33  ;;  %v1367_v51 = vmul.f32 %v2251_v26, %v2246_v34 }
  0xb7   : > { %v1344_v52 = vadd.f32 %v1340_v41, %v1292_v10  ;;  %v1345_v53 = vadd.f32 %v1341_v42, %v1293_v11  ;;  %v1346_v54 = vadd.f32 %v1342_v43, %v1294_v12  ;;  %v1347_v55 = vadd.f32 %v1343_v44, %v1295_v13  ;;  %v2254_v10 = vld [vmem:[%s3272_s2 + $0x2c8] sm:$0xff]  ;;  %v2255_v11 = vld [vmem:[%s3272_s2 + $0x2d0] sm:$0xff]  ;;  %v2256_v12 = vld [vmem:[%s3272_s2 + $0x2d8] sm:$0xff] }
  0xb8   : > { %v1372_v56 = vmul.f32 %v2252_v39, %v2247_v40  ;;  %v1373_v57 = vmul.f32 %v2252_v39, %v2248_v45  ;;  %v1374_v58 = vmul.f32 %v2252_v39, %v2249_v46  ;;  %v1375_v59 = vmul.f32 %v2252_v39, %v2250_v47 }
  0xb9   : > { %v1384_v60 = vmul.f32 %v2251_v26, %v2247_v40  ;;  %v1385_v61 = vmul.f32 %v2251_v26, %v2248_v45  ;;  %v1386_v62 = vmul.f32 %v2251_v26, %v2249_v46  ;;  %v1387_v63 = vmul.f32 %v2251_v26, %v2250_v47  ;;  %v2271_v46 = vld [vmem:[%s2434_s8 + $0x17] ss:$0 sm:$0xff]  ;;  %v2263_v47 = vld [vmem:[%s3272_s2 + $0x2e0] sm:$0xff] }
  0xba   : > { %v1376_v0 = vsub.f32 %v1364_v48, %v1372_v56  ;;  %v1377_v1 = vsub.f32 %v1365_v49, %v1373_v57  ;;  %v1378_v2 = vsub.f32 %v1366_v50, %v1374_v58  ;;  %v1379_v3 = vsub.f32 %v1367_v51, %v1375_v59  ;;  %v2272_v59 = vld [vmem:[%s2440_s11 + $0x17] ss:$0 sm:$0xff] }
  0xbb   : > { %v1388_v6 = vmul.f32 %v2252_v39, %v2243_v27  ;;  %v1389_v7 = vmul.f32 %v2252_v39, %v2244_v32  ;;  %v1390_v8 = vmul.f32 %v2252_v39, %v2245_v33  ;;  %v1391_v9 = vmul.f32 %v2252_v39, %v2246_v34 }
  0xbc   : > { %v1380_v13 = vadd.f32 %v1376_v0, %v1328_v35  ;;  %v1381_v14 = vadd.f32 %v1377_v1, %v1329_v36  ;;  %v1382_v15 = vadd.f32 %v1378_v2, %v1330_v37  ;;  %v1383_v16 = vadd.f32 %v1379_v3, %v1331_v38  ;;  %v2268_v1 = vld [vmem:[%s3273_s3 + $0x2e8] sm:$0xff]  ;;  %v2269_v2 = vld [vmem:[%s3273_s3 + $0x2f0] sm:$0xff]  ;;  %v2270_v3 = vld [vmem:[%s3273_s3 + $0x2f8] sm:$0xff] }
  0xbd   : > { %v1392_v19 = vadd.f32 %v1388_v6, %v1384_v60  ;;  %v1393_v20 = vadd.f32 %v1389_v7, %v1385_v61  ;;  %v1394_v21 = vadd.f32 %v1390_v8, %v1386_v62  ;;  %v1395_v22 = vadd.f32 %v1391_v9, %v1387_v63  ;;  %v2267_v60 = vld [vmem:[%s3273_s3 + $0x2e0] sm:$0xff] }
  0xbe   : > { %v1416_v26 = vmul.f32 %v2261_v4, %v2253_v5  ;;  %v1417_v27 = vmul.f32 %v2261_v4, %v2254_v10  ;;  %v1418_v28 = vmul.f32 %v2261_v4, %v2255_v11  ;;  %v1419_v29 = vmul.f32 %v2261_v4, %v2256_v12 }
  0xbf   : > { %v1396_v30 = vadd.f32 %v1392_v19, %v1344_v52  ;;  %v1397_v31 = vadd.f32 %v1393_v20, %v1345_v53  ;;  %v1398_v32 = vadd.f32 %v1394_v21, %v1346_v54  ;;  %v1399_v33 = vadd.f32 %v1395_v22, %v1347_v55  ;;  %v2264_v52 = vld [vmem:[%s3272_s2 + $0x2e8] sm:$0xff]  ;;  %v2265_v53 = vld [vmem:[%s3272_s2 + $0x2f0] sm:$0xff]  ;;  %v2266_v54 = vld [vmem:[%s3272_s2 + $0x2f8] sm:$0xff] }
  0xc0   : > { %v1424_v34 = vmul.f32 %v2262_v17, %v2257_v18  ;;  %v1425_v35 = vmul.f32 %v2262_v17, %v2258_v23  ;;  %v1426_v36 = vmul.f32 %v2262_v17, %v2259_v24  ;;  %v1427_v37 = vmul.f32 %v2262_v17, %v2260_v25 }
  0xc1   : > { %v1436_v38 = vmul.f32 %v2261_v4, %v2257_v18  ;;  %v1437_v39 = vmul.f32 %v2261_v4, %v2258_v23  ;;  %v1438_v40 = vmul.f32 %v2261_v4, %v2259_v24  ;;  %v1439_v41 = vmul.f32 %v2261_v4, %v2260_v25  ;;  %v2281_v24 = vld [vmem:[%s2434_s8 + $0x18] ss:$0 sm:$0xff]  ;;  %v2273_v25 = vld [vmem:[%s3272_s2 + $0x300] sm:$0xff] }
  0xc2   : > { %v1428_v42 = vsub.f32 %v1416_v26, %v1424_v34  ;;  %v1429_v43 = vsub.f32 %v1417_v27, %v1425_v35  ;;  %v1430_v44 = vsub.f32 %v1418_v28, %v1426_v36  ;;  %v1431_v45 = vsub.f32 %v1419_v29, %v1427_v37  ;;  %v2282_v37 = vld [vmem:[%s2440_s11 + $0x18] ss:$0 sm:$0xff] }
  0xc3   : > { %v1440_v48 = vmul.f32 %v2262_v17, %v2253_v5  ;;  %v1441_v49 = vmul.f32 %v2262_v17, %v2254_v10  ;;  %v1442_v50 = vmul.f32 %v2262_v17, %v2255_v11  ;;  %v1443_v51 = vmul.f32 %v2262_v17, %v2256_v12 }
  0xc4   : > { %v1432_v55 = vadd.f32 %v1428_v42, %v1380_v13  ;;  %v1433_v56 = vadd.f32 %v1429_v43, %v1381_v14  ;;  %v1434_v57 = vadd.f32 %v1430_v44, %v1382_v15  ;;  %v1435_v58 = vadd.f32 %v1431_v45, %v1383_v16  ;;  %v2278_v43 = vld [vmem:[%s3273_s3 + $0x308] sm:$0xff]  ;;  %v2279_v44 = vld [vmem:[%s3273_s3 + $0x310] sm:$0xff]  ;;  %v2280_v45 = vld [vmem:[%s3273_s3 + $0x318] sm:$0xff] }
  0xc5   : > { %v1444_v61 = vadd.f32 %v1440_v48, %v1436_v38  ;;  %v1445_v62 = vadd.f32 %v1441_v49, %v1437_v39  ;;  %v1446_v63 = vadd.f32 %v1442_v50, %v1438_v40  ;;  %v1447_v0 = vadd.f32 %v1443_v51, %v1439_v41  ;;  %v2277_v38 = vld [vmem:[%s3273_s3 + $0x300] sm:$0xff] }
  0xc6   : > { %v1468_v4 = vmul.f32 %v2271_v46, %v2263_v47  ;;  %v1469_v5 = vmul.f32 %v2271_v46, %v2264_v52  ;;  %v1470_v6 = vmul.f32 %v2271_v46, %v2265_v53  ;;  %v1471_v7 = vmul.f32 %v2271_v46, %v2266_v54 }
  0xc7   : > { %v1448_v8 = vadd.f32 %v1444_v61, %v1396_v30  ;;  %v1449_v9 = vadd.f32 %v1445_v62, %v1397_v31  ;;  %v1450_v10 = vadd.f32 %v1446_v63, %v1398_v32  ;;  %v1451_v11 = vadd.f32 %v1447_v0, %v1399_v33  ;;  %v2274_v30 = vld [vmem:[%s3272_s2 + $0x308] sm:$0xff]  ;;  %v2275_v31 = vld [vmem:[%s3272_s2 + $0x310] sm:$0xff]  ;;  %v2276_v32 = vld [vmem:[%s3272_s2 + $0x318] sm:$0xff] }
  0xc8   : > { %v1476_v12 = vmul.f32 %v2272_v59, %v2267_v60  ;;  %v1477_v13 = vmul.f32 %v2272_v59, %v2268_v1  ;;  %v1478_v14 = vmul.f32 %v2272_v59, %v2269_v2  ;;  %v1479_v15 = vmul.f32 %v2272_v59, %v2270_v3 }
  0xc9   : > { %v1488_v16 = vmul.f32 %v2271_v46, %v2267_v60  ;;  %v1489_v17 = vmul.f32 %v2271_v46, %v2268_v1  ;;  %v1490_v18 = vmul.f32 %v2271_v46, %v2269_v2  ;;  %v1491_v19 = vmul.f32 %v2271_v46, %v2270_v3  ;;  %v2291_v2 = vld [vmem:[%s2434_s8 + $0x19] ss:$0 sm:$0xff]  ;;  %v2283_v3 = vld [vmem:[%s3272_s2 + $0x320] sm:$0xff] }
  0xca   : > { %v1480_v20 = vsub.f32 %v1468_v4, %v1476_v12  ;;  %v1481_v21 = vsub.f32 %v1469_v5, %v1477_v13  ;;  %v1482_v22 = vsub.f32 %v1470_v6, %v1478_v14  ;;  %v1483_v23 = vsub.f32 %v1471_v7, %v1479_v15  ;;  %v2292_v15 = vld [vmem:[%s2440_s11 + $0x19] ss:$0 sm:$0xff] }
  0xcb   : > { %v1492_v26 = vmul.f32 %v2272_v59, %v2263_v47  ;;  %v1493_v27 = vmul.f32 %v2272_v59, %v2264_v52  ;;  %v1494_v28 = vmul.f32 %v2272_v59, %v2265_v53  ;;  %v1495_v29 = vmul.f32 %v2272_v59, %v2266_v54 }
  0xcc   : > { %v1484_v33 = vadd.f32 %v1480_v20, %v1432_v55  ;;  %v1485_v34 = vadd.f32 %v1481_v21, %v1433_v56  ;;  %v1486_v35 = vadd.f32 %v1482_v22, %v1434_v57  ;;  %v1487_v36 = vadd.f32 %v1483_v23, %v1435_v58  ;;  %v2288_v21 = vld [vmem:[%s3273_s3 + $0x328] sm:$0xff]  ;;  %v2289_v22 = vld [vmem:[%s3273_s3 + $0x330] sm:$0xff]  ;;  %v2290_v23 = vld [vmem:[%s3273_s3 + $0x338] sm:$0xff] }
  0xcd   : > { %v1496_v39 = vadd.f32 %v1492_v26, %v1488_v16  ;;  %v1497_v40 = vadd.f32 %v1493_v27, %v1489_v17  ;;  %v1498_v41 = vadd.f32 %v1494_v28, %v1490_v18  ;;  %v1499_v42 = vadd.f32 %v1495_v29, %v1491_v19  ;;  %v2287_v16 = vld [vmem:[%s3273_s3 + $0x320] sm:$0xff] }
  0xce   : > { %v1520_v46 = vmul.f32 %v2281_v24, %v2273_v25  ;;  %v1521_v47 = vmul.f32 %v2281_v24, %v2274_v30  ;;  %v1522_v48 = vmul.f32 %v2281_v24, %v2275_v31  ;;  %v1523_v49 = vmul.f32 %v2281_v24, %v2276_v32 }
  0xcf   : > { %v1500_v50 = vadd.f32 %v1496_v39, %v1448_v8  ;;  %v1501_v51 = vadd.f32 %v1497_v40, %v1449_v9  ;;  %v1502_v52 = vadd.f32 %v1498_v41, %v1450_v10  ;;  %v1503_v53 = vadd.f32 %v1499_v42, %v1451_v11  ;;  %v2284_v8 = vld [vmem:[%s3272_s2 + $0x328] sm:$0xff]  ;;  %v2285_v9 = vld [vmem:[%s3272_s2 + $0x330] sm:$0xff]  ;;  %v2286_v10 = vld [vmem:[%s3272_s2 + $0x338] sm:$0xff] }
  0xd0   : > { %v1528_v54 = vmul.f32 %v2282_v37, %v2277_v38  ;;  %v1529_v55 = vmul.f32 %v2282_v37, %v2278_v43  ;;  %v1530_v56 = vmul.f32 %v2282_v37, %v2279_v44  ;;  %v1531_v57 = vmul.f32 %v2282_v37, %v2280_v45 }
  0xd1   : > { %v1540_v58 = vmul.f32 %v2281_v24, %v2277_v38  ;;  %v1541_v59 = vmul.f32 %v2281_v24, %v2278_v43  ;;  %v1542_v60 = vmul.f32 %v2281_v24, %v2279_v44  ;;  %v1543_v61 = vmul.f32 %v2281_v24, %v2280_v45  ;;  %v2301_v44 = vld [vmem:[%s2434_s8 + $0x1a] ss:$0 sm:$0xff]  ;;  %v2293_v45 = vld [vmem:[%s3272_s2 + $0x340] sm:$0xff] }
  0xd2   : > { %v1532_v62 = vsub.f32 %v1520_v46, %v1528_v54  ;;  %v1533_v63 = vsub.f32 %v1521_v47, %v1529_v55  ;;  %v1534_v0 = vsub.f32 %v1522_v48, %v1530_v56  ;;  %v1535_v1 = vsub.f32 %v1523_v49, %v1531_v57  ;;  %v2302_v57 = vld [vmem:[%s2440_s11 + $0x1a] ss:$0 sm:$0xff] }
  0xd3   : > { %v1544_v4 = vmul.f32 %v2282_v37, %v2273_v25  ;;  %v1545_v5 = vmul.f32 %v2282_v37, %v2274_v30  ;;  %v1546_v6 = vmul.f32 %v2282_v37, %v2275_v31  ;;  %v1547_v7 = vmul.f32 %v2282_v37, %v2276_v32 }
  0xd4   : > { %v1536_v11 = vadd.f32 %v1532_v62, %v1484_v33  ;;  %v1537_v12 = vadd.f32 %v1533_v63, %v1485_v34  ;;  %v1538_v13 = vadd.f32 %v1534_v0, %v1486_v35  ;;  %v1539_v14 = vadd.f32 %v1535_v1, %v1487_v36  ;;  %v2298_v63 = vld [vmem:[%s3273_s3 + $0x348] sm:$0xff]  ;;  %v2299_v0 = vld [vmem:[%s3273_s3 + $0x350] sm:$0xff]  ;;  %v2300_v1 = vld [vmem:[%s3273_s3 + $0x358] sm:$0xff] }
  0xd5   : > { %v1548_v17 = vadd.f32 %v1544_v4, %v1540_v58  ;;  %v1549_v18 = vadd.f32 %v1545_v5, %v1541_v59  ;;  %v1550_v19 = vadd.f32 %v1546_v6, %v1542_v60  ;;  %v1551_v20 = vadd.f32 %v1547_v7, %v1543_v61  ;;  %v2297_v58 = vld [vmem:[%s3273_s3 + $0x340] sm:$0xff] }
  0xd6   : > { %v1572_v24 = vmul.f32 %v2291_v2, %v2283_v3  ;;  %v1573_v25 = vmul.f32 %v2291_v2, %v2284_v8  ;;  %v1574_v26 = vmul.f32 %v2291_v2, %v2285_v9  ;;  %v1575_v27 = vmul.f32 %v2291_v2, %v2286_v10 }
  0xd7   : > { %v1552_v28 = vadd.f32 %v1548_v17, %v1500_v50  ;;  %v1553_v29 = vadd.f32 %v1549_v18, %v1501_v51  ;;  %v1554_v30 = vadd.f32 %v1550_v19, %v1502_v52  ;;  %v1555_v31 = vadd.f32 %v1551_v20, %v1503_v53  ;;  %v2294_v50 = vld [vmem:[%s3272_s2 + $0x348] sm:$0xff]  ;;  %v2295_v51 = vld [vmem:[%s3272_s2 + $0x350] sm:$0xff]  ;;  %v2296_v52 = vld [vmem:[%s3272_s2 + $0x358] sm:$0xff] }
  0xd8   : > { %v1580_v32 = vmul.f32 %v2292_v15, %v2287_v16  ;;  %v1581_v33 = vmul.f32 %v2292_v15, %v2288_v21  ;;  %v1582_v34 = vmul.f32 %v2292_v15, %v2289_v22  ;;  %v1583_v35 = vmul.f32 %v2292_v15, %v2290_v23 }
  0xd9   : > { %v1592_v36 = vmul.f32 %v2291_v2, %v2287_v16  ;;  %v1593_v37 = vmul.f32 %v2291_v2, %v2288_v21  ;;  %v1594_v38 = vmul.f32 %v2291_v2, %v2289_v22  ;;  %v1595_v39 = vmul.f32 %v2291_v2, %v2290_v23  ;;  %v2311_v22 = vld [vmem:[%s2434_s8 + $0x1b] ss:$0 sm:$0xff]  ;;  %v2303_v23 = vld [vmem:[%s3272_s2 + $0x360] sm:$0xff] }
  0xda   : > { %v1584_v40 = vsub.f32 %v1572_v24, %v1580_v32  ;;  %v1585_v41 = vsub.f32 %v1573_v25, %v1581_v33  ;;  %v1586_v42 = vsub.f32 %v1574_v26, %v1582_v34  ;;  %v1587_v43 = vsub.f32 %v1575_v27, %v1583_v35  ;;  %v2312_v35 = vld [vmem:[%s2440_s11 + $0x1b] ss:$0 sm:$0xff] }
  0xdb   : > { %v1596_v46 = vmul.f32 %v2292_v15, %v2283_v3  ;;  %v1597_v47 = vmul.f32 %v2292_v15, %v2284_v8  ;;  %v1598_v48 = vmul.f32 %v2292_v15, %v2285_v9  ;;  %v1599_v49 = vmul.f32 %v2292_v15, %v2286_v10 }
  0xdc   : > { %v1588_v53 = vadd.f32 %v1584_v40, %v1536_v11  ;;  %v1589_v54 = vadd.f32 %v1585_v41, %v1537_v12  ;;  %v1590_v55 = vadd.f32 %v1586_v42, %v1538_v13  ;;  %v1591_v56 = vadd.f32 %v1587_v43, %v1539_v14  ;;  %v2308_v41 = vld [vmem:[%s3273_s3 + $0x368] sm:$0xff]  ;;  %v2309_v42 = vld [vmem:[%s3273_s3 + $0x370] sm:$0xff]  ;;  %v2310_v43 = vld [vmem:[%s3273_s3 + $0x378] sm:$0xff] }
  0xdd   : > { %v1600_v59 = vadd.f32 %v1596_v46, %v1592_v36  ;;  %v1601_v60 = vadd.f32 %v1597_v47, %v1593_v37  ;;  %v1602_v61 = vadd.f32 %v1598_v48, %v1594_v38  ;;  %v1603_v62 = vadd.f32 %v1599_v49, %v1595_v39  ;;  %v2307_v36 = vld [vmem:[%s3273_s3 + $0x360] sm:$0xff] }
  0xde   : > { %v1624_v2 = vmul.f32 %v2301_v44, %v2293_v45  ;;  %v1625_v3 = vmul.f32 %v2301_v44, %v2294_v50  ;;  %v1626_v4 = vmul.f32 %v2301_v44, %v2295_v51  ;;  %v1627_v5 = vmul.f32 %v2301_v44, %v2296_v52 }
  0xdf   : > { %v1604_v6 = vadd.f32 %v1600_v59, %v1552_v28  ;;  %v1605_v7 = vadd.f32 %v1601_v60, %v1553_v29  ;;  %v1606_v8 = vadd.f32 %v1602_v61, %v1554_v30  ;;  %v1607_v9 = vadd.f32 %v1603_v62, %v1555_v31  ;;  %v2304_v28 = vld [vmem:[%s3272_s2 + $0x368] sm:$0xff]  ;;  %v2305_v29 = vld [vmem:[%s3272_s2 + $0x370] sm:$0xff]  ;;  %v2306_v30 = vld [vmem:[%s3272_s2 + $0x378] sm:$0xff] }
  0xe0   : > { %v1632_v10 = vmul.f32 %v2302_v57, %v2297_v58  ;;  %v1633_v11 = vmul.f32 %v2302_v57, %v2298_v63  ;;  %v1634_v12 = vmul.f32 %v2302_v57, %v2299_v0  ;;  %v1635_v13 = vmul.f32 %v2302_v57, %v2300_v1 }
  0xe1   : > { %v1644_v14 = vmul.f32 %v2301_v44, %v2297_v58  ;;  %v1645_v15 = vmul.f32 %v2301_v44, %v2298_v63  ;;  %v1646_v16 = vmul.f32 %v2301_v44, %v2299_v0  ;;  %v1647_v17 = vmul.f32 %v2301_v44, %v2300_v1  ;;  %v2321_v0 = vld [vmem:[%s2434_s8 + $0x1c] ss:$0 sm:$0xff]  ;;  %v2313_v1 = vld [vmem:[%s3272_s2 + $0x380] sm:$0xff] }
  0xe2   : > { %v1636_v18 = vsub.f32 %v1624_v2, %v1632_v10  ;;  %v1637_v19 = vsub.f32 %v1625_v3, %v1633_v11  ;;  %v1638_v20 = vsub.f32 %v1626_v4, %v1634_v12  ;;  %v1639_v21 = vsub.f32 %v1627_v5, %v1635_v13  ;;  %v2322_v13 = vld [vmem:[%s2440_s11 + $0x1c] ss:$0 sm:$0xff] }
  0xe3   : > { %v1648_v24 = vmul.f32 %v2302_v57, %v2293_v45  ;;  %v1649_v25 = vmul.f32 %v2302_v57, %v2294_v50  ;;  %v1650_v26 = vmul.f32 %v2302_v57, %v2295_v51  ;;  %v1651_v27 = vmul.f32 %v2302_v57, %v2296_v52 }
  0xe4   : > { %v1640_v31 = vadd.f32 %v1636_v18, %v1588_v53  ;;  %v1641_v32 = vadd.f32 %v1637_v19, %v1589_v54  ;;  %v1642_v33 = vadd.f32 %v1638_v20, %v1590_v55  ;;  %v1643_v34 = vadd.f32 %v1639_v21, %v1591_v56  ;;  %v2318_v19 = vld [vmem:[%s3273_s3 + $0x388] sm:$0xff]  ;;  %v2319_v20 = vld [vmem:[%s3273_s3 + $0x390] sm:$0xff]  ;;  %v2320_v21 = vld [vmem:[%s3273_s3 + $0x398] sm:$0xff] }
  0xe5   : > { %v1652_v37 = vadd.f32 %v1648_v24, %v1644_v14  ;;  %v1653_v38 = vadd.f32 %v1649_v25, %v1645_v15  ;;  %v1654_v39 = vadd.f32 %v1650_v26, %v1646_v16  ;;  %v1655_v40 = vadd.f32 %v1651_v27, %v1647_v17  ;;  %v2317_v14 = vld [vmem:[%s3273_s3 + $0x380] sm:$0xff] }
  0xe6   : > { %v1676_v44 = vmul.f32 %v2311_v22, %v2303_v23  ;;  %v1677_v45 = vmul.f32 %v2311_v22, %v2304_v28  ;;  %v1678_v46 = vmul.f32 %v2311_v22, %v2305_v29  ;;  %v1679_v47 = vmul.f32 %v2311_v22, %v2306_v30 }
  0xe7   : > { %v1656_v48 = vadd.f32 %v1652_v37, %v1604_v6  ;;  %v1657_v49 = vadd.f32 %v1653_v38, %v1605_v7  ;;  %v1658_v50 = vadd.f32 %v1654_v39, %v1606_v8  ;;  %v1659_v51 = vadd.f32 %v1655_v40, %v1607_v9  ;;  %v2314_v6 = vld [vmem:[%s3272_s2 + $0x388] sm:$0xff]  ;;  %v2315_v7 = vld [vmem:[%s3272_s2 + $0x390] sm:$0xff]  ;;  %v2316_v8 = vld [vmem:[%s3272_s2 + $0x398] sm:$0xff] }
  0xe8   : > { %v1684_v52 = vmul.f32 %v2312_v35, %v2307_v36  ;;  %v1685_v53 = vmul.f32 %v2312_v35, %v2308_v41  ;;  %v1686_v54 = vmul.f32 %v2312_v35, %v2309_v42  ;;  %v1687_v55 = vmul.f32 %v2312_v35, %v2310_v43 }
  0xe9   : > { %v1696_v56 = vmul.f32 %v2311_v22, %v2307_v36  ;;  %v1697_v57 = vmul.f32 %v2311_v22, %v2308_v41  ;;  %v1698_v58 = vmul.f32 %v2311_v22, %v2309_v42  ;;  %v1699_v59 = vmul.f32 %v2311_v22, %v2310_v43  ;;  %v2331_v42 = vld [vmem:[%s2434_s8 + $0x1d] ss:$0 sm:$0xff]  ;;  %v2323_v43 = vld [vmem:[%s3272_s2 + $0x3a0] sm:$0xff] }
  0xea   : > { %v1688_v60 = vsub.f32 %v1676_v44, %v1684_v52  ;;  %v1689_v61 = vsub.f32 %v1677_v45, %v1685_v53  ;;  %v1690_v62 = vsub.f32 %v1678_v46, %v1686_v54  ;;  %v1691_v63 = vsub.f32 %v1679_v47, %v1687_v55  ;;  %v2332_v55 = vld [vmem:[%s2440_s11 + $0x1d] ss:$0 sm:$0xff] }
  0xeb   : > { %v1700_v2 = vmul.f32 %v2312_v35, %v2303_v23  ;;  %v1701_v3 = vmul.f32 %v2312_v35, %v2304_v28  ;;  %v1702_v4 = vmul.f32 %v2312_v35, %v2305_v29  ;;  %v1703_v5 = vmul.f32 %v2312_v35, %v2306_v30 }
  0xec   : > { %v1692_v9 = vadd.f32 %v1688_v60, %v1640_v31  ;;  %v1693_v10 = vadd.f32 %v1689_v61, %v1641_v32  ;;  %v1694_v11 = vadd.f32 %v1690_v62, %v1642_v33  ;;  %v1695_v12 = vadd.f32 %v1691_v63, %v1643_v34  ;;  %v2328_v61 = vld [vmem:[%s3273_s3 + $0x3a8] sm:$0xff]  ;;  %v2329_v62 = vld [vmem:[%s3273_s3 + $0x3b0] sm:$0xff]  ;;  %v2330_v63 = vld [vmem:[%s3273_s3 + $0x3b8] sm:$0xff] }
  0xed   : > { %v1704_v15 = vadd.f32 %v1700_v2, %v1696_v56  ;;  %v1705_v16 = vadd.f32 %v1701_v3, %v1697_v57  ;;  %v1706_v17 = vadd.f32 %v1702_v4, %v1698_v58  ;;  %v1707_v18 = vadd.f32 %v1703_v5, %v1699_v59  ;;  %v2327_v56 = vld [vmem:[%s3273_s3 + $0x3a0] sm:$0xff] }
  0xee   : > { %v1728_v22 = vmul.f32 %v2321_v0, %v2313_v1  ;;  %v1729_v23 = vmul.f32 %v2321_v0, %v2314_v6  ;;  %v1730_v24 = vmul.f32 %v2321_v0, %v2315_v7  ;;  %v1731_v25 = vmul.f32 %v2321_v0, %v2316_v8 }
  0xef   : > { %v1708_v26 = vadd.f32 %v1704_v15, %v1656_v48  ;;  %v1709_v27 = vadd.f32 %v1705_v16, %v1657_v49  ;;  %v1710_v28 = vadd.f32 %v1706_v17, %v1658_v50  ;;  %v1711_v29 = vadd.f32 %v1707_v18, %v1659_v51  ;;  %v2324_v48 = vld [vmem:[%s3272_s2 + $0x3a8] sm:$0xff]  ;;  %v2325_v49 = vld [vmem:[%s3272_s2 + $0x3b0] sm:$0xff]  ;;  %v2326_v50 = vld [vmem:[%s3272_s2 + $0x3b8] sm:$0xff] }
  0xf0   : > { %v1736_v30 = vmul.f32 %v2322_v13, %v2317_v14  ;;  %v1737_v31 = vmul.f32 %v2322_v13, %v2318_v19  ;;  %v1738_v32 = vmul.f32 %v2322_v13, %v2319_v20  ;;  %v1739_v33 = vmul.f32 %v2322_v13, %v2320_v21 }
  0xf1   : > { %v1748_v34 = vmul.f32 %v2321_v0, %v2317_v14  ;;  %v1749_v35 = vmul.f32 %v2321_v0, %v2318_v19  ;;  %v1750_v36 = vmul.f32 %v2321_v0, %v2319_v20  ;;  %v1751_v37 = vmul.f32 %v2321_v0, %v2320_v21  ;;  %v2341_v20 = vld [vmem:[%s2434_s8 + $0x1e] ss:$0 sm:$0xff]  ;;  %v2333_v21 = vld [vmem:[%s3272_s2 + $0x3c0] sm:$0xff] }
  0xf2   : > { %v1740_v38 = vsub.f32 %v1728_v22, %v1736_v30  ;;  %v1741_v39 = vsub.f32 %v1729_v23, %v1737_v31  ;;  %v1742_v40 = vsub.f32 %v1730_v24, %v1738_v32  ;;  %v1743_v41 = vsub.f32 %v1731_v25, %v1739_v33  ;;  %v2342_v33 = vld [vmem:[%s2440_s11 + $0x1e] ss:$0 sm:$0xff] }
  0xf3   : > { %v1752_v44 = vmul.f32 %v2322_v13, %v2313_v1  ;;  %v1753_v45 = vmul.f32 %v2322_v13, %v2314_v6  ;;  %v1754_v46 = vmul.f32 %v2322_v13, %v2315_v7  ;;  %v1755_v47 = vmul.f32 %v2322_v13, %v2316_v8 }
  0xf4   : > { %v1744_v51 = vadd.f32 %v1740_v38, %v1692_v9  ;;  %v1745_v52 = vadd.f32 %v1741_v39, %v1693_v10  ;;  %v1746_v53 = vadd.f32 %v1742_v40, %v1694_v11  ;;  %v1747_v54 = vadd.f32 %v1743_v41, %v1695_v12  ;;  %v2338_v39 = vld [vmem:[%s3273_s3 + $0x3c8] sm:$0xff]  ;;  %v2339_v40 = vld [vmem:[%s3273_s3 + $0x3d0] sm:$0xff]  ;;  %v2340_v41 = vld [vmem:[%s3273_s3 + $0x3d8] sm:$0xff] }
  0xf5   : > { %v1756_v57 = vadd.f32 %v1752_v44, %v1748_v34  ;;  %v1757_v58 = vadd.f32 %v1753_v45, %v1749_v35  ;;  %v1758_v59 = vadd.f32 %v1754_v46, %v1750_v36  ;;  %v1759_v60 = vadd.f32 %v1755_v47, %v1751_v37  ;;  %v2337_v34 = vld [vmem:[%s3273_s3 + $0x3c0] sm:$0xff] }
  0xf6   : > { %v1780_v0 = vmul.f32 %v2331_v42, %v2323_v43  ;;  %v1781_v1 = vmul.f32 %v2331_v42, %v2324_v48  ;;  %v1782_v2 = vmul.f32 %v2331_v42, %v2325_v49  ;;  %v1783_v3 = vmul.f32 %v2331_v42, %v2326_v50 }
  0xf7   : > { %v1760_v4 = vadd.f32 %v1756_v57, %v1708_v26  ;;  %v1761_v5 = vadd.f32 %v1757_v58, %v1709_v27  ;;  %v1762_v6 = vadd.f32 %v1758_v59, %v1710_v28  ;;  %v1763_v7 = vadd.f32 %v1759_v60, %v1711_v29  ;;  %v2334_v26 = vld [vmem:[%s3272_s2 + $0x3c8] sm:$0xff]  ;;  %v2335_v27 = vld [vmem:[%s3272_s2 + $0x3d0] sm:$0xff]  ;;  %v2336_v28 = vld [vmem:[%s3272_s2 + $0x3d8] sm:$0xff] }
  0xf8   : > { %v1788_v8 = vmul.f32 %v2332_v55, %v2327_v56  ;;  %v1789_v9 = vmul.f32 %v2332_v55, %v2328_v61  ;;  %v1790_v10 = vmul.f32 %v2332_v55, %v2329_v62  ;;  %v1791_v11 = vmul.f32 %v2332_v55, %v2330_v63 }
  0xf9   : > { %v1800_v12 = vmul.f32 %v2331_v42, %v2327_v56  ;;  %v1801_v13 = vmul.f32 %v2331_v42, %v2328_v61  ;;  %v1802_v14 = vmul.f32 %v2331_v42, %v2329_v62  ;;  %v1803_v15 = vmul.f32 %v2331_v42, %v2330_v63  ;;  %v2351_v62 = vld [vmem:[%s2434_s8 + $0x1f] ss:$0 sm:$0xff]  ;;  %v2343_v63 = vld [vmem:[%s3272_s2 + $0x3e0] sm:$0xff] }
  0xfa   : > { %v1792_v16 = vsub.f32 %v1780_v0, %v1788_v8  ;;  %v1793_v17 = vsub.f32 %v1781_v1, %v1789_v9  ;;  %v1794_v18 = vsub.f32 %v1782_v2, %v1790_v10  ;;  %v1795_v19 = vsub.f32 %v1783_v3, %v1791_v11  ;;  %v2352_v11 = vld [vmem:[%s2440_s11 + $0x1f] ss:$0 sm:$0xff] }
  0xfb   : > { %v1804_v22 = vmul.f32 %v2332_v55, %v2323_v43  ;;  %v1805_v23 = vmul.f32 %v2332_v55, %v2324_v48  ;;  %v1806_v24 = vmul.f32 %v2332_v55, %v2325_v49  ;;  %v1807_v25 = vmul.f32 %v2332_v55, %v2326_v50 }
  0xfc   : > { %v1796_v29 = vadd.f32 %v1792_v16, %v1744_v51  ;;  %v1797_v30 = vadd.f32 %v1793_v17, %v1745_v52  ;;  %v1798_v31 = vadd.f32 %v1794_v18, %v1746_v53  ;;  %v1799_v32 = vadd.f32 %v1795_v19, %v1747_v54  ;;  %v2348_v17 = vld [vmem:[%s3273_s3 + $0x3e8] sm:$0xff]  ;;  %v2349_v18 = vld [vmem:[%s3273_s3 + $0x3f0] sm:$0xff]  ;;  %v2350_v19 = vld [vmem:[%s3273_s3 + $0x3f8] sm:$0xff] }
  0xfd   : > { %v1808_v35 = vadd.f32 %v1804_v22, %v1800_v12  ;;  %v1809_v36 = vadd.f32 %v1805_v23, %v1801_v13  ;;  %v1810_v37 = vadd.f32 %v1806_v24, %v1802_v14  ;;  %v1811_v38 = vadd.f32 %v1807_v25, %v1803_v15  ;;  %v2347_v12 = vld [vmem:[%s3273_s3 + $0x3e0] sm:$0xff] }
  0xfe   : > { %v1832_v42 = vmul.f32 %v2341_v20, %v2333_v21  ;;  %v1833_v43 = vmul.f32 %v2341_v20, %v2334_v26  ;;  %v1834_v44 = vmul.f32 %v2341_v20, %v2335_v27  ;;  %v1835_v45 = vmul.f32 %v2341_v20, %v2336_v28 }
  0xff   : > { %v1812_v46 = vadd.f32 %v1808_v35, %v1760_v4  ;;  %v1813_v47 = vadd.f32 %v1809_v36, %v1761_v5  ;;  %v1814_v48 = vadd.f32 %v1810_v37, %v1762_v6  ;;  %v1815_v49 = vadd.f32 %v1811_v38, %v1763_v7  ;;  %v2344_v4 = vld [vmem:[%s3272_s2 + $0x3e8] sm:$0xff]  ;;  %v2345_v5 = vld [vmem:[%s3272_s2 + $0x3f0] sm:$0xff]  ;;  %v2346_v6 = vld [vmem:[%s3272_s2 + $0x3f8] sm:$0xff] }
 0x100   : > { %v1840_v50 = vmul.f32 %v2342_v33, %v2337_v34  ;;  %v1841_v51 = vmul.f32 %v2342_v33, %v2338_v39  ;;  %v1842_v52 = vmul.f32 %v2342_v33, %v2339_v40  ;;  %v1843_v53 = vmul.f32 %v2342_v33, %v2340_v41 }
 0x101   : > { %v1852_v54 = vmul.f32 %v2341_v20, %v2337_v34  ;;  %v1853_v55 = vmul.f32 %v2341_v20, %v2338_v39  ;;  %v1854_v56 = vmul.f32 %v2341_v20, %v2339_v40  ;;  %v1855_v57 = vmul.f32 %v2341_v20, %v2340_v41 }
 0x102   : > { %v1844_v58 = vsub.f32 %v1832_v42, %v1840_v50  ;;  %v1845_v59 = vsub.f32 %v1833_v43, %v1841_v51  ;;  %v1846_v60 = vsub.f32 %v1834_v44, %v1842_v52  ;;  %v1847_v61 = vsub.f32 %v1835_v45, %v1843_v53 }
 0x103   : > { %v1856_v0 = vmul.f32 %v2342_v33, %v2333_v21  ;;  %v1857_v1 = vmul.f32 %v2342_v33, %v2334_v26  ;;  %v1858_v2 = vmul.f32 %v2342_v33, %v2335_v27  ;;  %v1859_v3 = vmul.f32 %v2342_v33, %v2336_v28 }
 0x104   : > { %v1848_v7 = vadd.f32 %v1844_v58, %v1796_v29  ;;  %v1849_v8 = vadd.f32 %v1845_v59, %v1797_v30  ;;  %v1850_v9 = vadd.f32 %v1846_v60, %v1798_v31  ;;  %v1851_v10 = vadd.f32 %v1847_v61, %v1799_v32 }
 0x105   : > { %v1860_v13 = vadd.f32 %v1856_v0, %v1852_v54  ;;  %v1861_v14 = vadd.f32 %v1857_v1, %v1853_v55  ;;  %v1862_v15 = vadd.f32 %v1858_v2, %v1854_v56  ;;  %v1863_v16 = vadd.f32 %v1859_v3, %v1855_v57 }
 0x106   : > { %v1884_v20 = vmul.f32 %v2351_v62, %v2343_v63  ;;  %v1885_v21 = vmul.f32 %v2351_v62, %v2344_v4  ;;  %v1886_v22 = vmul.f32 %v2351_v62, %v2345_v5  ;;  %v1887_v23 = vmul.f32 %v2351_v62, %v2346_v6 }
 0x107   : > { %v1864_v24 = vadd.f32 %v1860_v13, %v1812_v46  ;;  %v1865_v25 = vadd.f32 %v1861_v14, %v1813_v47  ;;  %v1866_v26 = vadd.f32 %v1862_v15, %v1814_v48  ;;  %v1867_v27 = vadd.f32 %v1863_v16, %v1815_v49 }
 0x108   : > { %v1892_v28 = vmul.f32 %v2352_v11, %v2347_v12  ;;  %v1893_v29 = vmul.f32 %v2352_v11, %v2348_v17  ;;  %v1894_v30 = vmul.f32 %v2352_v11, %v2349_v18  ;;  %v1895_v31 = vmul.f32 %v2352_v11, %v2350_v19 }
 0x109   : > { %v1904_v32 = vmul.f32 %v2351_v62, %v2347_v12  ;;  %v1905_v33 = vmul.f32 %v2351_v62, %v2348_v17  ;;  %v1906_v34 = vmul.f32 %v2351_v62, %v2349_v18  ;;  %v1907_v35 = vmul.f32 %v2351_v62, %v2350_v19 }
 0x10a   : > { %v1896_v36 = vsub.f32 %v1884_v20, %v1892_v28  ;;  %v1897_v37 = vsub.f32 %v1885_v21, %v1893_v29  ;;  %v1898_v38 = vsub.f32 %v1886_v22, %v1894_v30  ;;  %v1899_v39 = vsub.f32 %v1887_v23, %v1895_v31 }
 0x10b   : > { %v1908_v40 = vmul.f32 %v2352_v11, %v2343_v63  ;;  %v1909_v41 = vmul.f32 %v2352_v11, %v2344_v4  ;;  %v1910_v42 = vmul.f32 %v2352_v11, %v2345_v5  ;;  %v1911_v43 = vmul.f32 %v2352_v11, %v2346_v6 }
 0x10c   : > { %v1900_v44 = vadd.f32 %v1896_v36, %v1848_v7  ;;  %v1901_v45 = vadd.f32 %v1897_v37, %v1849_v8  ;;  %v1902_v46 = vadd.f32 %v1898_v38, %v1850_v9  ;;  %v1903_v47 = vadd.f32 %v1899_v39, %v1851_v10 }
 0x10d   : > { %v1912_v48 = vadd.f32 %v1908_v40, %v1904_v32  ;;  %v1913_v49 = vadd.f32 %v1909_v41, %v1905_v33  ;;  %v1914_v50 = vadd.f32 %v1910_v42, %v1906_v34  ;;  %v1915_v51 = vadd.f32 %v1911_v43, %v1907_v35 }
 0x10e   : > { %1920 = vst [vmem:[%s252_s9] sm:$0xff] %v1900_v44  ;;  %1921 = vst [vmem:[%s252_s9 + $0x8] sm:$0xff] %v1901_v45 }
 0x10f   : > { %1922 = vst [vmem:[%s252_s9 + $0x10] sm:$0xff] %v1902_v46  ;;  %1923 = vst [vmem:[%s252_s9 + $0x18] sm:$0xff] %v1903_v47  ;;  %v1916_v52 = vadd.f32 %v1912_v48, %v1864_v24  ;;  %v1917_v53 = vadd.f32 %v1913_v49, %v1865_v25  ;;  %v1918_v54 = vadd.f32 %v1914_v50, %v1866_v26 }
 0x110   : > { %v1919_v55 = vadd.f32 %v1915_v51, %v1867_v27 }
 0x111   : > { %1924 = vst [vmem:[%s257_s13] sm:$0xff] %v1916_v52  ;;  %1925 = vst [vmem:[%s257_s13 + $0x8] sm:$0xff] %v1917_v53 }
 0x112   : > { %1926 = vst [vmem:[%s257_s13 + $0x10] sm:$0xff] %v1918_v54  ;;  %1927 = vst [vmem:[%s257_s13 + $0x18] sm:$0xff] %v1919_v55 }
 0x113 PF: > { %s16_s18 = sadd.s32 1, %s2373_s18  }
 0x114   : > { %p13_p4 = scmp.ge.s32.totalorder %s16_s18, 4  }
 0x116   :  { %15 = sbr.rel (!%p13_p4) target bundleno = 1 (0x1), region = 143 }

// kernel: reverse.8
= control target key start
LH: loop header
LB: loop body
LE: loop exit
PB: predicated region body
PF: predicated region fallthrough
CT: control target
= control target key end

     0   :  { %s344_s0 = inlined_call_operand.vmem [shape: f32[2,32,16,7], index: 0, kind: input, shape index: {}]   ;;  %s345_s1 = inlined_call_operand.vmem [shape: f32[2,32,16,7], index: 1, kind: output, shape index: {}]  }
   0x1   :  { %v112_v0 = vld [vmem:[%s344_s0 + $0x60] sm:$0xff]  ;;  %v113_v1 = vld [vmem:[%s344_s0 + $0xd0] sm:$0xff]  ;;  %v138_v14 = vld [vmem:[%s344_s0 + $0x68] sm:$0xff] }
   0x2   :  { %v115_v2 = vld [vmem:[%s344_s0 + $0x50] sm:$0xff]  ;;  %4 = vst [vmem:[%s345_s1] sm:$0xff] %v112_v0  ;;  %114 = vst [vmem:[%s345_s1 + $0x70] sm:$0xff] %v113_v1  ;;  %v117_v3 = vld [vmem:[%s344_s0 + $0xc0] sm:$0xff] }
   0x3   :  { %116 = vst [vmem:[%s345_s1 + $0x10] sm:$0xff] %v115_v2  ;;  %v119_v4 = vld [vmem:[%s344_s0 + $0x40] sm:$0xff]  ;;  %v121_v5 = vld [vmem:[%s344_s0 + $0xb0] sm:$0xff]  ;;  %118 = vst [vmem:[%s345_s1 + $0x80] sm:$0xff] %v117_v3 }
   0x4   :  { %120 = vst [vmem:[%s345_s1 + $0x20] sm:$0xff] %v119_v4  ;;  %122 = vst [vmem:[%s345_s1 + $0x90] sm:$0xff] %v121_v5  ;;  %v123_v6 = vld [vmem:[%s344_s0 + $0x30] sm:$0xff]  ;;  %v125_v7 = vld [vmem:[%s344_s0 + $0xa0] sm:$0xff] }
   0x5   :  { %v127_v8 = vld [vmem:[%s344_s0 + $0x20] sm:$0xff]  ;;  %124 = vst [vmem:[%s345_s1 + $0x30] sm:$0xff] %v123_v6  ;;  %126 = vst [vmem:[%s345_s1 + $0xa0] sm:$0xff] %v125_v7  ;;  %v129_v9 = vld [vmem:[%s344_s0 + $0x90] sm:$0xff] }
   0x6   :  { %128 = vst [vmem:[%s345_s1 + $0x40] sm:$0xff] %v127_v8  ;;  %v131_v10 = vld [vmem:[%s344_s0 + $0x10] sm:$0xff]  ;;  %v133_v11 = vld [vmem:[%s344_s0 + $0x80] sm:$0xff]  ;;  %130 = vst [vmem:[%s345_s1 + $0xb0] sm:$0xff] %v129_v9 }
   0x7   :  { %132 = vst [vmem:[%s345_s1 + $0x50] sm:$0xff] %v131_v10  ;;  %134 = vst [vmem:[%s345_s1 + $0xc0] sm:$0xff] %v133_v11  ;;  %v49_v12 = vld [vmem:[%s344_s0] sm:$0xff]  ;;  %v136_v13 = vld [vmem:[%s344_s0 + $0x70] sm:$0xff] }
   0x8   :  { %135 = vst [vmem:[%s345_s1 + $0x60] sm:$0xff] %v49_v12  ;;  %137 = vst [vmem:[%s345_s1 + $0xd0] sm:$0xff] %v136_v13  ;;  %v140_v15 = vld [vmem:[%s344_s0 + $0xd8] sm:$0xff]  ;;  %v144_v17 = vld [vmem:[%s344_s0 + $0xc8] sm:$0xff] }
   0x9   :  { %139 = vst [vmem:[%s345_s1 + $0x8] sm:$0xff] %v138_v14  ;;  %v142_v16 = vld [vmem:[%s344_s0 + $0x58] sm:$0xff]  ;;  %141 = vst [vmem:[%s345_s1 + $0x78] sm:$0xff] %v140_v15  ;;  %v146_v18 = vld [vmem:[%s344_s0 + $0x48] sm:$0xff] }
   0xa   :  { %143 = vst [vmem:[%s345_s1 + $0x18] sm:$0xff] %v142_v16  ;;  %145 = vst [vmem:[%s345_s1 + $0x88] sm:$0xff] %v144_v17  ;;  %v148_v19 = vld [vmem:[%s344_s0 + $0xb8] sm:$0xff]  ;;  %v152_v21 = vld [vmem:[%s344_s0 + $0xa8] sm:$0xff] }
   0xb   :  { %v150_v20 = vld [vmem:[%s344_s0 + $0x38] sm:$0xff]  ;;  %147 = vst [vmem:[%s345_s1 + $0x28] sm:$0xff] %v146_v18  ;;  %149 = vst [vmem:[%s345_s1 + $0x98] sm:$0xff] %v148_v19  ;;  %v154_v22 = vld [vmem:[%s344_s0 + $0x28] sm:$0xff] }
   0xc   :  { %151 = vst [vmem:[%s345_s1 + $0x38] sm:$0xff] %v150_v20  ;;  %v156_v23 = vld [vmem:[%s344_s0 + $0x98] sm:$0xff]  ;;  %153 = vst [vmem:[%s345_s1 + $0xa8] sm:$0xff] %v152_v21  ;;  %v160_v25 = vld [vmem:[%s344_s0 + $0x88] sm:$0xff] }
   0xd   :  { %155 = vst [vmem:[%s345_s1 + $0x48] sm:$0xff] %v154_v22  ;;  %157 = vst [vmem:[%s345_s1 + $0xb8] sm:$0xff] %v156_v23  ;;  %v158_v24 = vld [vmem:[%s344_s0 + $0x18] sm:$0xff]  ;;  %v162_v26 = vld [vmem:[%s344_s0 + $0x8] sm:$0xff] }
   0xe   :  { %159 = vst [vmem:[%s345_s1 + $0x58] sm:$0xff] %v158_v24  ;;  %161 = vst [vmem:[%s345_s1 + $0xc8] sm:$0xff] %v160_v25  ;;  %v164_v27 = vld [vmem:[%s344_s0 + $0x78] sm:$0xff] }
   0xf   :  { %163 = vst [vmem:[%s345_s1 + $0x68] sm:$0xff] %v162_v26  ;;  %165 = vst [vmem:[%s345_s1 + $0xd8] sm:$0xff] %v164_v27 }

// kernel: fno2d_forward.12
= control target key start
LH: loop header
LB: loop body
LE: loop exit
PB: predicated region body
PF: predicated region fallthrough
CT: control target
= control target key end

     0   :  { %s722_s15 = smov 0   ;;  %s724_s16 = smov 0   ;;  %s794_s0 = inlined_call_operand.vmem [shape: bf16[2,32,256], index: 0, kind: input, shape index: {}]   ;;  %s795_s1 = inlined_call_operand.vmem [shape: bf16[32,32], index: 1, kind: input, shape index: {}]   ;;  %s796_s2 = inlined_call_operand.vmem [shape: f32[32,1], index: 2, kind: input, shape index: {}]   ;;  %s797_s3 = inlined_call_operand.vmem [shape: f32[2,32,256], index: 3, kind: input, shape index: {}]   ;;  %s798_s4 = inlined_call_operand.vmem [shape: bf16[2,32,256], index: 4, kind: output, shape index: {}]  }
   0x1   :  { %s726_s17 = smov 0  }
   0x2 LB: > { %s26_s18 = sadd.s32 1, %s690_s16  ;;  %p589_p0 = scmp.ge.s32.totalorder %s694_s17, 1  ;;  %s694_s17 = sphi %s726_s17, %s14_s17   ;;  %s690_s16 = sphi %s724_s16, %s800_s16   ;;  %s686_s15 = sphi %s722_s15, %s799_s15  }
   0x3   : > { %p28_p1 = scmp.ge.s32.totalorder %s26_s18, 2  ;;  %p200_p2 = scmp.lt.s32.totalorder %s694_s17, 3 }
   0x5   : > { %s802_s18 = smov (%p28_p1, %s26_s18), 0  ;;  %p201_p3 = pnand %p589_p0, %p200_p2 }
   0x6   : > { %p244_p4 = scmp.lt.s32.totalorder (!%p201_p3), %s686_s15, 1  ;;  %v696_v0 = vmov (!%p201_p3), 0   ;;  %v284_v1 = vld [vmem:[%s796_s2 + $0x10] sm:$0xff] (!%p201_p3)  ;;  %v282_v2 = vld [vmem:[%s796_s2] sm:$0xff] (!%p201_p3)  ;;  %v285_v3 = vld [vmem:[%s796_s2 + $0x18] sm:$0xff] (!%p201_p3)  ;;  %vm336_vm0 = vcmask (!%p201_p3), 261120  }
   0x7   : > { %204 = sbr.rel (%p201_p3) target bundleno = 269 (0x10d), region = 36  ;;  %375 = vmatprep.mubr.bf16.mxu0 (!%p201_p3), %v696_v0  ;;  %385 = vmatprep.mubr.bf16.mxu1 (!%p201_p3), %v696_v0  ;;  %v283_v4 = vld [vmem:[%s796_s2 + $0x8] sm:$0xff] (!%p201_p3)  ;;  %v654_v9 = vld [vmem:[%s795_s1] sm:$0xff] (!%p201_p3)  }
   0x8   : > { %647 = vset.pattern.permute.xlu1 (!%p201_p3), %v696_v0  ;;  %646 = vset.pattern.permute.xlu0 (!%p201_p3), %v696_v0  ;;  %v655_v10 = vld [vmem:[%s795_s1 + $0x8] sm:$0xff] (!%p201_p3)  }
   0x9   : > { %298 = vperm.xlu1 (!%p201_p3), %647, %v284_v1   ;;  %288 = vperm.xlu0 (!%p201_p3), %646, %v282_v2  }
   0xd   : > { %303 = vperm.xlu1 (!%p201_p3), %647, %v285_v3   ;;  %293 = vperm.xlu0 (!%p201_p3), %646, %v283_v4  }
   0xe   : > { %s804_s15 = smov (!%p244_p4, %s686_s15), 1 }
   0xf   : > { %s610_s23 = sshll.u32 %s804_s15, 5  ;;  %s611_s9 = sshll.u32 %s804_s15, 6 }
  0x10   : > { %s251_s30 = scalar_lea.vmem %s794_s0, %s610_s23  ;;  %s770_s12 = scalar_lea.vmem %s797_s3, %s611_s9 }
  0x11   : > { %v648_v5 = vld [vmem:[%s251_s30 + $0x4] ss:$8 sps:$4 sm:$0xff]   ;;  %v650_v6 = vld [vmem:[%s251_s30] ss:$8 sps:$4 sm:$0xff]   ;;  %v651_v7 = vld [vmem:[%s251_s30 + $0x14] ss:$8 sps:$4 sm:$0xff]   ;;  %s271_s19 = scalar_lea.vmem %s798_s4, %s610_s23 }
  0x12   : > { %343 = vmatprep.subr.bf16.mxu0 %v648_v5  ;;  %617 = vmatprep.subr.bf16.mxu1 %v648_v5  ;;  %v653_v8 = vld [vmem:[%s251_s30 + $0x10] ss:$8 sps:$4 sm:$0xff]   ;;  %v396_v16 = vld [vmem:[%s770_s12] sm:$0xff]  ;;  %v397_v22 = vld [vmem:[%s770_s12 + $0x8] sm:$0xff] }
  0x13   : > { %344 = vmatpush1.bf16.msra.mxu0 %v650_v6  ;;  %619 = vmatpush1.bf16.msra.mxu1 %v650_v6  ;;  %v400_v18 = vld [vmem:[%s770_s12 + $0x20] sm:$0xff]  ;;  %v401_v24 = vld [vmem:[%s770_s12 + $0x28] sm:$0xff]  ;;  %v398_v37 = vld [vmem:[%s770_s12 + $0x10] sm:$0xff] }
  0x14   : > { %345 = vmatprep.subr.bf16.mxu0 %v651_v7  ;;  %618 = vmatprep.subr.bf16.mxu1 %v651_v7  ;;  %v402_v38 = vld [vmem:[%s770_s12 + $0x30] sm:$0xff]  ;;  %v399_v40 = vld [vmem:[%s770_s12 + $0x18] sm:$0xff] }
  0x15   : > { %v403_v44 = vld [vmem:[%s770_s12 + $0x38] sm:$0xff] }
  0x17   : > { %346 = vmatpush1.bf16.msra.mxu0 %v653_v8  ;;  %620 = vmatpush1.bf16.msra.mxu1 %v653_v8 }
  0x1a   : > { %602 = vmatmul.mubr.msk.bf16.vlgmr.msra.gmra.mrb[0].mxu0 %vm336_vm0, %v654_v9  ;;  %603 = vmatmul.mubr.msk.bf16.vlgmr.msra.gmra.mrb[0].mxu1 %vm336_vm0, %v655_v10 }
  0x88   : > { %v299_v11 = vpop.permute.xlu1 %298  ;;  %v289_v12 = vpop.permute.xlu0 %288 }
  0x8c   : > { %v304_v13 = vpop.permute.xlu1 %303  ;;  %v294_v14 = vpop.permute.xlu0 %293 }
  0xed   : > { %v377_v15 = vpop.f32.mrb[0].mxu0  ;;  %v387_v17 = vpop.f32.mrb[0].mxu1 }
  0xee   : > { %v378_v19 = vadd.f32 %v377_v15, %v289_v12  ;;  %v388_v20 = vadd.f32 %v387_v17, %v299_v11  ;;  %v379_v21 = vpop.f32.mrb[1].mxu0  ;;  %v389_v23 = vpop.f32.mrb[1].mxu1 }
  0xef   : > { %v380_v25 = vadd.f32 %v379_v21, %v289_v12  ;;  %v390_v26 = vadd.f32 %v389_v23, %v299_v11  ;;  %v381_v27 = vpop.f32.mrb[2].mxu0  ;;  %v391_v28 = vpop.f32.mrb[2].mxu1 }
  0xf0   : > { %v404_v29 = vadd.f32 %v396_v16, %v378_v19  ;;  %v408_v30 = vadd.f32 %v400_v18, %v388_v20  ;;  %v382_v31 = vadd.f32 %v381_v27, %v294_v14  ;;  %v392_v32 = vadd.f32 %v391_v28, %v304_v13  ;;  %v383_v33 = vpop.f32.mrb[3].mxu0  ;;  %v393_v34 = vpop.f32.mrb[3].mxu1 }
  0xf1   : > { %v405_v35 = vadd.f32 %v397_v22, %v380_v25  ;;  %v409_v36 = vadd.f32 %v401_v24, %v390_v26  ;;  %v384_v39 = vadd.f32 %v383_v33, %v294_v14  ;;  %v394_v41 = vadd.f32 %v393_v34, %v304_v13 }
  0xf2   : > { %v420_v42 = vmul.f32 0.70710677, %v404_v29  ;;  %v424_v43 = vmul.f32 0.70710677, %v408_v30  ;;  %v406_v47 = vadd.f32 %v398_v37, %v382_v31  ;;  %v410_v48 = vadd.f32 %v402_v38, %v392_v32 }
  0xf3   : > { %v421_v45 = vmul.f32 0.70710677, %v405_v35  ;;  %v425_v46 = vmul.f32 0.70710677, %v409_v36  ;;  %v407_v49 = vadd.f32 %v399_v40, %v384_v39  ;;  %v411_v50 = vadd.f32 %v403_v44, %v394_v41 }
  0xf4   : > { %656 = verf.f32 %v420_v42  ;;  %v422_v51 = vmul.f32 0.70710677, %v406_v47  ;;  %v426_v52 = vmul.f32 0.70710677, %v410_v48  ;;  %v412_v57 = vmul.f32 0.5, %v404_v29 }
  0xf5   : > { %658 = verf.f32 %v424_v43  ;;  %v423_v53 = vmul.f32 0.70710677, %v407_v49  ;;  %v427_v54 = vmul.f32 0.70710677, %v411_v50  ;;  %v416_v60 = vmul.f32 0.5, %v408_v30 }
  0xf6   : > { %660 = verf.f32 %v421_v45  ;;  %v413_v0 = vmul.f32 0.5, %v405_v35  ;;  %v417_v4 = vmul.f32 0.5, %v409_v36  ;;  %v414_v8 = vmul.f32 0.5, %v406_v47 }
  0xf7   : > { %662 = verf.f32 %v425_v46  ;;  %v418_v12 = vmul.f32 0.5, %v410_v48  ;;  %v415_v17 = vmul.f32 0.5, %v407_v49  ;;  %v419_v21 = vmul.f32 0.5, %v411_v50 }
  0xf8   : > { %664 = verf.f32 %v422_v51 }
  0xf9   : > { %666 = verf.f32 %v426_v52 }
  0xfa   : > { %668 = verf.f32 %v423_v53 }
  0xfb   : > { %670 = verf.f32 %v427_v54 }
  0xfe   : > { %v657_v55 = vpop.eup %656 }
  0xff   : > { %v659_v56 = vpop.eup %658  ;;  %v436_v58 = vadd.f32 1.0, %v657_v55 }
 0x100   : > { %v661_v59 = vpop.eup %660  ;;  %v440_v61 = vadd.f32 1.0, %v659_v56 }
 0x101   : > { %v663_v62 = vpop.eup %662  ;;  %v444_v63 = vmul.f32 %v436_v58, %v412_v57  ;;  %v437_v1 = vadd.f32 1.0, %v661_v59 }
 0x102   : > { %v665_v2 = vpop.eup %664  ;;  %v448_v3 = vmul.f32 %v440_v61, %v416_v60  ;;  %v441_v5 = vadd.f32 1.0, %v663_v62 }
 0x103   : > { %v667_v6 = vpop.eup %666  ;;  %v445_v7 = vmul.f32 %v437_v1, %v413_v0  ;;  %v438_v9 = vadd.f32 1.0, %v665_v2 }
 0x104   : > { %v669_v10 = vpop.eup %668  ;;  %v449_v11 = vmul.f32 %v441_v5, %v417_v4  ;;  %v442_v13 = vadd.f32 1.0, %v667_v6 }
 0x105   : > { %v671_v14 = vpop.eup %670  ;;  %v613_v15 = vpack.c.bf16 %v445_v7, %v444_v63  ;;  %v446_v16 = vmul.f32 %v438_v9, %v414_v8  ;;  %v439_v18 = vadd.f32 1.0, %v669_v10 }
 0x106   : > { %v615_v19 = vpack.c.bf16 %v449_v11, %v448_v3  ;;  %v450_v20 = vmul.f32 %v442_v13, %v418_v12  ;;  %v443_v22 = vadd.f32 1.0, %v671_v14 }
 0x107   : > { %476 = vst [vmem:[%s271_s19] sm:$0xff] %v613_v15  ;;  %v447_v23 = vmul.f32 %v439_v18, %v415_v17 }
 0x108   : > { %478 = vst [vmem:[%s271_s19 + $0x10] sm:$0xff] %v615_v19  ;;  %v451_v24 = vmul.f32 %v443_v22, %v419_v21 }
 0x109   : > { %v614_v25 = vpack.c.bf16 %v447_v23, %v446_v16 }
 0x10a   : > { %v616_v26 = vpack.c.bf16 %v451_v24, %v450_v20 }
 0x10b   : > { %477 = vst [vmem:[%s271_s19 + $0x8] sm:$0xff] %v614_v25 }
 0x10c   : > { %479 = vst [vmem:[%s271_s19 + $0x18] sm:$0xff] %v616_v26 }
 0x10d PF: > { %s14_s17 = sadd.s32 1, %s694_s17   ;;  %s799_s15 = smov %s690_s16 }
 0x10e   : > { %p11_p5 = scmp.ge.s32.totalorder %s14_s17, 4   ;;  %s800_s16 = smov %s802_s18 }
 0x110   :  { %13 = sbr.rel (!%p11_p5) target bundleno = 2 (0x2), region = 69 }

// kernel: fno2d_forward.18
= control target key start
LH: loop header
LB: loop body
LE: loop exit
PB: predicated region body
PF: predicated region fallthrough
CT: control target
= control target key end

     0   :  { %s666_s15 = smov 0   ;;  %s668_s16 = smov 0   ;;  %s728_s0 = inlined_call_operand.vmem [shape: bf16[2,32,256], index: 0, kind: input, shape index: {}]   ;;  %s729_s1 = inlined_call_operand.vmem [shape: bf16[32,32], index: 1, kind: input, shape index: {}]   ;;  %s730_s2 = inlined_call_operand.vmem [shape: f32[32,1], index: 2, kind: input, shape index: {}]   ;;  %s731_s3 = inlined_call_operand.vmem [shape: f32[2,32,256], index: 3, kind: input, shape index: {}]   ;;  %s732_s4 = inlined_call_operand.vmem [shape: bf16[2,32,256], index: 4, kind: output, shape index: {}]  }
   0x1   :  { %s670_s17 = smov 0  }
   0x2 LB: > { %s26_s18 = sadd.s32 1, %s634_s16  ;;  %p549_p0 = scmp.ge.s32.totalorder %s638_s17, 1  ;;  %s638_s17 = sphi %s670_s17, %s14_s17   ;;  %s634_s16 = sphi %s668_s16, %s734_s16   ;;  %s630_s15 = sphi %s666_s15, %s733_s15  }
   0x3   : > { %p28_p1 = scmp.ge.s32.totalorder %s26_s18, 2  ;;  %p200_p2 = scmp.lt.s32.totalorder %s638_s17, 3 }
   0x5   : > { %s736_s18 = smov (%p28_p1, %s26_s18), 0  ;;  %p201_p3 = pnand %p549_p0, %p200_p2 }
   0x6   : > { %p244_p4 = scmp.lt.s32.totalorder (!%p201_p3), %s630_s15, 1  ;;  %v640_v0 = vmov (!%p201_p3), 0   ;;  %v284_v1 = vld [vmem:[%s730_s2 + $0x10] sm:$0xff] (!%p201_p3)  ;;  %v282_v2 = vld [vmem:[%s730_s2] sm:$0xff] (!%p201_p3)  ;;  %v285_v3 = vld [vmem:[%s730_s2 + $0x18] sm:$0xff] (!%p201_p3)  ;;  %vm336_vm0 = vcmask (!%p201_p3), 261120  }
   0x7   : > { %204 = sbr.rel (%p201_p3) target bundleno = 248 (0xf8), region = 36  ;;  %375 = vmatprep.mubr.bf16.mxu0 (!%p201_p3), %v640_v0  ;;  %385 = vmatprep.mubr.bf16.mxu1 (!%p201_p3), %v640_v0  ;;  %v283_v4 = vld [vmem:[%s730_s2 + $0x8] sm:$0xff] (!%p201_p3)  ;;  %v614_v9 = vld [vmem:[%s729_s1] sm:$0xff] (!%p201_p3)  }
   0x8   : > { %607 = vset.pattern.permute.xlu1 (!%p201_p3), %v640_v0  ;;  %606 = vset.pattern.permute.xlu0 (!%p201_p3), %v640_v0  ;;  %v615_v10 = vld [vmem:[%s729_s1 + $0x8] sm:$0xff] (!%p201_p3)  }
   0x9   : > { %298 = vperm.xlu1 (!%p201_p3), %607, %v284_v1   ;;  %288 = vperm.xlu0 (!%p201_p3), %606, %v282_v2  }
   0xd   : > { %303 = vperm.xlu1 (!%p201_p3), %607, %v285_v3   ;;  %293 = vperm.xlu0 (!%p201_p3), %606, %v283_v4  }
   0xe   : > { %s738_s15 = smov (!%p244_p4, %s630_s15), 1 }
   0xf   : > { %s570_s23 = sshll.u32 %s738_s15, 5  ;;  %s571_s9 = sshll.u32 %s738_s15, 6 }
  0x10   : > { %s251_s30 = scalar_lea.vmem %s728_s0, %s570_s23  ;;  %s261_s12 = scalar_lea.vmem %s731_s3, %s571_s9 }
  0x11   : > { %v608_v5 = vld [vmem:[%s251_s30 + $0x4] ss:$8 sps:$4 sm:$0xff]   ;;  %v610_v6 = vld [vmem:[%s251_s30] ss:$8 sps:$4 sm:$0xff]   ;;  %v611_v7 = vld [vmem:[%s251_s30 + $0x14] ss:$8 sps:$4 sm:$0xff]   ;;  %s271_s19 = scalar_lea.vmem %s732_s4, %s570_s23 }
  0x12   : > { %343 = vmatprep.subr.bf16.mxu0 %v608_v5  ;;  %577 = vmatprep.subr.bf16.mxu1 %v608_v5  ;;  %v613_v8 = vld [vmem:[%s251_s30 + $0x10] ss:$8 sps:$4 sm:$0xff]   ;;  %v396_v16 = vld [vmem:[%s261_s12] sm:$0xff]  ;;  %v397_v22 = vld [vmem:[%s261_s12 + $0x8] sm:$0xff] }
  0x13   : > { %344 = vmatpush1.bf16.msra.mxu0 %v610_v6  ;;  %579 = vmatpush1.bf16.msra.mxu1 %v610_v6  ;;  %v400_v18 = vld [vmem:[%s261_s12 + $0x20] sm:$0xff]  ;;  %v401_v24 = vld [vmem:[%s261_s12 + $0x28] sm:$0xff]  ;;  %v398_v28 = vld [vmem:[%s261_s12 + $0x10] sm:$0xff] }
  0x14   : > { %345 = vmatprep.subr.bf16.mxu0 %v611_v7  ;;  %578 = vmatprep.subr.bf16.mxu1 %v611_v7  ;;  %v402_v30 = vld [vmem:[%s261_s12 + $0x30] sm:$0xff]  ;;  %v399_v36 = vld [vmem:[%s261_s12 + $0x18] sm:$0xff] }
  0x15   : > { %v403_v38 = vld [vmem:[%s261_s12 + $0x38] sm:$0xff] }
  0x17   : > { %346 = vmatpush1.bf16.msra.mxu0 %v613_v8  ;;  %580 = vmatpush1.bf16.msra.mxu1 %v613_v8 }
  0x1a   : > { %562 = vmatmul.mubr.msk.bf16.vlgmr.msra.gmra.mrb[0].mxu0 %vm336_vm0, %v614_v9  ;;  %563 = vmatmul.mubr.msk.bf16.vlgmr.msra.gmra.mrb[0].mxu1 %vm336_vm0, %v615_v10 }
  0x88   : > { %v299_v11 = vpop.permute.xlu1 %298  ;;  %v289_v12 = vpop.permute.xlu0 %288 }
  0x8c   : > { %v304_v13 = vpop.permute.xlu1 %303  ;;  %v294_v14 = vpop.permute.xlu0 %293 }
  0xed   : > { %v377_v15 = vpop.f32.mrb[0].mxu0  ;;  %v387_v17 = vpop.f32.mrb[0].mxu1 }
  0xee   : > { %v378_v19 = vadd.f32 %v377_v15, %v289_v12  ;;  %v388_v20 = vadd.f32 %v387_v17, %v299_v11  ;;  %v379_v21 = vpop.f32.mrb[1].mxu0  ;;  %v389_v23 = vpop.f32.mrb[1].mxu1 }
  0xef   : > { %v380_v25 = vadd.f32 %v379_v21, %v289_v12  ;;  %v390_v26 = vadd.f32 %v389_v23, %v299_v11  ;;  %v381_v27 = vpop.f32.mrb[2].mxu0  ;;  %v391_v29 = vpop.f32.mrb[2].mxu1 }
  0xf0   : > { %v404_v31 = vadd.f32 %v396_v16, %v378_v19  ;;  %v408_v32 = vadd.f32 %v400_v18, %v388_v20  ;;  %v382_v33 = vadd.f32 %v381_v27, %v294_v14  ;;  %v392_v34 = vadd.f32 %v391_v29, %v304_v13  ;;  %v383_v35 = vpop.f32.mrb[3].mxu0  ;;  %v393_v37 = vpop.f32.mrb[3].mxu1 }
  0xf1   : > { %v405_v39 = vadd.f32 %v397_v22, %v380_v25  ;;  %v409_v40 = vadd.f32 %v401_v24, %v390_v26  ;;  %v384_v41 = vadd.f32 %v383_v35, %v294_v14  ;;  %v394_v42 = vadd.f32 %v393_v37, %v304_v13 }
  0xf2   : > { %v406_v43 = vadd.f32 %v398_v28, %v382_v33  ;;  %v410_v44 = vadd.f32 %v402_v30, %v392_v34 }
  0xf3   : > { %v573_v45 = vpack.c.bf16 %v405_v39, %v404_v31  ;;  %v575_v46 = vpack.c.bf16 %v409_v40, %v408_v32  ;;  %v407_v47 = vadd.f32 %v399_v36, %v384_v41  ;;  %v411_v48 = vadd.f32 %v403_v38, %v394_v42 }
  0xf5   : > { %436 = vst [vmem:[%s271_s19] sm:$0xff] %v573_v45  ;;  %438 = vst [vmem:[%s271_s19 + $0x10] sm:$0xff] %v575_v46  ;;  %v574_v49 = vpack.c.bf16 %v407_v47, %v406_v43  ;;  %v576_v50 = vpack.c.bf16 %v411_v48, %v410_v44 }
  0xf7   : > { %437 = vst [vmem:[%s271_s19 + $0x8] sm:$0xff] %v574_v49  ;;  %439 = vst [vmem:[%s271_s19 + $0x18] sm:$0xff] %v576_v50 }
  0xf8 PF: > { %s14_s17 = sadd.s32 1, %s638_s17   ;;  %s733_s15 = smov %s634_s16 }
  0xf9   : > { %p11_p5 = scmp.ge.s32.totalorder %s14_s17, 4   ;;  %s734_s16 = smov %s736_s18 }
  0xfb   :  { %13 = sbr.rel (!%p11_p5) target bundleno = 2 (0x2), region = 69 }

// kernel: fno2d_forward.19
= control target key start
LH: loop header
LB: loop body
LE: loop exit
PB: predicated region body
PF: predicated region fallthrough
CT: control target
= control target key end

     0   :  { %s1120_s18 = smov 0   ;;  %s1122_s19 = smov 0   ;;  %s1330_s0 = inlined_call_operand.vmem [shape: bf16[2,32,256], index: 0, kind: input, shape index: {}]   ;;  %s1331_s1 = inlined_call_operand.vmem [shape: bf16[128,32], index: 1, kind: input, shape index: {}]   ;;  %s1332_s2 = inlined_call_operand.vmem [shape: f32[128,1], index: 2, kind: input, shape index: {}]   ;;  %s1333_s3 = inlined_call_operand.vmem [shape: bf16[3,128], index: 3, kind: input, shape index: {}]   ;;  %s1334_s4 = inlined_call_operand.vmem [shape: f32[3,1], index: 4, kind: input, shape index: {}]   ;;  %s1335_s5 = inlined_call_operand.vmem [shape: f32[2,3,256], index: 5, kind: output, shape index: {}]  }
   0x1   :  { %s1124_s20 = smov 0  }
   0x2 LB: > { %s27_s21 = sadd.s32 1, %s1083_s19  ;;  %p931_p0 = scmp.ge.s32.totalorder %s1087_s20, 1  ;;  %s1087_s20 = sphi %s1124_s20, %s15_s20   ;;  %s1083_s19 = sphi %s1122_s19, %s1337_s19   ;;  %s1079_s18 = sphi %s1120_s18, %s1336_s18  }
   0x3   : > { %p29_p1 = scmp.ge.s32.totalorder %s27_s21, 2  ;;  %p208_p2 = scmp.lt.s32.totalorder %s1087_s20, 3 }
   0x5   : > { %s1339_s21 = smov (%p29_p1, %s27_s21), 0  ;;  %p209_p3 = pnand %p931_p0, %p208_p2 }
   0x6   : > { %p245_p4 = scmp.lt.s32.totalorder (!%p209_p3), %s1079_s18, 1  ;;  %v1089_v0 = vmov (!%p209_p3), 0   ;;  %v285_v5 = vld [vmem:[%s1332_s2] sm:$0xff] (!%p209_p3)  ;;  %v287_v6 = vld [vmem:[%s1332_s2 + $0x10] sm:$0xff] (!%p209_p3)  ;;  %vm441_vm0 = vcmask (!%p209_p3), 261120   ;;  %v286_v8 = vld [vmem:[%s1332_s2 + $0x8] sm:$0xff] (!%p209_p3) }
   0x7   : > { %212 = sbr.rel (%p209_p3) target bundleno = 540 (0x21c), region = 40  ;;  %498 = vmatprep.mubr.bf16.mxu0 (!%p209_p3), %v1089_v0  ;;  %985 = vset.pattern.permute.xlu0 (!%p209_p3), %v1089_v0  ;;  %v993_v7 = vld [vmem:[%s1331_s1] sm:$0xff] (!%p209_p3)   ;;  %v288_v9 = vld [vmem:[%s1332_s2 + $0x18] sm:$0xff] (!%p209_p3)  ;;  %v290_v11 = vld [vmem:[%s1332_s2 + $0x28] sm:$0xff] (!%p209_p3) }
   0x8   : > { %986 = vset.pattern.permute.xlu1 (!%p209_p3), %v1089_v0  ;;  %826 = vmatprep.mubr.bf16.mxu1 (!%p209_p3), %v1089_v0  ;;  %v289_v10 = vld [vmem:[%s1332_s2 + $0x20] sm:$0xff] (!%p209_p3)  ;;  %v994_v12 = vld [vmem:[%s1331_s1 + $0x8] sm:$0xff] (!%p209_p3)   ;;  %v291_v13 = vld [vmem:[%s1332_s2 + $0x30] sm:$0xff] (!%p209_p3) }
   0x9   : > { %303 = vperm.xlu0 (!%p209_p3), %985, %v285_v5   ;;  %313 = vperm.xlu1 (!%p209_p3), %986, %v287_v6   ;;  %v292_v14 = vld [vmem:[%s1332_s2 + $0x38] sm:$0xff] (!%p209_p3)  ;;  %v293_v15 = vld [vmem:[%s1332_s2 + $0x40] sm:$0xff] (!%p209_p3)  ;;  %v294_v16 = vld [vmem:[%s1332_s2 + $0x48] sm:$0xff] (!%p209_p3) }
   0xa   : > { %v995_v17 = vld [vmem:[%s1331_s1 + $0x10] sm:$0xff] (!%p209_p3)   ;;  %v296_v19 = vld [vmem:[%s1332_s2 + $0x58] sm:$0xff] (!%p209_p3)  ;;  %v297_v20 = vld [vmem:[%s1332_s2 + $0x60] sm:$0xff] (!%p209_p3) }
   0xb   : > { %v295_v18 = vld [vmem:[%s1332_s2 + $0x50] sm:$0xff] (!%p209_p3)  ;;  %v298_v21 = vld [vmem:[%s1332_s2 + $0x68] sm:$0xff] (!%p209_p3)  ;;  %v996_v22 = vld [vmem:[%s1331_s1 + $0x18] sm:$0xff] (!%p209_p3)  }
   0xc   : > { %v299_v23 = vld [vmem:[%s1332_s2 + $0x70] sm:$0xff] (!%p209_p3)  ;;  %v300_v24 = vld [vmem:[%s1332_s2 + $0x78] sm:$0xff] (!%p209_p3)  ;;  %v788_v25 = vld [vmem:[%s1334_s4] sm:$0x7] (!%p209_p3) }
   0xd   : > { %308 = vperm.xlu0 (!%p209_p3), %985, %v286_v8   ;;  %318 = vperm.xlu1 (!%p209_p3), %986, %v288_v9   ;;  %v997_v26 = vld [vmem:[%s1331_s1 + $0x20] sm:$0xff] (!%p209_p3)   ;;  %v998_v27 = vld [vmem:[%s1331_s1 + $0x28] sm:$0xff] (!%p209_p3)   ;;  %v999_v28 = vld [vmem:[%s1331_s1 + $0x30] sm:$0xff] (!%p209_p3)  }
   0xe   : > { %s1341_s18 = smov (!%p245_p4, %s1079_s18), 1  ;;  %v1000_v29 = vld [vmem:[%s1331_s1 + $0x38] sm:$0xff]  }
   0xf   : > { %s958_s22 = sshll.u32 %s1341_s18, 5  ;;  %s959_s11 = sshll.u32 %s1341_s18, 3 }
  0x10   : > { %s252_s25 = scalar_lea.vmem %s1330_s0, %s958_s22  ;;  %s262_s14 = scalar_lea.vmem %s1335_s5, %s959_s11 }
  0x11   : > { %v987_v1 = vld [vmem:[%s252_s25 + $0x4] ss:$8 sps:$4 sm:$0xff]   ;;  %v989_v2 = vld [vmem:[%s252_s25] ss:$8 sps:$4 sm:$0xff]   ;;  %v990_v3 = vld [vmem:[%s252_s25 + $0x14] ss:$8 sps:$4 sm:$0xff]   ;;  %323 = vperm.xlu0 %985, %v289_v10   ;;  %328 = vperm.xlu1 %986, %v290_v11  }
  0x12   : > { %466 = vmatprep.subr.bf16.mxu0 %v987_v1  ;;  %v992_v4 = vld [vmem:[%s252_s25 + $0x10] ss:$8 sps:$4 sm:$0xff]  }
  0x13   : > { %467 = vmatpush1.bf16.msra.mxu0 %v989_v2 }
  0x14   : > { %468 = vmatprep.subr.bf16.mxu0 %v990_v3 }
  0x15   : > { %333 = vperm.xlu0 %985, %v291_v13   ;;  %338 = vperm.xlu1 %986, %v292_v14  }
  0x17   : > { %469 = vmatpush1.bf16.msra.mxu0 %v992_v4 }
  0x19   : > { %343 = vperm.xlu0 %985, %v293_v15   ;;  %348 = vperm.xlu1 %986, %v294_v16  }
  0x1a   : > { %948 = vmatmul.mubr.msk.bf16.vlgmr.msra.gmra.mrb[0].mxu0 %vm441_vm0, %v993_v7 }
  0x1b   : > { %508 = vmatprep.mubr.bf16.mxu0 %v1089_v0 }
  0x1d   : > { %353 = vperm.xlu0 %985, %v295_v18   ;;  %358 = vperm.xlu1 %986, %v296_v19  }
  0x21   : > { %363 = vperm.xlu0 %985, %v297_v20   ;;  %368 = vperm.xlu1 %986, %v298_v21  }
  0x22   : > { %949 = vmatmul.mubr.msk.bf16.gmra.mrb[4].mxu0 %vm441_vm0, %v994_v12 }
  0x23   : > { %518 = vmatprep.mubr.bf16.mxu0 %v1089_v0 }
  0x25   : > { %373 = vperm.xlu0 %985, %v299_v23   ;;  %378 = vperm.xlu1 %986, %v300_v24  }
  0x29   : > { %791 = vperm.xlu0 %985, %v788_v25  }
  0x2a   : > { %950 = vmatmul.mubr.msk.bf16.gmra.mrb[8].mxu0 %vm441_vm0, %v995_v17 }
  0x2b   : > { %528 = vmatprep.mubr.bf16.mxu0 %v1089_v0 }
  0x32   : > { %951 = vmatmul.mubr.msk.bf16.gmra.mrb[12].mxu0 %vm441_vm0, %v996_v22 }
  0x33   : > { %538 = vmatprep.mubr.bf16.mxu0 %v1089_v0 }
  0x3a   : > { %952 = vmatmul.mubr.msk.bf16.gmra.mrb[16].mxu0 %vm441_vm0, %v997_v26 }
  0x3b   : > { %548 = vmatprep.mubr.bf16.mxu0 %v1089_v0 }
  0x42   : > { %953 = vmatmul.mubr.msk.bf16.gmra.mrb[20].mxu0 %vm441_vm0, %v998_v27 }
  0x43   : > { %558 = vmatprep.mubr.bf16.mxu0 %v1089_v0 }
  0x4a   : > { %954 = vmatmul.mubr.msk.bf16.gmra.mrb[24].mxu0 %vm441_vm0, %v999_v28 }
  0x4b   : > { %568 = vmatprep.mubr.bf16.mxu0 %v1089_v0 }
  0x52   : > { %955 = vmatmul.mubr.msk.bf16.gmra.mrb[28].mxu0 %vm441_vm0, %v1000_v29 }
  0x88   : > { %v304_v30 = vpop.permute.xlu0 %303  ;;  %v314_v41 = vpop.permute.xlu1 %313 }
  0x8c   : > { %v309_v34 = vpop.permute.xlu0 %308  ;;  %v319_v48 = vpop.permute.xlu1 %318 }
  0x90   : > { %v324_v60 = vpop.permute.xlu0 %323  ;;  %v329_v4 = vpop.permute.xlu1 %328 }
  0x94   : > { %v334_v27 = vpop.permute.xlu0 %333 }
  0xed   : > { %v500_v31 = vpop.f32.mrb[0].mxu0 }
  0xee   : > { %v501_v32 = vadd.f32 %v500_v31, %v304_v30  ;;  %v502_v33 = vpop.f32.mrb[1].mxu0 }
  0xef   : > { %v503_v35 = vadd.f32 %v502_v33, %v304_v30  ;;  %v504_v36 = vpop.f32.mrb[2].mxu0 }
  0xf0   : > { %v611_v37 = vmul.f32 0.70710677, %v501_v32  ;;  %v505_v38 = vadd.f32 %v504_v36, %v309_v34  ;;  %v506_v39 = vpop.f32.mrb[3].mxu0  ;;  %v579_v14 = vmul.f32 0.5, %v501_v32 }
  0xf1   : > { %v612_v40 = vmul.f32 0.70710677, %v503_v35  ;;  %v507_v42 = vadd.f32 %v506_v39, %v309_v34  ;;  %v580_v3 = vmul.f32 0.5, %v503_v35 }
  0xf2   : > { %1001 = verf.f32 %v611_v37  ;;  %v613_v43 = vmul.f32 0.70710677, %v505_v38  ;;  %v581_v15 = vmul.f32 0.5, %v505_v38 }
  0xf3   : > { %1003 = verf.f32 %v612_v40  ;;  %v614_v44 = vmul.f32 0.70710677, %v507_v42  ;;  %v582_v9 = vmul.f32 0.5, %v507_v42 }
  0xf4   : > { %1005 = verf.f32 %v613_v43 }
  0xf5   : > { %1007 = verf.f32 %v614_v44  ;;  %v510_v45 = vpop.f32.mrb[4].mxu0  ;;  %v339_v44 = vpop.permute.xlu1 %338 }
  0xf6   : > { %v511_v46 = vadd.f32 %v510_v45, %v314_v41  ;;  %v512_v47 = vpop.f32.mrb[5].mxu0 }
  0xf7   : > { %v1238_v49 = vadd.f32 %v512_v47, %v314_v41  ;;  %v514_v50 = vpop.f32.mrb[6].mxu0 }
  0xf8   : > { %v615_v51 = vmul.f32 0.70710677, %v511_v46  ;;  %v515_v52 = vadd.f32 %v514_v50, %v319_v48  ;;  %v516_v53 = vpop.f32.mrb[7].mxu0  ;;  %v583_v36 = vmul.f32 0.5, %v511_v46 }
  0xf9   : > { %v616_v54 = vmul.f32 0.70710677, %v1238_v49  ;;  %v517_v55 = vadd.f32 %v516_v53, %v319_v48  ;;  %v584_v41 = vmul.f32 0.5, %v1238_v49 }
  0xfa   : > { %1009 = verf.f32 %v615_v51  ;;  %v617_v56 = vmul.f32 0.70710677, %v515_v52  ;;  %v585_v37 = vmul.f32 0.5, %v515_v52 }
  0xfb   : > { %1011 = verf.f32 %v616_v54  ;;  %v618_v57 = vmul.f32 0.70710677, %v517_v55  ;;  %v586_v42 = vmul.f32 0.5, %v517_v55 }
  0xfc   : > { %v1002_v58 = vpop.eup %1001  ;;  %1013 = verf.f32 %v617_v56 }
  0xfd   : > { %v1004_v59 = vpop.eup %1003  ;;  %1015 = verf.f32 %v618_v57  ;;  %v520_v61 = vpop.f32.mrb[8].mxu0  ;;  %v675_v7 = vadd.f32 1.0, %v1002_v58 }
  0xfe   : > { %v1006_v62 = vpop.eup %1005  ;;  %v1241_v63 = vadd.f32 %v520_v61, %v324_v60  ;;  %v522_v0 = vpop.f32.mrb[9].mxu0  ;;  %v676_v1 = vadd.f32 1.0, %v1004_v59 }
  0xff   : > { %v1008_v2 = vpop.eup %1007  ;;  %v1243_v5 = vadd.f32 %v522_v0, %v324_v60  ;;  %v524_v6 = vpop.f32.mrb[10].mxu0  ;;  %v677_v8 = vadd.f32 1.0, %v1006_v62  ;;  %v707_v22 = vmul.f32 %v675_v7, %v579_v14 }
 0x100   : > { %v619_v10 = vmul.f32 0.70710677, %v1241_v63  ;;  %v1246_v11 = vadd.f32 %v524_v6, %v329_v4  ;;  %v526_v12 = vpop.f32.mrb[11].mxu0  ;;  %v678_v13 = vadd.f32 1.0, %v1008_v2  ;;  %v708_v19 = vmul.f32 %v676_v1, %v580_v3  ;;  %v344_v60 = vpop.permute.xlu0 %343 }
 0x101   : > { %v620_v16 = vmul.f32 0.70710677, %v1243_v5  ;;  %v1249_v17 = vadd.f32 %v526_v12, %v329_v4  ;;  %v709_v23 = vmul.f32 %v677_v8, %v581_v15  ;;  %v587_v6 = vmul.f32 0.5, %v1241_v63 }
 0x102   : > { %1017 = verf.f32 %v619_v10  ;;  %v621_v18 = vmul.f32 0.70710677, %v1246_v11  ;;  %v710_v20 = vmul.f32 %v678_v13, %v582_v9  ;;  %v589_v7 = vmul.f32 0.5, %v1246_v11  ;;  %v349_v13 = vpop.permute.xlu1 %348 }
 0x103   : > { %1019 = verf.f32 %v620_v16  ;;  %v622_v21 = vmul.f32 0.70710677, %v1249_v17  ;;  %v739_v30 = vpack.c.bf16 %v709_v23, %v707_v22  ;;  %v588_v12 = vmul.f32 0.5, %v1243_v5 }
 0x104   : > { %v1010_v24 = vpop.eup %1009  ;;  %1021 = verf.f32 %v621_v18  ;;  %v740_v25 = vpack.c.bf16 %v710_v20, %v708_v19  ;;  %v590_v14 = vmul.f32 0.5, %v1249_v17 }
 0x105   : > { %v1012_v26 = vpop.eup %1011  ;;  %v679_v28 = vadd.f32 1.0, %v1010_v24  ;;  %1023 = verf.f32 %v622_v21  ;;  %v530_v29 = vpop.f32.mrb[12].mxu0 }
 0x106   : > { %v1014_v31 = vpop.eup %1013  ;;  %v680_v32 = vadd.f32 1.0, %v1012_v26  ;;  %v1253_v33 = vadd.f32 %v530_v29, %v334_v27  ;;  %v532_v34 = vpop.f32.mrb[13].mxu0  ;;  %794 = vmatprep.subr.bf16.mxu1 %v740_v25 }
 0x107   : > { %v1016_v35 = vpop.eup %1015  ;;  %v681_v38 = vadd.f32 1.0, %v1014_v31  ;;  %v1255_v39 = vadd.f32 %v532_v34, %v334_v27  ;;  %v534_v40 = vpop.f32.mrb[14].mxu0  ;;  %795 = vmatpush1.bf16.msra.mxu1 %v739_v30  ;;  %v711_v48 = vmul.f32 %v679_v28, %v583_v36 }
 0x108   : > { %v682_v43 = vadd.f32 1.0, %v1016_v35  ;;  %v623_v45 = vmul.f32 0.70710677, %v1253_v33  ;;  %v536_v47 = vpop.f32.mrb[15].mxu0  ;;  %v1260_v53 = vadd.f32 %v534_v40, %v339_v44  ;;  %v712_v46 = vmul.f32 %v680_v32, %v584_v41  ;;  %v354_v28 = vpop.permute.xlu0 %353 }
 0x109   : > { %v713_v50 = vmul.f32 %v681_v38, %v585_v37  ;;  %v624_v51 = vmul.f32 0.70710677, %v1255_v39  ;;  %v1262_v54 = vadd.f32 %v536_v47, %v339_v44  ;;  %v591_v35 = vmul.f32 0.5, %v1253_v33  ;;  %v359_v41 = vpop.permute.xlu1 %358 }
 0x10a   : > { %v714_v52 = vmul.f32 %v682_v43, %v586_v42  ;;  %1025 = verf.f32 %v623_v45  ;;  %v625_v49 = vmul.f32 0.70710677, %v1260_v53  ;;  %v592_v42 = vmul.f32 0.5, %v1255_v39 }
 0x10b   : > { %1027 = verf.f32 %v624_v51  ;;  %v741_v55 = vpack.c.bf16 %v713_v50, %v711_v48  ;;  %v626_v57 = vmul.f32 0.70710677, %v1262_v54  ;;  %v593_v43 = vmul.f32 0.5, %v1260_v53 }
 0x10c   : > { %v1018_v56 = vpop.eup %1017  ;;  %v742_v58 = vpack.c.bf16 %v714_v52, %v712_v46  ;;  %1029 = verf.f32 %v625_v49  ;;  %v594_v48 = vmul.f32 0.5, %v1262_v54 }
 0x10d   : > { %v1020_v59 = vpop.eup %1019  ;;  %v683_v61 = vadd.f32 1.0, %v1018_v56  ;;  %v540_v62 = vpop.f32.mrb[16].mxu0  ;;  %1031 = verf.f32 %v626_v57 }
 0x10e   : > { %v1022_v0 = vpop.eup %1021  ;;  %v684_v1 = vadd.f32 1.0, %v1020_v59  ;;  %v1266_v2 = vadd.f32 %v540_v62, %v344_v60  ;;  %v542_v3 = vpop.f32.mrb[17].mxu0  ;;  %796 = vmatprep.subr.bf16.mxu1 %v742_v58 }
 0x10f   : > { %v1024_v4 = vpop.eup %1023  ;;  %v685_v8 = vadd.f32 1.0, %v1022_v0  ;;  %v1270_v9 = vadd.f32 %v542_v3, %v344_v60  ;;  %v544_v10 = vpop.f32.mrb[18].mxu0  ;;  %797 = vmatpush1.bf16.msra.mxu1 %v741_v55  ;;  %v715_v19 = vmul.f32 %v683_v61, %v587_v6 }
 0x110   : > { %v686_v15 = vadd.f32 1.0, %v1024_v4  ;;  %v627_v16 = vmul.f32 0.70710677, %v1266_v2  ;;  %v546_v18 = vpop.f32.mrb[19].mxu0  ;;  %v1276_v21 = vadd.f32 %v544_v10, %v349_v13  ;;  %v716_v11 = vmul.f32 %v684_v1, %v588_v12  ;;  %v364_v59 = vpop.permute.xlu0 %363 }
 0x111   : > { %v717_v20 = vmul.f32 %v685_v8, %v589_v7  ;;  %v628_v63 = vmul.f32 0.70710677, %v1270_v9  ;;  %v1278_v23 = vadd.f32 %v546_v18, %v349_v13  ;;  %v595_v4 = vmul.f32 0.5, %v1266_v2  ;;  %v369_v12 = vpop.permute.xlu1 %368 }
 0x112   : > { %v718_v22 = vmul.f32 %v686_v15, %v590_v14  ;;  %1033 = verf.f32 %v627_v16  ;;  %v629_v5 = vmul.f32 0.70710677, %v1276_v21  ;;  %v596_v13 = vmul.f32 0.5, %v1270_v9 }
 0x113   : > { %1035 = verf.f32 %v628_v63  ;;  %v743_v24 = vpack.c.bf16 %v717_v20, %v715_v19  ;;  %v630_v25 = vmul.f32 0.70710677, %v1278_v23  ;;  %v597_v14 = vmul.f32 0.5, %v1276_v21 }
 0x114   : > { %v1026_v17 = vpop.eup %1025  ;;  %v744_v26 = vpack.c.bf16 %v718_v22, %v716_v11  ;;  %1037 = verf.f32 %v629_v5  ;;  %v598_v19 = vmul.f32 0.5, %v1278_v23 }
 0x115   : > { %v1028_v27 = vpop.eup %1027  ;;  %v550_v29 = vpop.f32.mrb[20].mxu0  ;;  %v687_v30 = vadd.f32 1.0, %v1026_v17  ;;  %1039 = verf.f32 %v630_v25 }
 0x116   : > { %v1282_v31 = vadd.f32 %v550_v29, %v354_v28  ;;  %v552_v32 = vpop.f32.mrb[21].mxu0  ;;  %798 = vmatprep.subr.bf16.mxu1 %v744_v26  ;;  %v1030_v34 = vpop.eup %1029  ;;  %v688_v36 = vadd.f32 1.0, %v1028_v27 }
 0x117   : > { %v1285_v37 = vadd.f32 %v552_v32, %v354_v28  ;;  %v554_v38 = vpop.f32.mrb[22].mxu0  ;;  %799 = vmatpush1.bf16.msra.mxu1 %v743_v24  ;;  %v1032_v40 = vpop.eup %1031  ;;  %v689_v44 = vadd.f32 1.0, %v1030_v34  ;;  %v719_v46 = vmul.f32 %v687_v30, %v591_v35 }
 0x118   : > { %v631_v45 = vmul.f32 0.70710677, %v1282_v31  ;;  %v556_v47 = vpop.f32.mrb[23].mxu0  ;;  %v690_v50 = vadd.f32 1.0, %v1032_v40  ;;  %v1292_v51 = vadd.f32 %v554_v38, %v359_v41  ;;  %v720_v55 = vmul.f32 %v688_v36, %v592_v42  ;;  %v374_v28 = vpop.permute.xlu0 %373 }
 0x119   : > { %v632_v33 = vmul.f32 0.70710677, %v1285_v37  ;;  %v721_v52 = vmul.f32 %v689_v44, %v593_v43  ;;  %v1294_v49 = vadd.f32 %v556_v47, %v359_v41  ;;  %v599_v36 = vmul.f32 0.5, %v1282_v31  ;;  %v379_v43 = vpop.permute.xlu1 %378 }
 0x11a   : > { %1041 = verf.f32 %v631_v45  ;;  %v722_v39 = vmul.f32 %v690_v50, %v594_v48  ;;  %v633_v53 = vmul.f32 0.70710677, %v1292_v51  ;;  %v600_v44 = vmul.f32 0.5, %v1285_v37 }
 0x11b   : > { %1043 = verf.f32 %v632_v33  ;;  %v634_v57 = vmul.f32 0.70710677, %v1294_v49  ;;  %v745_v58 = vpack.c.bf16 %v721_v52, %v719_v46  ;;  %v601_v45 = vmul.f32 0.5, %v1292_v51 }
 0x11c   : > { %v1034_v56 = vpop.eup %1033  ;;  %1045 = verf.f32 %v633_v53  ;;  %v746_v61 = vpack.c.bf16 %v722_v39, %v720_v55  ;;  %v602_v33 = vmul.f32 0.5, %v1294_v49 }
 0x11d   : > { %v1036_v54 = vpop.eup %1035  ;;  %v560_v60 = vpop.f32.mrb[24].mxu0  ;;  %v691_v62 = vadd.f32 1.0, %v1034_v56  ;;  %1047 = verf.f32 %v634_v57 }
 0x11e   : > { %v1298_v0 = vadd.f32 %v560_v60, %v364_v59  ;;  %v562_v1 = vpop.f32.mrb[25].mxu0  ;;  %v1038_v3 = vpop.eup %1037  ;;  %v692_v6 = vadd.f32 1.0, %v1036_v54  ;;  %800 = vmatprep.subr.bf16.mxu1 %v746_v61 }
 0x11f   : > { %v1301_v7 = vadd.f32 %v562_v1, %v364_v59  ;;  %v564_v8 = vpop.f32.mrb[26].mxu0  ;;  %v1040_v10 = vpop.eup %1039  ;;  %v693_v15 = vadd.f32 1.0, %v1038_v3  ;;  %801 = vmatpush1.bf16.msra.mxu1 %v745_v58  ;;  %v723_v11 = vmul.f32 %v691_v62, %v595_v4 }
 0x120   : > { %v635_v16 = vmul.f32 0.70710677, %v1298_v0  ;;  %v566_v18 = vpop.f32.mrb[27].mxu0  ;;  %v694_v20 = vadd.f32 1.0, %v1040_v10  ;;  %v565_v63 = vadd.f32 %v564_v8, %v369_v12  ;;  %v724_v24 = vmul.f32 %v692_v6, %v596_v13 }
 0x121   : > { %v636_v2 = vmul.f32 0.70710677, %v1301_v7  ;;  %v725_v22 = vmul.f32 %v693_v15, %v597_v14  ;;  %v567_v5 = vadd.f32 %v566_v18, %v369_v12  ;;  %v603_v3 = vmul.f32 0.5, %v1298_v0 }
 0x122   : > { %1049 = verf.f32 %v635_v16  ;;  %v726_v17 = vmul.f32 %v694_v20, %v598_v19  ;;  %v637_v9 = vmul.f32 0.70710677, %v565_v63  ;;  %v605_v4 = vmul.f32 0.5, %v565_v63 }
 0x123   : > { %1051 = verf.f32 %v636_v2  ;;  %v638_v25 = vmul.f32 0.70710677, %v567_v5  ;;  %v747_v26 = vpack.c.bf16 %v725_v22, %v723_v11  ;;  %v604_v8 = vmul.f32 0.5, %v1301_v7 }
 0x124   : > { %v1042_v21 = vpop.eup %1041  ;;  %1053 = verf.f32 %v637_v9  ;;  %v748_v23 = vpack.c.bf16 %v726_v17, %v724_v24  ;;  %v606_v10 = vmul.f32 0.5, %v567_v5 }
 0x125   : > { %v1044_v27 = vpop.eup %1043  ;;  %v570_v29 = vpop.f32.mrb[28].mxu0  ;;  %v695_v30 = vadd.f32 1.0, %v1042_v21  ;;  %1055 = verf.f32 %v638_v25 }
 0x126   : > { %v571_v32 = vadd.f32 %v570_v29, %v374_v28  ;;  %v572_v34 = vpop.f32.mrb[29].mxu0  ;;  %v1046_v35 = vpop.eup %1045  ;;  %v696_v38 = vadd.f32 1.0, %v1044_v27  ;;  %802 = vmatprep.subr.bf16.mxu1 %v748_v23 }
 0x127   : > { %v573_v40 = vadd.f32 %v572_v34, %v374_v28  ;;  %v574_v41 = vpop.f32.mrb[30].mxu0  ;;  %v1048_v42 = vpop.eup %1047  ;;  %v697_v47 = vadd.f32 1.0, %v1046_v35  ;;  %803 = vmatpush1.bf16.msra.mxu1 %v747_v26  ;;  %v727_v31 = vmul.f32 %v695_v30, %v599_v36  ;;  %v771_v30 = vld [vmem:[%s1333_s3] sm:$0x3] }
 0x128   : > { %v639_v48 = vmul.f32 0.70710677, %v571_v32  ;;  %v576_v50 = vpop.f32.mrb[31].mxu0  ;;  %v698_v46 = vadd.f32 1.0, %v1048_v42  ;;  %v575_v55 = vadd.f32 %v574_v41, %v379_v43  ;;  %v728_v56 = vmul.f32 %v696_v38, %v600_v44 }
 0x129   : > { %v640_v52 = vmul.f32 0.70710677, %v573_v40  ;;  %v729_v39 = vmul.f32 %v697_v47, %v601_v45  ;;  %v577_v53 = vadd.f32 %v576_v50, %v379_v43  ;;  %v607_v63 = vmul.f32 0.5, %v571_v32  ;;  %v792_v32 = vpop.permute.xlu0 %791 }
 0x12a   : > { %1057 = verf.f32 %v639_v48  ;;  %v730_v57 = vmul.f32 %v698_v46, %v602_v33  ;;  %v641_v58 = vmul.f32 0.70710677, %v575_v55  ;;  %v609_v17 = vmul.f32 0.5, %v575_v55 }
 0x12b   : > { %1059 = verf.f32 %v640_v52  ;;  %v642_v54 = vmul.f32 0.70710677, %v577_v53  ;;  %v749_v51 = vpack.c.bf16 %v729_v39, %v727_v31  ;;  %v608_v7 = vmul.f32 0.5, %v573_v40 }
 0x12c   : > { %v1050_v37 = vpop.eup %1049  ;;  %1061 = verf.f32 %v641_v58  ;;  %v750_v60 = vpack.c.bf16 %v730_v57, %v728_v56  ;;  %v610_v5 = vmul.f32 0.5, %v577_v53 }
 0x12d   : > { %v1052_v59 = vpop.eup %1051  ;;  %v699_v61 = vadd.f32 1.0, %v1050_v37  ;;  %1063 = verf.f32 %v642_v54 }
 0x12e   : > { %v1054_v49 = vpop.eup %1053  ;;  %v700_v62 = vadd.f32 1.0, %v1052_v59  ;;  %804 = vmatprep.subr.bf16.mxu1 %v750_v60 }
 0x12f   : > { %v1056_v1 = vpop.eup %1055  ;;  %v701_v6 = vadd.f32 1.0, %v1054_v49  ;;  %805 = vmatpush1.bf16.msra.mxu1 %v749_v51  ;;  %v731_v13 = vmul.f32 %v699_v61, %v603_v3 }
 0x130   : > { %v702_v12 = vadd.f32 1.0, %v1056_v1  ;;  %v732_v15 = vmul.f32 %v700_v62, %v604_v8 }
 0x131   : > { %v733_v14 = vmul.f32 %v701_v6, %v605_v4 }
 0x132   : > { %v734_v16 = vmul.f32 %v702_v12, %v606_v10 }
 0x133   : > { %v751_v19 = vpack.c.bf16 %v733_v14, %v731_v13 }
 0x134   : > { %v1058_v18 = vpop.eup %1057  ;;  %v752_v2 = vpack.c.bf16 %v734_v16, %v732_v15 }
 0x135   : > { %v1060_v20 = vpop.eup %1059  ;;  %v703_v11 = vadd.f32 1.0, %v1058_v18 }
 0x136   : > { %v1062_v22 = vpop.eup %1061  ;;  %v704_v24 = vadd.f32 1.0, %v1060_v20  ;;  %806 = vmatprep.subr.bf16.mxu1 %v752_v2 }
 0x137   : > { %v1064_v0 = vpop.eup %1063  ;;  %v705_v9 = vadd.f32 1.0, %v1062_v22  ;;  %807 = vmatpush1.bf16.msra.mxu1 %v751_v19  ;;  %v735_v25 = vmul.f32 %v703_v11, %v607_v63 }
 0x138   : > { %v706_v21 = vadd.f32 1.0, %v1064_v0  ;;  %v736_v27 = vmul.f32 %v704_v24, %v608_v7 }
 0x139   : > { %v737_v26 = vmul.f32 %v705_v9, %v609_v17 }
 0x13a   : > { %v738_v28 = vmul.f32 %v706_v21, %v610_v5 }
 0x13b   : > { %v753_v29 = vpack.c.bf16 %v737_v26, %v735_v25 }
 0x13c   : > { %v754_v23 = vpack.c.bf16 %v738_v28, %v736_v27 }
 0x13e   : > { %808 = vmatprep.subr.bf16.mxu1 %v754_v23 }
 0x13f   : > { %809 = vmatpush1.bf16.msra.mxu1 %v753_v29 }
 0x142   : > { %827 = vmatmul.mubr.bf16.vlgmr.msra.gmra.mrb[0].mxu1 %v771_v30 }
 0x215   : > { %v828_v34 = vpop.f32.mrb[0].mxu1 }
 0x216   : > { %v829_v35 = vadd.f32 %v828_v34, %v792_v32  ;;  %v830_v36 = vpop.f32.mrb[1].mxu1 }
 0x217   : > { %v831_v38 = vadd.f32 %v830_v36, %v792_v32  ;;  %v832_v40 = vpop.f32.mrb[2].mxu1 }
 0x218   : > { %v833_v41 = vpop.f32.mrb[3].mxu1 }
 0x219   : > { %v837_v42 = vcombine.low %v829_v35, %v831_v38 }
 0x21b   : > { %839 = vst [vmem:[%s262_s14] sm:$0x77] %v837_v42 }
 0x21c PF: > { %s15_s20 = sadd.s32 1, %s1087_s20   ;;  %s1336_s18 = smov %s1083_s19 }
 0x21d   : > { %p12_p5 = scmp.ge.s32.totalorder %s15_s20, 4   ;;  %s1337_s19 = smov %s1339_s21 }
 0x21f   :  { %14 = sbr.rel (!%p12_p5) target bundleno = 2 (0x2), region = 70 }

</bundles_post_ra>
